<compile_context>
chip_gen: v7x
topology: tpu7x:2x2x1
jax: 0.10.0
libtpu: 0.0.40
codegen_flags: <defaults>
</compile_context>

<pallas_src>
import functools

import jax
import jax.numpy as jnp
from jax import lax
from jax.experimental import pallas as pl
from jax.experimental.pallas import tpu as pltpu


def _dwsep_fused_kernel(x_ref, w_ref, b_ref, o_ref, xp_ref, *,
                        H, W, Hout, Wout, KH, KW, ph, pw):
    """One grid step: NB batch elements, full spatial extent.

    x_ref : (NB, H, W, C)        unpadded NHWC input block
    w_ref : (KH*KW*C, O)         fused (depthwise x pointwise) weight, input dtype
    b_ref : (1, O)               fused bias, f32
    o_ref : (NB, Hout*Wout, O)   true-size output block (no lane padding in HBM)
    xp_ref: (NB, Hp, Wp, C)      VMEM scratch holding the zero-padded input
    """
    NB = x_ref.shape[0]
    C = x_ref.shape[-1]
    O = o_ref.shape[-1]
    K = KH * KW * C
    HW = Hout * Wout

    # Spatial halo entirely in VMEM (replaces the wrapper-side jnp.pad HBM pass).
    if ph == 0 and pw == 0:
        src = x_ref
    else:
        xp_ref[...] = jnp.zeros_like(xp_ref)              # in-core, hidden under DMA
        xp_ref[:, ph:ph + H, pw:pw + W, :] = x_ref[...]
        src = xp_ref

    # im2col-lite: KH*KW shifted windows concatenated on the channel/lane axis.
    # Ordering ((kh*KW + kw)*C + c) matches the fused-weight row ordering.
    # TODO(synk): for C << 128 this lane-axis concatenate is the main in-core cost;
    # a pltpu.roll-based pack into a preallocated scratch would cut the churn.
    cols = [src[:, kh:kh + Hout, kw:kw + Wout, :]
            for kh in range(KH) for kw in range(KW)]
    patches = jnp.concatenate(cols, axis=-1)              # (NB, Hout, Wout, K)
    m = patches.reshape(NB * HW, K)                       # leading-dim collapse only

    # One MXU matmul for the whole depthwise+pointwise stack; f32 accumulation.
    out = jnp.dot(m, w_ref[...], preferred_element_type=jnp.float32)   # (M, O)
    out = out + b_ref[...]                                # fused bias kept in f32
    o_ref[...] = out.reshape(NB, HW, O).astype(o_ref.dtype)


def _round_up(x, m):
    return ((x + m - 1) // m) * m


def _tile_bytes(sub, lane, itemsize):
    # VMEM bytes of one (sublane, lane) tile pair after (8, 128) padding.
    return _round_up(max(sub, 1), 8) * _round_up(max(lane, 1), 128) * itemsize


def depthwise_separable_conv2d(x_nchw, w_dw, b_dw, w_pw, b_pw, padding):
    """Matches the PyTorch module:
         depth_conv: Conv2d(C, C, (KH, KW), stride=1, padding=padding, groups=C)
         point_conv: Conv2d(C, O, 1, stride=1)
    PyTorch-layout args: x (N,C,H,W), w_dw (C,1,KH,KW), b_dw (C,),
    w_pw (O,C,1,1), b_pw (O,).  Returns NCHW.
    """
    N, C, H, W = x_nchw.shape
    O = int(w_pw.shape[0])
    KH, KW = int(w_dw.shape[2]), int(w_dw.shape[3])
    ph, pw = padding
    Hp, Wp = H + 2 * ph, W + 2 * pw
    Hout, Wout = Hp - KH + 1, Wp - KW + 1
    HW = Hout * Wout
    K = KH * KW * C
    dtype = x_nchw.dtype
    itemsize = jnp.dtype(dtype).itemsize

    # ---- glue: channels-last view of the input (single HBM pass; no jnp.pad). ----
    # TODO(synk): if the surrounding model runs NHWC end-to-end this transpose also
    # disappears; doing the NCHW->channels-minor relayout inside the kernel needs
    # reshape/transpose patterns Mosaic does not reliably lower for C << 128.
    x_nhwc = jnp.transpose(x_nchw, (0, 2, 3, 1))

    # ---- exact algebraic fusion of depthwise x pointwise (tiny tensors, plain JAX).
    wdw = jnp.transpose(w_dw[:, 0, :, :], (1, 2, 0)).reshape(KH * KW, C)   # (T, C)
    wpw = jnp.transpose(w_pw[:, :, 0, 0], (1, 0))                          # (C, O)
    w_fused = (wdw[:, :, None].astype(jnp.float32)
               * wpw[None, :, :].astype(jnp.float32)).reshape(K, O)
    b_fused = (b_dw.astype(jnp.float32) @ wpw.astype(jnp.float32)
               + b_pw.astype(jnp.float32)).reshape(1, O)
    # Operands go into the MXU in the input dtype (bf16 stays bf16 on v6e/v7x).
    # NOTE: for bf16 inputs this adds one rounding of wdw*wpw vs the two-stage reference.
    w_fused = w_fused.astype(dtype)

    # ---- generation-aware VMEM ceiling (v7x: 64 MiB/TC; v5e/v6e: 128 MiB). ----
    try:
        cap = int(getattr(pltpu.get_tpu_info(), "vmem_capacity_bytes", 64 << 20))
    except Exception:
        cap = 64 << 20                      # conservative (v7x-sized) fallback
    ceiling = (cap * 4) // 5                # ~51 MiB on v7x, ~102 MiB on v5e/v6e

    def vmem_needed(nb):
        # (8,128)-tile-rounded accounting, incl. lane padding when C, O < 128,
        # the im2col intermediates and the f32 matmul result.
        in_blk = nb * H * _tile_bytes(W, C, itemsize)             # (NB,H,W,C)
        xp_scr = nb * Hp * _tile_bytes(Wp, C, itemsize)           # padded scratch
        patch = nb * Hout * _tile_bytes(Wout, K, itemsize)        # concatenated taps
        mmat = _tile_bytes(nb * HW, K, itemsize)                  # (M, K)
        acc = _tile_bytes(nb * HW, O, 4)                          # f32 result
        out_blk = nb * _tile_bytes(HW, O, itemsize)               # (NB, HW, O)
        w_b = _tile_bytes(K, O, itemsize) + _tile_bytes(1, O, 4)
        need = 2 * (in_blk + out_blk) + xp_scr + patch + mmat + acc + 2 * w_b
        return int(need * 1.25) + (4 << 20)                       # headroom

    # ---- NB (batch elements per grid step): keep grid >= 2 for pipelining and v7x
    # 2-TensorCore sharding (>= 4 steps when the batch allows), then grow NB to
    # amortize per-step overhead, all under the VMEM budget.
    divisors = [d for d in range(1, N + 1) if N % d == 0]
    NB = 1
    for min_steps in (4, 2, 1):
        cands = [d for d in divisors
                 if N // d >= min(min_steps, N)
                 and (d == 1 or d * HW <= 8192)
                 and vmem_needed(d) <= ceiling]
        if cands:
            NB = max(cands)
            break
    grid = (N // NB,)
    vmem_limit = int(min(max(vmem_needed(NB), 32 << 20), ceiling))

    kernel = functools.partial(_dwsep_fused_kernel, H=H, W=W, Hout=Hout, Wout=Wout,
                               KH=KH, KW=KW, ph=ph, pw=pw)
    out_shape = jax.ShapeDtypeStruct((N, HW, O), dtype)

    def run(single_buffer_consts):
        const_kw = dict(pipeline_mode=pl.Buffered(1)) if single_buffer_consts else {}
        grid_spec = pltpu.PrefetchScalarGridSpec(
            num_scalar_prefetch=0,
            grid=grid,
            in_specs=[
                pl.BlockSpec((NB, H, W, C), lambda n: (n, 0, 0, 0)),
                pl.BlockSpec((K, O), lambda n: (0, 0), **const_kw),
                pl.BlockSpec((1, O), lambda n: (0, 0), **const_kw),
            ],
            out_specs=pl.BlockSpec((NB, HW, O), lambda n: (n, 0, 0)),
            scratch_shapes=[pltpu.VMEM((NB, Hp, Wp, C), dtype)],
        )
        return pl.pallas_call(
            kernel,
            out_shape=out_shape,
            grid_spec=grid_spec,
            compiler_params=pltpu.CompilerParams(
                dimension_semantics=("parallel",),
                vmem_limit_bytes=vmem_limit,
            ),
        )(x_nhwc, w_fused, b_fused)

    try:
        # Constant weight/bias operands don't need double buffering (saves VMEM for
        # large C*O; matters most under v7x's 64 MiB budget).
        out_flat = run(True)
    except Exception:
        out_flat = run(False)   # fall back to default buffering if Buffered(1) rejected

    # TODO(synk): for large spatial sizes (e.g. 112-224 with C >= 128 under v7x's
    # 64 MiB VMEM) add a second "arbitrary" grid axis over output-row strips with a
    # (KH-1)-row halo instead of whole images per grid step.
    out_nhwc = out_flat.reshape(N, Hout, Wout, O)       # free (row-major split)
    return jnp.transpose(out_nhwc, (0, 3, 1, 2))        # single true-size pass to NCHW


def _reference(x, w_dw, b_dw, w_pw, b_pw, padding):
    """Pure-JAX reference mirroring torch.nn.Conv2d semantics."""
    C = x.shape[1]
    ph, pw = padding
    dw = lax.conv_general_dilated(
        x, w_dw, window_strides=(1, 1), padding=((ph, ph), (pw, pw)),
        dimension_numbers=("NCHW", "OIHW", "NCHW"), feature_group_count=C)
    dw = dw + b_dw.reshape(1, -1, 1, 1)
    pwc = lax.conv_general_dilated(
        dw, w_pw, window_strides=(1, 1), padding="VALID",
        dimension_numbers=("NCHW", "OIHW", "NCHW"))
    return pwc + b_pw.reshape(1, -1, 1, 1)


if __name__ == "__main__":
    # Small shapes consistent with the module: N=2, C_in=4, C_out=8, 16x16, k=3, pad=1.
    N, C, O, H, W = 2, 4, 8, 16, 16
    KH = KW = 3
    padding = (1, 1)

    key = jax.random.PRNGKey(0)
    k_x, k_wdw, k_bdw, k_wpw, k_bpw = jax.random.split(key, 5)

    x = jax.random.normal(k_x, (N, C, H, W), dtype=jnp.float32)
    # PyTorch-like uniform init bounds; shapes match the module's __init__:
    # depth_conv.weight (C,1,KH,KW), depth_conv.bias (C,)
    # point_conv.weight (O,C,1,1),  point_conv.bias  (O,)
    bound_dw = 1.0 / (1 * KH * KW) ** 0.5
    bound_pw = 1.0 / (C * 1 * 1) ** 0.5
    w_dw = jax.random.uniform(k_wdw, (C, 1, KH, KW), jnp.float32, -bound_dw, bound_dw)
    b_dw = jax.random.uniform(k_bdw, (C,), jnp.float32, -bound_dw, bound_dw)
    w_pw = jax.random.uniform(k_wpw, (O, C, 1, 1), jnp.float32, -bound_pw, bound_pw)
    b_pw = jax.random.uniform(k_bpw, (O,), jnp.float32, -bound_pw, bound_pw)

    out = depthwise_separable_conv2d(x, w_dw, b_dw, w_pw, b_pw, padding)
    out = jax.block_until_ready(out)

    ref = jax.block_until_ready(_reference(x, w_dw, b_dw, w_pw, b_pw, padding))

    assert out.shape == (N, O, H, W), out.shape
    assert jnp.allclose(out, ref, atol=1e-4, rtol=1e-4), float(jnp.max(jnp.abs(out - ref)))
    print("KERNEL_OK")
</pallas_src>

<mosaic_0001>
module attributes {stable_mosaic.version = 11 : i64} {
  func.func @_dwsep_fused_kernel(%arg0: i32, %arg1: memref<1x16x16x4xf32, #tpu.memory_space<vmem>>, %arg2: memref<36x8xf32, #tpu.memory_space<vmem>>, %arg3: memref<1x8xf32, #tpu.memory_space<vmem>>, %arg4: memref<1x256x8xf32, #tpu.memory_space<vmem>>, %arg5: memref<1x18x18x4xf32, #tpu.memory_space<vmem>>) attributes {dimension_semantics = [#tpu.dimension_semantics<parallel>], iteration_bounds = array<i64: 2>, scalar_prefetch = 0 : i64, scratch_operands = 1 : i64, tpu.core_type = #tpu.core_type<tc>, window_params = [{transform_indices = @transform_0, window_bounds = array<i64: 1, 16, 16, 4>}, {pipeline_mode = #tpu.pipeline_mode<synchronous>, transform_indices = @transform_1, window_bounds = array<i64: 36, 8>}, {pipeline_mode = #tpu.pipeline_mode<synchronous>, transform_indices = @transform_2, window_bounds = array<i64: 1, 8>}, {transform_indices = @transform_3, window_bounds = array<i64: 1, 256, 8>}]} {
    %cst = arith.constant 0.000000e+00 : f32
    %0 = vector.broadcast %cst : f32 to vector<1x18x18x4xf32>
    %c0 = arith.constant 0 : index
    %c0_0 = arith.constant 0 : index
    %c0_1 = arith.constant 0 : index
    %c0_2 = arith.constant 0 : index
    %1 = vector.load %arg5[%c0, %c0_0, %c0_1, %c0_2] : memref<1x18x18x4xf32, #tpu.memory_space<vmem>>, vector<1x18x18x4xf32>
    tpu.vector_store %arg5[%c0, %c0_0, %c0_1, %c0_2], %0 {strides = array<i32>} : memref<1x18x18x4xf32, #tpu.memory_space<vmem>>, vector<1x18x18x4xf32>,
    %c0_3 = arith.constant 0 : index
    %c0_4 = arith.constant 0 : index
    %c0_5 = arith.constant 0 : index
    %c0_6 = arith.constant 0 : index
    %2 = vector.load %arg1[%c0_3, %c0_4, %c0_5, %c0_6] : memref<1x16x16x4xf32, #tpu.memory_space<vmem>>, vector<1x16x16x4xf32>
    %c0_7 = arith.constant 0 : index
    %c1 = arith.constant 1 : index
    %c1_8 = arith.constant 1 : index
    %c0_9 = arith.constant 0 : index
    %3 = vector.load %arg5[%c0_7, %c1, %c1_8, %c0_9] : memref<1x18x18x4xf32, #tpu.memory_space<vmem>>, vector<1x16x16x4xf32>
    tpu.vector_store %arg5[%c0_7, %c1, %c1_8, %c0_9], %2 {strides = array<i32>} : memref<1x18x18x4xf32, #tpu.memory_space<vmem>>, vector<1x16x16x4xf32>,
    %c0_10 = arith.constant 0 : index
    %c0_11 = arith.constant 0 : index
    %c0_12 = arith.constant 0 : index
    %c0_13 = arith.constant 0 : index
    %4 = vector.load %arg5[%c0_10, %c0_11, %c0_12, %c0_13] : memref<1x18x18x4xf32, #tpu.memory_space<vmem>>, vector<1x16x16x4xf32>
    %c0_14 = arith.constant 0 : index
    %c0_15 = arith.constant 0 : index
    %c1_16 = arith.constant 1 : index
    %c0_17 = arith.constant 0 : index
    %5 = vector.load %arg5[%c0_14, %c0_15, %c1_16, %c0_17] : memref<1x18x18x4xf32, #tpu.memory_space<vmem>>, vector<1x16x16x4xf32>
    %c0_18 = arith.constant 0 : index
    %c0_19 = arith.constant 0 : index
    %c2 = arith.constant 2 : index
    %c0_20 = arith.constant 0 : index
    %6 = vector.load %arg5[%c0_18, %c0_19, %c2, %c0_20] : memref<1x18x18x4xf32, #tpu.memory_space<vmem>>, vector<1x16x16x4xf32>
    %c0_21 = arith.constant 0 : index
    %c1_22 = arith.constant 1 : index
    %c0_23 = arith.constant 0 : index
    %c0_24 = arith.constant 0 : index
    %7 = vector.load %arg5[%c0_21, %c1_22, %c0_23, %c0_24] : memref<1x18x18x4xf32, #tpu.memory_space<vmem>>, vector<1x16x16x4xf32>
    %c0_25 = arith.constant 0 : index
    %c1_26 = arith.constant 1 : index
    %c1_27 = arith.constant 1 : index
    %c0_28 = arith.constant 0 : index
    %8 = vector.load %arg5[%c0_25, %c1_26, %c1_27, %c0_28] : memref<1x18x18x4xf32, #tpu.memory_space<vmem>>, vector<1x16x16x4xf32>
    %c0_29 = arith.constant 0 : index
    %c1_30 = arith.constant 1 : index
    %c2_31 = arith.constant 2 : index
    %c0_32 = arith.constant 0 : index
    %9 = vector.load %arg5[%c0_29, %c1_30, %c2_31, %c0_32] : memref<1x18x18x4xf32, #tpu.memory_space<vmem>>, vector<1x16x16x4xf32>
    %c0_33 = arith.constant 0 : index
    %c2_34 = arith.constant 2 : index
    %c0_35 = arith.constant 0 : index
    %c0_36 = arith.constant 0 : index
    %10 = vector.load %arg5[%c0_33, %c2_34, %c0_35, %c0_36] : memref<1x18x18x4xf32, #tpu.memory_space<vmem>>, vector<1x16x16x4xf32>
    %c0_37 = arith.constant 0 : index
    %c2_38 = arith.constant 2 : index
    %c1_39 = arith.constant 1 : index
    %c0_40 = arith.constant 0 : index
    %11 = vector.load %arg5[%c0_37, %c2_38, %c1_39, %c0_40] : memref<1x18x18x4xf32, #tpu.memory_space<vmem>>, vector<1x16x16x4xf32>
    %c0_41 = arith.constant 0 : index
    %c2_42 = arith.constant 2 : index
    %c2_43 = arith.constant 2 : index
    %c0_44 = arith.constant 0 : index
    %12 = vector.load %arg5[%c0_41, %c2_42, %c2_43, %c0_44] : memref<1x18x18x4xf32, #tpu.memory_space<vmem>>, vector<1x16x16x4xf32>
    %13 = tpu.concatenate %4, %5, %6, %7, %8, %9, %10, %11, %12 in 3 : vector<1x16x16x4xf32>, vector<1x16x16x4xf32>, vector<1x16x16x4xf32>, vector<1x16x16x4xf32>, vector<1x16x16x4xf32>, vector<1x16x16x4xf32>, vector<1x16x16x4xf32>, vector<1x16x16x4xf32>, vector<1x16x16x4xf32> -> vector<1x16x16x36xf32>
    %14 = vector.shape_cast %13 : vector<1x16x16x36xf32> to vector<256x36xf32>
    %c0_45 = arith.constant 0 : index
    %c0_46 = arith.constant 0 : index
    %15 = vector.load %arg2[%c0_45, %c0_46] : memref<36x8xf32, #tpu.memory_space<vmem>>, vector<36x8xf32>
    %cst_47 = arith.constant dense<0.000000e+00> : vector<256x8xf32>
    %16 = tpu.matmul %14, %15, %cst_47 {dimension_numbers = #tpu.dot_dimension_numbers<[1], [0], [0], [1], [0, 0, 1, 1], [], []>} : vector<256x36xf32>, vector<36x8xf32>, vector<256x8xf32> -> vector<256x8xf32>
    %c0_48 = arith.constant 0 : index
    %c0_49 = arith.constant 0 : index
    %17 = vector.load %arg3[%c0_48, %c0_49] : memref<1x8xf32, #tpu.memory_space<vmem>>, vector<1x8xf32>
    %18 = vector.broadcast %17 : vector<1x8xf32> to vector<256x8xf32>
    %19 = arith.addf %16, %18 : vector<256x8xf32>
    %20 = vector.shape_cast %19 : vector<256x8xf32> to vector<1x256x8xf32>
    %c0_50 = arith.constant 0 : index
    %c0_51 = arith.constant 0 : index
    %c0_52 = arith.constant 0 : index
    %21 = vector.load %arg4[%c0_50, %c0_51, %c0_52] : memref<1x256x8xf32, #tpu.memory_space<vmem>>, vector<1x256x8xf32>
    tpu.vector_store %arg4[%c0_50, %c0_51, %c0_52], %20 {strides = array<i32>} : memref<1x256x8xf32, #tpu.memory_space<vmem>>, vector<1x256x8xf32>,
    return
  }
  func.func @transform_0(%arg0: i32) -> (i32, i32, i32, i32) {
    %c0_i32 = arith.constant 0 : i32
    %c0_i32_0 = arith.constant 0 : i32
    %c0_i32_1 = arith.constant 0 : i32
    %c0_i32_2 = arith.constant 0 : i32
    return %arg0, %c0_i32, %c0_i32_0, %c0_i32_1 : i32, i32, i32, i32
  }
  func.func @transform_1(%arg0: i32) -> (i32, i32) {
    %c0_i32 = arith.constant 0 : i32
    %c0_i32_0 = arith.constant 0 : i32
    %c0_i32_1 = arith.constant 0 : i32
    return %c0_i32, %c0_i32_0 : i32, i32
  }
  func.func @transform_2(%arg0: i32) -> (i32, i32) {
    %c0_i32 = arith.constant 0 : i32
    %c0_i32_0 = arith.constant 0 : i32
    %c0_i32_1 = arith.constant 0 : i32
    return %c0_i32, %c0_i32_0 : i32, i32
  }
  func.func @transform_3(%arg0: i32) -> (i32, i32, i32) {
    %c0_i32 = arith.constant 0 : i32
    %c0_i32_0 = arith.constant 0 : i32
    %c0_i32_1 = arith.constant 0 : i32
    return %arg0, %c0_i32, %c0_i32_0 : i32, i32, i32
  }
}

module attributes {stable_mosaic.version = 11 : i64} {
  func.func @_dwsep_fused_kernel(%arg0: i32, %arg1: memref<1x16x16x4xf32, #tpu.memory_space<vmem>>, %arg2: memref<36x8xf32, #tpu.memory_space<vmem>>, %arg3: memref<1x8xf32, #tpu.memory_space<vmem>>, %arg4: memref<1x256x8xf32, #tpu.memory_space<vmem>>, %arg5: memref<1x18x18x4xf32, #tpu.memory_space<vmem>>) attributes {dimension_semantics = [#tpu.dimension_semantics<parallel>], iteration_bounds = array<i64: 2>, scalar_prefetch = 0 : i64, scratch_operands = 1 : i64, tpu.core_type = #tpu.core_type<tc>, window_params = [{transform_indices = @transform_0, window_bounds = array<i64: 1, 16, 16, 4>}, {pipeline_mode = #tpu.pipeline_mode<synchronous>, transform_indices = @transform_1, window_bounds = array<i64: 36, 8>}, {pipeline_mode = #tpu.pipeline_mode<synchronous>, transform_indices = @transform_2, window_bounds = array<i64: 1, 8>}, {transform_indices = @transform_3, window_bounds = array<i64: 1, 256, 8>}]} {
    %cst = arith.constant 0.000000e+00 : f32
    %0 = vector.broadcast %cst : f32 to vector<1x18x18x4xf32>
    %c0 = arith.constant 0 : index
    %c0_0 = arith.constant 0 : index
    %c0_1 = arith.constant 0 : index
    %c0_2 = arith.constant 0 : index
    %1 = vector.load %arg5[%c0, %c0_0, %c0_1, %c0_2] : memref<1x18x18x4xf32, #tpu.memory_space<vmem>>, vector<1x18x18x4xf32>
    tpu.vector_store %arg5[%c0, %c0_0, %c0_1, %c0_2], %0 {strides = array<i32>} : memref<1x18x18x4xf32, #tpu.memory_space<vmem>>, vector<1x18x18x4xf32>,
    %c0_3 = arith.constant 0 : index
    %c0_4 = arith.constant 0 : index
    %c0_5 = arith.constant 0 : index
    %c0_6 = arith.constant 0 : index
    %2 = vector.load %arg1[%c0_3, %c0_4, %c0_5, %c0_6] : memref<1x16x16x4xf32, #tpu.memory_space<vmem>>, vector<1x16x16x4xf32>
    %c0_7 = arith.constant 0 : index
    %c1 = arith.constant 1 : index
    %c1_8 = arith.constant 1 : index
    %c0_9 = arith.constant 0 : index
    %3 = vector.load %arg5[%c0_7, %c1, %c1_8, %c0_9] : memref<1x18x18x4xf32, #tpu.memory_space<vmem>>, vector<1x16x16x4xf32>
    tpu.vector_store %arg5[%c0_7, %c1, %c1_8, %c0_9], %2 {strides = array<i32>} : memref<1x18x18x4xf32, #tpu.memory_space<vmem>>, vector<1x16x16x4xf32>,
    %c0_10 = arith.constant 0 : index
    %c0_11 = arith.constant 0 : index
    %c0_12 = arith.constant 0 : index
    %c0_13 = arith.constant 0 : index
    %4 = vector.load %arg5[%c0_10, %c0_11, %c0_12, %c0_13] : memref<1x18x18x4xf32, #tpu.memory_space<vmem>>, vector<1x16x16x4xf32>
    %c0_14 = arith.constant 0 : index
    %c0_15 = arith.constant 0 : index
    %c1_16 = arith.constant 1 : index
    %c0_17 = arith.constant 0 : index
    %5 = vector.load %arg5[%c0_14, %c0_15, %c1_16, %c0_17] : memref<1x18x18x4xf32, #tpu.memory_space<vmem>>, vector<1x16x16x4xf32>
    %c0_18 = arith.constant 0 : index
    %c0_19 = arith.constant 0 : index
    %c2 = arith.constant 2 : index
    %c0_20 = arith.constant 0 : index
    %6 = vector.load %arg5[%c0_18, %c0_19, %c2, %c0_20] : memref<1x18x18x4xf32, #tpu.memory_space<vmem>>, vector<1x16x16x4xf32>
    %c0_21 = arith.constant 0 : index
    %c1_22 = arith.constant 1 : index
    %c0_23 = arith.constant 0 : index
    %c0_24 = arith.constant 0 : index
    %7 = vector.load %arg5[%c0_21, %c1_22, %c0_23, %c0_24] : memref<1x18x18x4xf32, #tpu.memory_space<vmem>>, vector<1x16x16x4xf32>
    %c0_25 = arith.constant 0 : index
    %c1_26 = arith.constant 1 : index
    %c1_27 = arith.constant 1 : index
    %c0_28 = arith.constant 0 : index
    %8 = vector.load %arg5[%c0_25, %c1_26, %c1_27, %c0_28] : memref<1x18x18x4xf32, #tpu.memory_space<vmem>>, vector<1x16x16x4xf32>
    %c0_29 = arith.constant 0 : index
    %c1_30 = arith.constant 1 : index
    %c2_31 = arith.constant 2 : index
    %c0_32 = arith.constant 0 : index
    %9 = vector.load %arg5[%c0_29, %c1_30, %c2_31, %c0_32] : memref<1x18x18x4xf32, #tpu.memory_space<vmem>>, vector<1x16x16x4xf32>
    %c0_33 = arith.constant 0 : index
    %c2_34 = arith.constant 2 : index
    %c0_35 = arith.constant 0 : index
    %c0_36 = arith.constant 0 : index
    %10 = vector.load %arg5[%c0_33, %c2_34, %c0_35, %c0_36] : memref<1x18x18x4xf32, #tpu.memory_space<vmem>>, vector<1x16x16x4xf32>
    %c0_37 = arith.constant 0 : index
    %c2_38 = arith.constant 2 : index
    %c1_39 = arith.constant 1 : index
    %c0_40 = arith.constant 0 : index
    %11 = vector.load %arg5[%c0_37, %c2_38, %c1_39, %c0_40] : memref<1x18x18x4xf32, #tpu.memory_space<vmem>>, vector<1x16x16x4xf32>
    %c0_41 = arith.constant 0 : index
    %c2_42 = arith.constant 2 : index
    %c2_43 = arith.constant 2 : index
    %c0_44 = arith.constant 0 : index
    %12 = vector.load %arg5[%c0_41, %c2_42, %c2_43, %c0_44] : memref<1x18x18x4xf32, #tpu.memory_space<vmem>>, vector<1x16x16x4xf32>
    %13 = tpu.concatenate %4, %5, %6, %7, %8, %9, %10, %11, %12 in 3 : vector<1x16x16x4xf32>, vector<1x16x16x4xf32>, vector<1x16x16x4xf32>, vector<1x16x16x4xf32>, vector<1x16x16x4xf32>, vector<1x16x16x4xf32>, vector<1x16x16x4xf32>, vector<1x16x16x4xf32>, vector<1x16x16x4xf32> -> vector<1x16x16x36xf32>
    %14 = vector.shape_cast %13 : vector<1x16x16x36xf32> to vector<256x36xf32>
    %c0_45 = arith.constant 0 : index
    %c0_46 = arith.constant 0 : index
    %15 = vector.load %arg2[%c0_45, %c0_46] : memref<36x8xf32, #tpu.memory_space<vmem>>, vector<36x8xf32>
    %cst_47 = arith.constant dense<0.000000e+00> : vector<256x8xf32>
    %16 = tpu.matmul %14, %15, %cst_47 {dimension_numbers = #tpu.dot_dimension_numbers<[1], [0], [0], [1], [0, 0, 1, 1], [], []>} : vector<256x36xf32>, vector<36x8xf32>, vector<256x8xf32> -> vector<256x8xf32>
    %c0_48 = arith.constant 0 : index
    %c0_49 = arith.constant 0 : index
    %17 = vector.load %arg3[%c0_48, %c0_49] : memref<1x8xf32, #tpu.memory_space<vmem>>, vector<1x8xf32>
    %18 = vector.broadcast %17 : vector<1x8xf32> to vector<256x8xf32>
    %19 = arith.addf %16, %18 : vector<256x8xf32>
    %20 = vector.shape_cast %19 : vector<256x8xf32> to vector<1x256x8xf32>
    %c0_50 = arith.constant 0 : index
    %c0_51 = arith.constant 0 : index
    %c0_52 = arith.constant 0 : index
    %21 = vector.load %arg4[%c0_50, %c0_51, %c0_52] : memref<1x256x8xf32, #tpu.memory_space<vmem>>, vector<1x256x8xf32>
    tpu.vector_store %arg4[%c0_50, %c0_51, %c0_52], %20 {strides = array<i32>} : memref<1x256x8xf32, #tpu.memory_space<vmem>>, vector<1x256x8xf32>,
    return
  }
  func.func @transform_0(%arg0: i32) -> (i32, i32, i32, i32) {
    %c0_i32 = arith.constant 0 : i32
    %c0_i32_0 = arith.constant 0 : i32
    %c0_i32_1 = arith.constant 0 : i32
    %c0_i32_2 = arith.constant 0 : i32
    return %arg0, %c0_i32, %c0_i32_0, %c0_i32_1 : i32, i32, i32, i32
  }
  func.func @transform_1(%arg0: i32) -> (i32, i32) {
    %c0_i32 = arith.constant 0 : i32
    %c0_i32_0 = arith.constant 0 : i32
    %c0_i32_1 = arith.constant 0 : i32
    return %c0_i32, %c0_i32_0 : i32, i32
  }
  func.func @transform_2(%arg0: i32) -> (i32, i32) {
    %c0_i32 = arith.constant 0 : i32
    %c0_i32_0 = arith.constant 0 : i32
    %c0_i32_1 = arith.constant 0 : i32
    return %c0_i32, %c0_i32_0 : i32, i32
  }
  func.func @transform_3(%arg0: i32) -> (i32, i32, i32) {
    %c0_i32 = arith.constant 0 : i32
    %c0_i32_0 = arith.constant 0 : i32
    %c0_i32_1 = arith.constant 0 : i32
    return %arg0, %c0_i32, %c0_i32_0 : i32, i32, i32
  }
}

</mosaic_0001>

<bundles_post_ra>
// kernel: tpu_custom_call.1
= control target key start
LH: loop header
LB: loop body
LE: loop exit
PB: predicated region body
PF: predicated region fallthrough
CT: control target
= control target key end

     0   :  { %s2522_s12 = smov 0   ;;  %s4028_s0 = inlined_call_operand.vmem [shape: f32[2,16,16,4], index: 0, kind: input, shape index: {}]   ;;  %s4029_s1 = inlined_call_operand.vmem [shape: f32[36,8], index: 1, kind: input, shape index: {}]   ;;  %s4030_s2 = inlined_call_operand.vmem [shape: f32[1,8], index: 2, kind: input, shape index: {}]   ;;  %s4031_s3 = inlined_call_operand.vmem [shape: f32[2,256,8], index: 3, kind: output, shape index: {}]  }
   0x1 LB: > { %s2293_s13 = sadd.s32 4294967295, %s2491_s12   ;;  %p2297_p0 = scmp.ge.s32.totalorder %s2491_s12, 1  ;;  %s2491_s12 = sphi %s2522_s12, %s13_s12  }
   0x2   : > { %p137_p1 = scmp.lt.s32.totalorder %s2491_s12, 3 }
   0x4   : > { %p138_p2 = pnand %p2297_p0, %p137_p1 }
   0x6   : > { %141 = sbr.rel (%p138_p2) target bundleno = 889 (0x379), region = 32 }
   0xd   : > { %vm171_vm0 = vcmask 31744   ;;  %vm174_vm1 = vcmask 25600   ;;  %p2532_p3 = scmp.lt.s32.totalorder %s2293_s13, 1  ;;  %v2493_v0 = vmov 0.0   ;;  %s2494_s19 = smov 4   ;;  %vm1977_vm2 = vcmask 1043456  }
   0xe   : > { %172 = vst.msk [vmem:[#allocation2] sm:$0xff] %vm171_vm0, %v2493_v0  ;;  %173 = vst.msk [vmem:[#allocation2 + $0x8] sm:$0xff] %vm171_vm0, %v2493_v0  ;;  %s2495_s20 = smov 8   ;;  %s2496_s21 = smov 12   ;;  %vm1637_vm3 = vcmask 64512   ;;  %vm1670_vm4 = vcmask 97280  }
   0xf   : > { %176 = vst.msk [vmem:[#allocation2 + $0x18] sm:$0xff] %vm171_vm0, %v2493_v0  ;;  %177 = vst.msk [vmem:[#allocation2 + $0x20] sm:$0xff] %vm171_vm0, %v2493_v0  ;;  %s4187_s13 = smov (!%p2532_p3, %s2293_s13), 1  ;;  %s2497_s22 = smov 16   ;;  %vm1703_vm5 = vcmask 130048   ;;  %vm1736_vm6 = vcmask 162816  }
  0x10   : > { %179 = vst.msk [vmem:[#allocation2 + $0x30] sm:$0xff] %vm171_vm0, %v2493_v0  ;;  %180 = vst.msk [vmem:[#allocation2 + $0x38] sm:$0xff] %vm171_vm0, %v2493_v0  ;;  %s2338_s15 = sshll.u32 %s4187_s13, 8  ;;  %s2498_s23 = smov 20   ;;  %vm1769_vm7 = vcmask 195584   ;;  %vm1835_vm8 = vcmask 261120  }
  0x11   : > { %182 = vst.msk [vmem:[#allocation2 + $0x48] sm:$0xff] %vm171_vm0, %v2493_v0  ;;  %183 = vst.msk [vmem:[#allocation2 + $0x50] sm:$0xff] %vm171_vm0, %v2493_v0  ;;  %s2602_s18 = scalar_lea.vmem %s4028_s0, %s2338_s15  ;;  %s2499_s24 = smov 24   ;;  %vm1802_vm9 = vcmask 228352   ;;  %vm1880_vm10 = vcmask 293888  }
  0x12   : > { %185 = vst.msk [vmem:[#allocation2 + $0x60] sm:$0xff] %vm171_vm0, %v2493_v0  ;;  %186 = vst.msk [vmem:[#allocation2 + $0x68] sm:$0xff] %vm171_vm0, %v2493_v0  ;;  %v227_v1 = vld [vmem:[%s2602_s18] sm:$0xff]  ;;  %v229_v2 = vld [vmem:[%s2602_s18 + $0x10] sm:$0xff]  ;;  %s2500_s6 = smov 28   ;;  %s2501_s9 = smov 32  }
  0x13   : > { %188 = vst.msk [vmem:[#allocation2 + $0x78] sm:$0xff] %vm171_vm0, %v2493_v0  ;;  %189 = vst.msk [vmem:[#allocation2 + $0x80] sm:$0xff] %vm171_vm0, %v2493_v0  ;;  %v228_v3 = vld [vmem:[%s2602_s18 + $0x8] sm:$0xff]  ;;  %v231_v4 = vld [vmem:[%s2602_s18 + $0x20] sm:$0xff]  ;;  %s3815_s17 = scalar_lea.vmem %s4031_s3, %s2338_s15 }
  0x14   : > { %191 = vst.msk [vmem:[#allocation2 + $0x90] sm:$0xff] %vm171_vm0, %v2493_v0  ;;  %192 = vst.msk [vmem:[#allocation2 + $0x98] sm:$0xff] %vm171_vm0, %v2493_v0  ;;  %v230_v5 = vld [vmem:[%s2602_s18 + $0x18] sm:$0xff]  ;;  %v233_v6 = vld [vmem:[%s2602_s18 + $0x30] sm:$0xff] }
  0x15   : > { %194 = vst.msk [vmem:[#allocation2 + $0xa8] sm:$0xff] %vm171_vm0, %v2493_v0  ;;  %195 = vst.msk [vmem:[#allocation2 + $0xb0] sm:$0xff] %vm171_vm0, %v2493_v0  ;;  %v324_v7 = vld [vmem:[#allocation2 + $0x1] sm:$0xff]  ;;  %v234_v11 = vld [vmem:[%s2602_s18 + $0x38] sm:$0xff] }
  0x16   : > { %197 = vst.msk [vmem:[#allocation2 + $0xc0] sm:$0xff] %vm171_vm0, %v2493_v0  ;;  %198 = vst.msk [vmem:[#allocation2 + $0xc8] sm:$0xff] %vm171_vm0, %v2493_v0  ;;  %v232_v9 = vld [vmem:[%s2602_s18 + $0x28] sm:$0xff]  ;;  %613 = vrot.lane.b32.xlu0 %v324_v7, %s2494_s19  ;;  %v235_v10 = vld [vmem:[%s2602_s18 + $0x40] sm:$0xff] }
  0x17   : > { %200 = vst.msk [vmem:[#allocation2 + $0xd8] sm:$0xff] %vm171_vm0, %v2493_v0  ;;  %201 = vst.msk [vmem:[#allocation2 + $0xe0] sm:$0xff] %vm171_vm0, %v2493_v0  ;;  %v237_v12 = vld [vmem:[%s2602_s18 + $0x50] sm:$0xff]  ;;  %v236_v13 = vld [vmem:[%s2602_s18 + $0x48] sm:$0xff] }
  0x18   : > { %203 = vst.msk [vmem:[#allocation2 + $0xf0] sm:$0xff] %vm171_vm0, %v2493_v0  ;;  %204 = vst.msk [vmem:[#allocation2 + $0xf8] sm:$0xff] %vm171_vm0, %v2493_v0  ;;  %v239_v14 = vld [vmem:[%s2602_s18 + $0x60] sm:$0xff]  ;;  %v238_v15 = vld [vmem:[%s2602_s18 + $0x58] sm:$0xff] }
  0x19   : > { %206 = vst.msk [vmem:[#allocation2 + $0x108] sm:$0xff] %vm171_vm0, %v2493_v0  ;;  %207 = vst.msk [vmem:[#allocation2 + $0x110] sm:$0xff] %vm171_vm0, %v2493_v0  ;;  %v241_v16 = vld [vmem:[%s2602_s18 + $0x70] sm:$0xff]  ;;  %v240_v17 = vld [vmem:[%s2602_s18 + $0x68] sm:$0xff] }
  0x1a   : > { %209 = vst.msk [vmem:[#allocation2 + $0x120] sm:$0xff] %vm171_vm0, %v2493_v0  ;;  %210 = vst.msk [vmem:[#allocation2 + $0x128] sm:$0xff] %vm171_vm0, %v2493_v0  ;;  %v243_v18 = vld [vmem:[%s2602_s18 + $0x80] sm:$0xff]  ;;  %v242_v19 = vld [vmem:[%s2602_s18 + $0x78] sm:$0xff] }
  0x1b   : > { %212 = vst.msk [vmem:[#allocation2 + $0x138] sm:$0xff] %vm171_vm0, %v2493_v0  ;;  %213 = vst.msk [vmem:[#allocation2 + $0x140] sm:$0xff] %vm171_vm0, %v2493_v0  ;;  %v245_v20 = vld [vmem:[%s2602_s18 + $0x90] sm:$0xff]  ;;  %v244_v21 = vld [vmem:[%s2602_s18 + $0x88] sm:$0xff] }
  0x1c   : > { %215 = vst.msk [vmem:[#allocation2 + $0x150] sm:$0xff] %vm171_vm0, %v2493_v0  ;;  %216 = vst.msk [vmem:[#allocation2 + $0x158] sm:$0xff] %vm171_vm0, %v2493_v0  ;;  %v247_v22 = vld [vmem:[%s2602_s18 + $0xa0] sm:$0xff]  ;;  %v246_v23 = vld [vmem:[%s2602_s18 + $0x98] sm:$0xff] }
  0x1d   : > { %218 = vst.msk [vmem:[#allocation2 + $0x168] sm:$0xff] %vm171_vm0, %v2493_v0  ;;  %219 = vst.msk [vmem:[#allocation2 + $0x170] sm:$0xff] %vm171_vm0, %v2493_v0  ;;  %v249_v24 = vld [vmem:[%s2602_s18 + $0xb0] sm:$0xff]  ;;  %v248_v28 = vld [vmem:[%s2602_s18 + $0xa8] sm:$0xff] }
  0x1e   : > { %221 = vst.msk [vmem:[#allocation2 + $0x180] sm:$0xff] %vm171_vm0, %v2493_v0  ;;  %222 = vst.msk [vmem:[#allocation2 + $0x188] sm:$0xff] %vm171_vm0, %v2493_v0  ;;  %v251_v29 = vld [vmem:[%s2602_s18 + $0xc0] sm:$0xff]  ;;  %v250_v33 = vld [vmem:[%s2602_s18 + $0xb8] sm:$0xff] }
  0x1f   : > { %224 = vst.msk [vmem:[#allocation2 + $0x198] sm:$0xff] %vm171_vm0, %v2493_v0  ;;  %225 = vst.msk [vmem:[#allocation2 + $0x1a0] sm:$0xff] %vm171_vm0, %v2493_v0  ;;  %v253_v34 = vld [vmem:[%s2602_s18 + $0xd0] sm:$0xff]  ;;  %v252_v35 = vld [vmem:[%s2602_s18 + $0xc8] sm:$0xff] }
  0x20   : > { %175 = vst.msk [vmem:[#allocation2 + $0x10] sm:$0x3] %vm174_vm1, %v2493_v0  ;;  %178 = vst.msk [vmem:[#allocation2 + $0x28] sm:$0x3] %vm174_vm1, %v2493_v0  ;;  %v255_v36 = vld [vmem:[%s2602_s18 + $0xe0] sm:$0xff]  ;;  %v254_v37 = vld [vmem:[%s2602_s18 + $0xd8] sm:$0xff] }
  0x21   : > { %181 = vst.msk [vmem:[#allocation2 + $0x40] sm:$0x3] %vm174_vm1, %v2493_v0  ;;  %184 = vst.msk [vmem:[#allocation2 + $0x58] sm:$0x3] %vm174_vm1, %v2493_v0  ;;  %v256_v39 = vld [vmem:[%s2602_s18 + $0xe8] sm:$0xff]  ;;  %v257_v58 = vld [vmem:[%s2602_s18 + $0xf0] sm:$0xff] }
  0x22   : > { %187 = vst.msk [vmem:[#allocation2 + $0x70] sm:$0x3] %vm174_vm1, %v2493_v0  ;;  %190 = vst.msk [vmem:[#allocation2 + $0x88] sm:$0x3] %vm174_vm1, %v2493_v0  ;;  %v258_v62 = vld [vmem:[%s2602_s18 + $0xf8] sm:$0xff] }
  0x23   : > { %193 = vst.msk [vmem:[#allocation2 + $0xa0] sm:$0x3] %vm174_vm1, %v2493_v0  ;;  %196 = vst.msk [vmem:[#allocation2 + $0xb8] sm:$0x3] %vm174_vm1, %v2493_v0 }
  0x24   : > { %199 = vst.msk [vmem:[#allocation2 + $0xd0] sm:$0x3] %vm174_vm1, %v2493_v0  ;;  %202 = vst.msk [vmem:[#allocation2 + $0xe8] sm:$0x3] %vm174_vm1, %v2493_v0 }
  0x25   : > { %205 = vst.msk [vmem:[#allocation2 + $0x100] sm:$0x3] %vm174_vm1, %v2493_v0  ;;  %208 = vst.msk [vmem:[#allocation2 + $0x118] sm:$0x3] %vm174_vm1, %v2493_v0 }
  0x26   : > { %211 = vst.msk [vmem:[#allocation2 + $0x130] sm:$0x3] %vm174_vm1, %v2493_v0  ;;  %214 = vst.msk [vmem:[#allocation2 + $0x148] sm:$0x3] %vm174_vm1, %v2493_v0 }
  0x27   : > { %217 = vst.msk [vmem:[#allocation2 + $0x160] sm:$0x3] %vm174_vm1, %v2493_v0  ;;  %220 = vst.msk [vmem:[#allocation2 + $0x178] sm:$0x3] %vm174_vm1, %v2493_v0  ;;  %v325_v8 = vld [vmem:[#allocation2 + $0x9] sm:$0xff] }
  0x28   : > { %223 = vst.msk [vmem:[#allocation2 + $0x190] sm:$0x3] %vm174_vm1, %v2493_v0  ;;  %226 = vst.msk [vmem:[#allocation2 + $0x1a8] sm:$0x3] %vm174_vm1, %v2493_v0  ;;  %615 = vrot.lane.b32.xlu0 %v325_v8, %s2494_s19  ;;  %v356_v0 = vld [vmem:[#allocation2 + $0x2] sm:$0xff] }
  0x29   : > { %260 = vst.msk [vmem:[#allocation2 + $0x19] sm:$0xff] %vm171_vm0, %v227_v1  ;;  %262 = vst.msk [vmem:[#allocation2 + $0x31] sm:$0xff] %vm171_vm0, %v229_v2 }
  0x2a   : > { %261 = vst.msk [vmem:[#allocation2 + $0x21] sm:$0xff] %vm171_vm0, %v228_v3  ;;  %264 = vst.msk [vmem:[#allocation2 + $0x49] sm:$0xff] %vm171_vm0, %v231_v4  ;;  %v357_v3 = vld [vmem:[#allocation2 + $0xa] sm:$0xff] }
  0x2b   : > { %263 = vst.msk [vmem:[#allocation2 + $0x39] sm:$0xff] %vm171_vm0, %v230_v5  ;;  %266 = vst.msk [vmem:[#allocation2 + $0x61] sm:$0xff] %vm171_vm0, %v233_v6 }
  0x2c   : > { %265 = vst.msk [vmem:[#allocation2 + $0x51] sm:$0xff] %vm171_vm0, %v232_v9  ;;  %268 = vst.msk [vmem:[#allocation2 + $0x79] sm:$0xff] %vm171_vm0, %v235_v10 }
  0x2d   : > { %267 = vst.msk [vmem:[#allocation2 + $0x69] sm:$0xff] %vm171_vm0, %v234_v11  ;;  %270 = vst.msk [vmem:[#allocation2 + $0x91] sm:$0xff] %vm171_vm0, %v237_v12 }
  0x2e   : > { %269 = vst.msk [vmem:[#allocation2 + $0x81] sm:$0xff] %vm171_vm0, %v236_v13  ;;  %272 = vst.msk [vmem:[#allocation2 + $0xa9] sm:$0xff] %vm171_vm0, %v239_v14 }
  0x2f   : > { %271 = vst.msk [vmem:[#allocation2 + $0x99] sm:$0xff] %vm171_vm0, %v238_v15  ;;  %274 = vst.msk [vmem:[#allocation2 + $0xc1] sm:$0xff] %vm171_vm0, %v241_v16 }
  0x30   : > { %273 = vst.msk [vmem:[#allocation2 + $0xb1] sm:$0xff] %vm171_vm0, %v240_v17  ;;  %276 = vst.msk [vmem:[#allocation2 + $0xd9] sm:$0xff] %vm171_vm0, %v243_v18  ;;  %v2647_v25 = vld [vmem:[#allocation2 + $0x19] sm:$0xff]  ;;  %v2649_v26 = vld [vmem:[#allocation2 + $0x31] sm:$0xff] }
  0x31   : > { %275 = vst.msk [vmem:[#allocation2 + $0xc9] sm:$0xff] %vm171_vm0, %v242_v19  ;;  %278 = vst.msk [vmem:[#allocation2 + $0xf1] sm:$0xff] %vm171_vm0, %v245_v20  ;;  %617 = vrot.lane.b32.xlu1 %v2647_v25, %s2494_s19  ;;  %v2656_v27 = vld [vmem:[#allocation2 + $0x21] sm:$0xff]  ;;  %621 = vrot.lane.b32.xlu0 %v2649_v26, %s2494_s19  ;;  %v2664_v30 = vld [vmem:[#allocation2 + $0x49] sm:$0xff] }
  0x32   : > { %277 = vst.msk [vmem:[#allocation2 + $0xe1] sm:$0xff] %vm171_vm0, %v244_v21  ;;  %280 = vst.msk [vmem:[#allocation2 + $0x109] sm:$0xff] %vm171_vm0, %v247_v22  ;;  %v2668_v31 = vld [vmem:[#allocation2 + $0x39] sm:$0xff]  ;;  %v2672_v32 = vld [vmem:[#allocation2 + $0x61] sm:$0xff] }
  0x33   : > { %279 = vst.msk [vmem:[#allocation2 + $0xf9] sm:$0xff] %vm171_vm0, %v246_v23  ;;  %282 = vst.msk [vmem:[#allocation2 + $0x121] sm:$0xff] %vm171_vm0, %v249_v24  ;;  %v2684_v38 = vld [vmem:[#allocation2 + $0x51] sm:$0xff]  ;;  %v334_v40 = vld [vmem:[#allocation2 + $0x79] sm:$0xff] }
  0x34   : > { %281 = vst.msk [vmem:[#allocation2 + $0x111] sm:$0xff] %vm171_vm0, %v248_v28  ;;  %284 = vst.msk [vmem:[#allocation2 + $0x139] sm:$0xff] %vm171_vm0, %v251_v29  ;;  %v333_v41 = vld [vmem:[#allocation2 + $0x69] sm:$0xff]  ;;  %v336_v42 = vld [vmem:[#allocation2 + $0x91] sm:$0xff] }
  0x35   : > { %619 = vrot.lane.b32.xlu1 %v2656_v27, %s2494_s19  ;;  %625 = vrot.lane.b32.xlu0 %v2664_v30, %s2494_s19  ;;  %283 = vst.msk [vmem:[#allocation2 + $0x129] sm:$0xff] %vm171_vm0, %v250_v33  ;;  %286 = vst.msk [vmem:[#allocation2 + $0x151] sm:$0xff] %vm171_vm0, %v253_v34  ;;  %v335_v43 = vld [vmem:[#allocation2 + $0x81] sm:$0xff]  ;;  %v338_v44 = vld [vmem:[#allocation2 + $0xa9] sm:$0xff] }
  0x36   : > { %285 = vst.msk [vmem:[#allocation2 + $0x141] sm:$0xff] %vm171_vm0, %v252_v35  ;;  %288 = vst.msk [vmem:[#allocation2 + $0x169] sm:$0xff] %vm171_vm0, %v255_v36  ;;  %v337_v45 = vld [vmem:[#allocation2 + $0x99] sm:$0xff]  ;;  %v340_v46 = vld [vmem:[#allocation2 + $0xc1] sm:$0xff] }
  0x37   : > { %287 = vst.msk [vmem:[#allocation2 + $0x159] sm:$0xff] %vm171_vm0, %v254_v37  ;;  %289 = vst.msk [vmem:[#allocation2 + $0x171] sm:$0xff] %vm171_vm0, %v256_v39  ;;  %v339_v47 = vld [vmem:[#allocation2 + $0xb1] sm:$0xff]  ;;  %v2701_v48 = vld [vmem:[#allocation2 + $0xd9] sm:$0xff] }
  0x38   : > { %v341_v49 = vld [vmem:[#allocation2 + $0xc9] sm:$0xff]  ;;  %v2706_v50 = vld [vmem:[#allocation2 + $0xf1] sm:$0xff]  ;;  %290 = vst.msk [vmem:[#allocation2 + $0x181] sm:$0xff] %vm171_vm0, %v257_v58  ;;  %291 = vst.msk [vmem:[#allocation2 + $0x189] sm:$0xff] %vm171_vm0, %v258_v62 }
  0x39   : > { %623 = vrot.lane.b32.xlu1 %v2668_v31, %s2494_s19  ;;  %629 = vrot.lane.b32.xlu0 %v2672_v32, %s2494_s19  ;;  %v2709_v51 = vld [vmem:[#allocation2 + $0xe1] sm:$0xff]  ;;  %v2713_v52 = vld [vmem:[#allocation2 + $0x109] sm:$0xff]  ;;  %v2750_v4 = vld [vmem:[#allocation2 + $0x32] sm:$0xff] }
  0x3a   : > { %v2717_v53 = vld [vmem:[#allocation2 + $0xf9] sm:$0xff]  ;;  %v2721_v54 = vld [vmem:[#allocation2 + $0x121] sm:$0xff]  ;;  %v2757_v6 = vld [vmem:[#allocation2 + $0x4a] sm:$0xff] }
  0x3b   : > { %v2725_v55 = vld [vmem:[#allocation2 + $0x111] sm:$0xff]  ;;  %v350_v56 = vld [vmem:[#allocation2 + $0x139] sm:$0xff]  ;;  %v2753_v5 = vld [vmem:[#allocation2 + $0x22] sm:$0xff] }
  0x3c   : > { %v2731_v57 = vld [vmem:[#allocation2 + $0x129] sm:$0xff]  ;;  %v352_v59 = vld [vmem:[#allocation2 + $0x151] sm:$0xff]  ;;  %v2745_v2 = vld [vmem:[#allocation2 + $0x1a] sm:$0xff] }
  0x3d   : > { %627 = vrot.lane.b32.xlu1 %v2684_v38, %s2494_s19  ;;  %633 = vrot.lane.b32.xlu0 %v334_v40, %s2494_s19  ;;  %v351_v60 = vld [vmem:[#allocation2 + $0x141] sm:$0xff]  ;;  %v354_v61 = vld [vmem:[#allocation2 + $0x169] sm:$0xff]  ;;  %v2769_v9 = vld [vmem:[#allocation2 + $0x52] sm:$0xff] }
  0x3e   : > { %v353_v63 = vld [vmem:[#allocation2 + $0x159] sm:$0xff]  ;;  %v355_v1 = vld [vmem:[#allocation2 + $0x171] sm:$0xff]  ;;  %v2765_v8 = vld [vmem:[#allocation2 + $0x62] sm:$0xff] }
  0x3f   : > { %v2761_v7 = vld [vmem:[#allocation2 + $0x3a] sm:$0xff]  ;;  %v2775_v11 = vld [vmem:[#allocation2 + $0x6a] sm:$0xff]  ;;  %v368_v12 = vld [vmem:[#allocation2 + $0x92] sm:$0xff] }
  0x40   : > { %v366_v10 = vld [vmem:[#allocation2 + $0x7a] sm:$0xff]  ;;  %v367_v13 = vld [vmem:[#allocation2 + $0x82] sm:$0xff]  ;;  %v370_v14 = vld [vmem:[#allocation2 + $0xaa] sm:$0xff] }
  0x41   : > { %631 = vrot.lane.b32.xlu1 %v333_v41, %s2494_s19  ;;  %637 = vrot.lane.b32.xlu0 %v336_v42, %s2494_s19  ;;  %v369_v15 = vld [vmem:[#allocation2 + $0x9a] sm:$0xff]  ;;  %v372_v16 = vld [vmem:[#allocation2 + $0xc2] sm:$0xff]  ;;  %v371_v17 = vld [vmem:[#allocation2 + $0xb2] sm:$0xff] }
  0x42   : > { %v2785_v18 = vld [vmem:[#allocation2 + $0xda] sm:$0xff]  ;;  %v373_v19 = vld [vmem:[#allocation2 + $0xca] sm:$0xff]  ;;  %v2790_v20 = vld [vmem:[#allocation2 + $0xf2] sm:$0xff] }
  0x43   : > { %v2793_v21 = vld [vmem:[#allocation2 + $0xe2] sm:$0xff]  ;;  %v2797_v22 = vld [vmem:[#allocation2 + $0x10a] sm:$0xff]  ;;  %v2801_v23 = vld [vmem:[#allocation2 + $0xfa] sm:$0xff] }
  0x44   : > { %v2805_v24 = vld [vmem:[#allocation2 + $0x122] sm:$0xff]  ;;  %v2809_v28 = vld [vmem:[#allocation2 + $0x112] sm:$0xff]  ;;  %v382_v29 = vld [vmem:[#allocation2 + $0x13a] sm:$0xff] }
  0x45   : > { %635 = vrot.lane.b32.xlu1 %v335_v43, %s2494_s19  ;;  %641 = vrot.lane.b32.xlu0 %v338_v44, %s2494_s19  ;;  %v2817_v34 = vld [vmem:[#allocation2 + $0x12a] sm:$0xff]  ;;  %v384_v35 = vld [vmem:[#allocation2 + $0x152] sm:$0xff]  ;;  %v383_v37 = vld [vmem:[#allocation2 + $0x142] sm:$0xff] }
  0x46   : > { %v386_v40 = vld [vmem:[#allocation2 + $0x16a] sm:$0xff]  ;;  %v385_v42 = vld [vmem:[#allocation2 + $0x15a] sm:$0xff] }
  0x49   : > { %639 = vrot.lane.b32.xlu1 %v337_v45, %s2494_s19  ;;  %645 = vrot.lane.b32.xlu0 %v340_v46, %s2494_s19  ;;  %v2836_v45 = vld [vmem:[#allocation2 + $0x18] sm:$0xff] }
  0x4a   : > { %4042 = vst [vmem:[#allocation7_spill] sm:$0xff] %v2836_v45  ;;  %v387_v46 = vld [vmem:[#allocation2 + $0x172] sm:$0xff] }
  0x4d   : > { %643 = vrot.lane.b32.xlu1 %v339_v47, %s2494_s19  ;;  %649 = vrot.lane.b32.xlu0 %v2701_v48, %s2494_s19 }
  0x51   : > { %647 = vrot.lane.b32.xlu1 %v341_v49, %s2494_s19  ;;  %653 = vrot.lane.b32.xlu0 %v2706_v50, %s2494_s19 }
  0x55   : > { %651 = vrot.lane.b32.xlu1 %v2709_v51, %s2494_s19  ;;  %657 = vrot.lane.b32.xlu0 %v2713_v52, %s2494_s19 }
  0x59   : > { %655 = vrot.lane.b32.xlu1 %v2717_v53, %s2494_s19  ;;  %661 = vrot.lane.b32.xlu0 %v2721_v54, %s2494_s19 }
  0x5d   : > { %659 = vrot.lane.b32.xlu1 %v2725_v55, %s2494_s19  ;;  %665 = vrot.lane.b32.xlu0 %v350_v56, %s2494_s19  ;;  %v2845_v56 = vld [vmem:[#allocation2 + $0x30] sm:$0xff] }
  0x61   : > { %663 = vrot.lane.b32.xlu1 %v2731_v57, %s2494_s19  ;;  %669 = vrot.lane.b32.xlu0 %v352_v59, %s2494_s19  ;;  %v2851_v59 = vld [vmem:[#allocation2 + $0x20] sm:$0xff] }
  0x62   : > { %4046 = vst [vmem:[#allocation11_spill] sm:$0xff] %v2851_v59 }
  0x65   : > { %667 = vrot.lane.b32.xlu1 %v351_v60, %s2494_s19  ;;  %673 = vrot.lane.b32.xlu0 %v354_v61, %s2494_s19  ;;  %v2857_v61 = vld [vmem:[#allocation2 + $0x48] sm:$0xff] }
  0x69   : > { %671 = vrot.lane.b32.xlu1 %v353_v63, %s2494_s19  ;;  %741 = vrot.lane.b32.xlu0 %v356_v0, %s2495_s20  ;;  %v2863_v63 = vld [vmem:[#allocation2 + $0x38] sm:$0xff] }
  0x6d   : > { %675 = vrot.lane.b32.xlu1 %v355_v1, %s2494_s19  ;;  %745 = vrot.lane.b32.xlu0 %v2745_v2, %s2495_s20  ;;  %v2869_v1 = vld [vmem:[#allocation2 + $0x60] sm:$0xff] }
  0x71   : > { %743 = vrot.lane.b32.xlu1 %v357_v3, %s2495_s20  ;;  %749 = vrot.lane.b32.xlu0 %v2750_v4, %s2495_s20 }
  0x75   : > { %747 = vrot.lane.b32.xlu1 %v2753_v5, %s2495_s20  ;;  %753 = vrot.lane.b32.xlu0 %v2757_v6, %s2495_s20 }
  0x79   : > { %751 = vrot.lane.b32.xlu1 %v2761_v7, %s2495_s20  ;;  %757 = vrot.lane.b32.xlu0 %v2765_v8, %s2495_s20 }
  0x7d   : > { %755 = vrot.lane.b32.xlu1 %v2769_v9, %s2495_s20  ;;  %761 = vrot.lane.b32.xlu0 %v366_v10, %s2495_s20  ;;  %v2875_v10 = vld [vmem:[#allocation2 + $0x50] sm:$0xff] }
  0x81   : > { %759 = vrot.lane.b32.xlu1 %v2775_v11, %s2495_s20  ;;  %765 = vrot.lane.b32.xlu0 %v368_v12, %s2495_s20 }
  0x85   : > { %763 = vrot.lane.b32.xlu1 %v367_v13, %s2495_s20  ;;  %769 = vrot.lane.b32.xlu0 %v370_v14, %s2495_s20  ;;  %v2881_v13 = vld [vmem:[#allocation2 + $0x78] sm:$0xff] }
  0x88   : > { %v2813_v33 = vpop.permute.xlu0 %613 }
  0x89   : > { %767 = vrot.lane.b32.xlu1 %v369_v15, %s2495_s20  ;;  %773 = vrot.lane.b32.xlu0 %v372_v16, %s2495_s20  ;;  %v2887_v15 = vld [vmem:[#allocation2 + $0x68] sm:$0xff] }
  0x8d   : > { %771 = vrot.lane.b32.xlu1 %v371_v17, %s2495_s20  ;;  %777 = vrot.lane.b32.xlu0 %v2785_v18, %s2495_s20  ;;  %v304_v17 = vld [vmem:[#allocation2 + $0x90] sm:$0xff] }
  0x91   : > { %775 = vrot.lane.b32.xlu1 %v373_v19, %s2495_s20  ;;  %781 = vrot.lane.b32.xlu0 %v2790_v20, %s2495_s20 }
  0x95   : > { %779 = vrot.lane.b32.xlu1 %v2793_v21, %s2495_s20  ;;  %785 = vrot.lane.b32.xlu0 %v2797_v22, %s2495_s20 }
  0x99   : > { %783 = vrot.lane.b32.xlu1 %v2801_v23, %s2495_s20  ;;  %789 = vrot.lane.b32.xlu0 %v2805_v24, %s2495_s20 }
  0x9a   : > { %v2820_v36 = vpop.permute.xlu0 %615 }
  0x9d   : > { %787 = vrot.lane.b32.xlu1 %v2809_v28, %s2495_s20  ;;  %793 = vrot.lane.b32.xlu0 %v382_v29, %s2495_s20  ;;  %v2896_v29 = vld [vmem:[#allocation2 + $0x80] sm:$0xff] }
  0xa1   : > { %791 = vrot.lane.b32.xlu1 %v2817_v34, %s2495_s20  ;;  %797 = vrot.lane.b32.xlu0 %v384_v35, %s2495_s20 }
  0xa3   : > { %v2825_v39 = vpop.permute.xlu1 %617  ;;  %v2827_v41 = vpop.permute.xlu0 %621 }
  0xa4   : > { %4038 = vst [vmem:[#allocation3_spill] sm:$0xff] %v2825_v39  ;;  %4039 = vst [vmem:[#allocation4_spill] sm:$0xff] %v2827_v41 }
  0xa5   : > { %795 = vrot.lane.b32.xlu1 %v383_v37, %s2495_s20  ;;  %801 = vrot.lane.b32.xlu0 %v386_v40, %s2495_s20  ;;  %v306_v37 = vld [vmem:[#allocation2 + $0xa8] sm:$0xff] }
  0xa7   : > { %v2831_v43 = vpop.permute.xlu1 %619  ;;  %v2833_v44 = vpop.permute.xlu0 %625 }
  0xa8   : > { %4040 = vst [vmem:[#allocation5_spill] sm:$0xff] %v2831_v43  ;;  %4041 = vst [vmem:[#allocation6_spill] sm:$0xff] %v2833_v44 }
  0xa9   : > { %799 = vrot.lane.b32.xlu1 %v385_v42, %s2495_s20  ;;  %869 = vrot.lane.b32.xlu0 %v2836_v45, %s2496_s21  ;;  %v305_v42 = vld [vmem:[#allocation2 + $0x98] sm:$0xff] }
  0xab   : > { %v2840_v47 = vpop.permute.xlu1 %623  ;;  %v2842_v49 = vpop.permute.xlu0 %629 }
  0xac   : > { %4043 = vst [vmem:[#allocation8_spill] sm:$0xff] %v2840_v47  ;;  %4044 = vst [vmem:[#allocation9_spill] sm:$0xff] %v2842_v49 }
  0xad   : > { %803 = vrot.lane.b32.xlu1 %v387_v46, %s2495_s20  ;;  %873 = vrot.lane.b32.xlu0 %v2845_v56, %s2496_s21 }
  0xaf   : > { %v2849_v58 = vpop.permute.xlu1 %627  ;;  %v2853_v60 = vpop.permute.xlu0 %633 }
  0xb0   : > { %4045 = vst [vmem:[#allocation10_spill] sm:$0xff] %v2849_v58  ;;  %4047 = vst [vmem:[#allocation12_spill] sm:$0xff] %v2853_v60  ;;  %v2929_v60 = vld [vmem:[#allocation2 + $0xf0] sm:$0xff]  ;;  %v2941_v58 = vld [vmem:[#allocation2 + $0x108] sm:$0xff] }
  0xb1   : > { %871 = vrot.lane.b32.xlu1 %v2851_v59, %s2496_s21  ;;  %877 = vrot.lane.b32.xlu0 %v2857_v61, %s2496_s21  ;;  %4064 = vst [vmem:[#allocation29_spill] sm:$0xff] %v2941_v58  ;;  %v2983_v59 = vld [vmem:[#allocation2 + $0x140] sm:$0xff] }
  0xb3   : > { %v2861_v62 = vpop.permute.xlu1 %631  ;;  %v2865_v0 = vpop.permute.xlu0 %637 }
  0xb4   : > { %4048 = vst [vmem:[#allocation13_spill] sm:$0xff] %v2861_v62  ;;  %4049 = vst [vmem:[#allocation14_spill] sm:$0xff] %v2865_v0  ;;  %v2935_v62 = vld [vmem:[#allocation2 + $0xe0] sm:$0xff] }
  0xb5   : > { %875 = vrot.lane.b32.xlu1 %v2863_v63, %s2496_s21  ;;  %881 = vrot.lane.b32.xlu0 %v2869_v1, %s2496_s21  ;;  %4062 = vst [vmem:[#allocation27_spill] sm:$0xff] %v2935_v62 }
  0xb7   : > { %v2873_v3 = vpop.permute.xlu1 %635  ;;  %v2877_v12 = vpop.permute.xlu0 %641 }
  0xb8   : > { %4050 = vst [vmem:[#allocation15_spill] sm:$0xff] %v2873_v3  ;;  %4051 = vst [vmem:[#allocation16_spill] sm:$0xff] %v2877_v12  ;;  %v307_v12 = vld [vmem:[#allocation2 + $0xb0] sm:$0xff] }
  0xb9   : > { %879 = vrot.lane.b32.xlu1 %v2875_v10, %s2496_s21  ;;  %885 = vrot.lane.b32.xlu0 %v2881_v13, %s2496_s21 }
  0xbb   : > { %v2885_v14 = vpop.permute.xlu1 %639  ;;  %v2889_v16 = vpop.permute.xlu0 %645 }
  0xbc   : > { %4052 = vst [vmem:[#allocation17_spill] sm:$0xff] %v2885_v14 }
  0xbd   : > { %883 = vrot.lane.b32.xlu1 %v2887_v15, %s2496_s21  ;;  %889 = vrot.lane.b32.xlu0 %v304_v17, %s2496_s21  ;;  %v2908_v17 = vld [vmem:[#allocation2 + $0xc0] sm:$0xff] }
  0xbf   : > { %v2894_v19 = vpop.permute.xlu1 %643  ;;  %v2898_v35 = vpop.permute.xlu0 %649 }
  0xc0   : > { %4053 = vst [vmem:[#allocation18_spill] sm:$0xff] %v2894_v19  ;;  %4054 = vst [vmem:[#allocation19_spill] sm:$0xff] %v2898_v35 }
  0xc1   : > { %887 = vrot.lane.b32.xlu1 %v2896_v29, %s2496_s21  ;;  %893 = vrot.lane.b32.xlu0 %v306_v37, %s2496_s21  ;;  %v2917_v37 = vld [vmem:[#allocation2 + $0xd8] sm:$0xff] }
  0xc2   : > { %4058 = vst [vmem:[#allocation23_spill] sm:$0xff] %v2917_v37 }
  0xc3   : > { %v2903_v40 = vpop.permute.xlu1 %647  ;;  %v2905_v46 = vpop.permute.xlu0 %653 }
  0xc4   : > { %4055 = vst [vmem:[#allocation20_spill] sm:$0xff] %v2905_v46  ;;  %v2971_v46 = vld [vmem:[#allocation2 + $0x128] sm:$0xff] }
  0xc5   : > { %891 = vrot.lane.b32.xlu1 %v305_v42, %s2496_s21  ;;  %897 = vrot.lane.b32.xlu0 %v2908_v17, %s2496_s21  ;;  %v2923_v42 = vld [vmem:[#allocation2 + $0xc8] sm:$0xff] }
  0xc7   : > { %v2912_v19 = vpop.permute.xlu1 %651  ;;  %v2914_v14 = vpop.permute.xlu0 %657 }
  0xc8   : > { %4056 = vst [vmem:[#allocation21_spill] sm:$0xff] %v2912_v19  ;;  %4057 = vst [vmem:[#allocation22_spill] sm:$0xff] %v2914_v14  ;;  %v2947_v14 = vld [vmem:[#allocation2 + $0xf8] sm:$0xff] }
  0xc9   : > { %895 = vrot.lane.b32.xlu1 %v307_v12, %s2496_s21  ;;  %901 = vrot.lane.b32.xlu0 %v2917_v37, %s2496_s21  ;;  %v2992_v19 = vld [vmem:[#allocation2 + $0x158] sm:$0xff]  ;;  %v418_v37 = vld [vmem:[#allocation2 + $0x180] sm:$0xff] }
  0xcb   : > { %v2921_v0 = vpop.permute.xlu1 %655  ;;  %v2925_v3 = vpop.permute.xlu0 %661 }
  0xcc   : > { %4059 = vst [vmem:[#allocation24_spill] sm:$0xff] %v2921_v0  ;;  %4060 = vst [vmem:[#allocation25_spill] sm:$0xff] %v2925_v3  ;;  %v2959_v0 = vld [vmem:[#allocation2 + $0x110] sm:$0xff] }
  0xcd   : > { %899 = vrot.lane.b32.xlu1 %v2923_v42, %s2496_s21  ;;  %905 = vrot.lane.b32.xlu0 %v2929_v60, %s2496_s21 }
  0xcf   : > { %v2933_v12 = vpop.permute.xlu1 %659  ;;  %v2937_v49 = vpop.permute.xlu0 %665 }
  0xd0   : > { %4061 = vst [vmem:[#allocation26_spill] sm:$0xff] %v2933_v12  ;;  %4063 = vst [vmem:[#allocation28_spill] sm:$0xff] %v2937_v49  ;;  %v2953_v12 = vld [vmem:[#allocation2 + $0x120] sm:$0xff] }
  0xd1   : > { %903 = vrot.lane.b32.xlu1 %v2935_v62, %s2496_s21  ;;  %909 = vrot.lane.b32.xlu0 %v2941_v58, %s2496_s21 }
  0xd3   : > { %v2945_v3 = vpop.permute.xlu1 %663  ;;  %v2949_v44 = vpop.permute.xlu0 %669 }
  0xd4   : > { %4065 = vst [vmem:[#allocation30_spill] sm:$0xff] %v2945_v3  ;;  %4066 = vst [vmem:[#allocation31_spill] sm:$0xff] %v2949_v44  ;;  %v2965_v3 = vld [vmem:[#allocation2 + $0x138] sm:$0xff] }
  0xd5   : > { %907 = vrot.lane.b32.xlu1 %v2947_v14, %s2496_s21  ;;  %913 = vrot.lane.b32.xlu0 %v2953_v12, %s2496_s21 }
  0xd7   : > { %v2957_v49 = vpop.permute.xlu1 %667  ;;  %v2961_v47 = vpop.permute.xlu0 %673 }
  0xd8   : > { %4067 = vst [vmem:[#allocation32_spill] sm:$0xff] %v2957_v49  ;;  %4068 = vst [vmem:[#allocation33_spill] sm:$0xff] %v2961_v47  ;;  %v2977_v49 = vld [vmem:[#allocation2 + $0x150] sm:$0xff] }
  0xd9   : > { %911 = vrot.lane.b32.xlu1 %v2959_v0, %s2496_s21  ;;  %917 = vrot.lane.b32.xlu0 %v2965_v3, %s2496_s21 }
  0xdb   : > { %v2969_v44 = vpop.permute.xlu1 %671  ;;  %v2973_v41 = vpop.permute.xlu0 %741 }
  0xdc   : > { %4069 = vst [vmem:[#allocation34_spill] sm:$0xff] %v2969_v44  ;;  %v322_v44 = vld [vmem:[#allocation2 + $0x168] sm:$0xff] }
  0xdd   : > { %915 = vrot.lane.b32.xlu1 %v2971_v46, %s2496_s21  ;;  %921 = vrot.lane.b32.xlu0 %v2977_v49, %s2496_s21 }
  0xdf   : > { %v2981_v47 = vpop.permute.xlu1 %675  ;;  %v2985_v43 = vpop.permute.xlu0 %745 }
  0xe0   : > { %4070 = vst [vmem:[#allocation35_spill] sm:$0xff] %v2981_v47  ;;  %4071 = vst [vmem:[#allocation36_spill] sm:$0xff] %v2985_v43  ;;  %v323_v43 = vld [vmem:[#allocation2 + $0x170] sm:$0xff] }
  0xe1   : > { %919 = vrot.lane.b32.xlu1 %v2983_v59, %s2496_s21  ;;  %925 = vrot.lane.b32.xlu0 %v322_v44, %s2496_s21  ;;  %v419_v44 = vld [vmem:[#allocation2 + $0x188] sm:$0xff] }
  0xe3   : > { %v2990_v62 = vpop.permute.xlu1 %743  ;;  %v2994_v35 = vpop.permute.xlu0 %749 }
  0xe4   : > { %4072 = vst [vmem:[#allocation37_spill] sm:$0xff] %v2994_v35 }
  0xe5   : > { %923 = vrot.lane.b32.xlu1 %v2992_v19, %s2496_s21  ;;  %929 = vrot.lane.b32.xlu0 %v418_v37, %s2496_s21 }
  0xe7   : > { %v2999_v47 = vpop.permute.xlu1 %747  ;;  %v3001_v45 = vpop.permute.xlu0 %753 }
  0xe8   : > { %4073 = vst [vmem:[#allocation38_spill] sm:$0xff] %v2999_v47 }
  0xe9   : > { %927 = vrot.lane.b32.xlu1 %v323_v43, %s2496_s21  ;;  %997 = vrot.lane.b32.xlu0 %v2647_v25, %s2497_s22 }
  0xeb   : > { %v3006_v39 = vpop.permute.xlu1 %751  ;;  %v3008_v35 = vpop.permute.xlu0 %757 }
  0xec   : > { %4074 = vst [vmem:[#allocation39_spill] sm:$0xff] %v3008_v35 }
  0xed   : > { %931 = vrot.lane.b32.xlu1 %v419_v44, %s2496_s21  ;;  %1001 = vrot.lane.b32.xlu0 %v2649_v26, %s2497_s22 }
  0xef   : > { %v3013_v37 = vpop.permute.xlu1 %755  ;;  %v3015_v47 = vpop.permute.xlu0 %761 }
  0xf0   : > { %4075 = vst [vmem:[#allocation40_spill] sm:$0xff] %v3013_v37  ;;  %4076 = vst [vmem:[#allocation41_spill] sm:$0xff] %v3015_v47 }
  0xf1   : > { %999 = vrot.lane.b32.xlu1 %v2656_v27, %s2497_s22  ;;  %1005 = vrot.lane.b32.xlu0 %v2664_v30, %s2497_s22 }
  0xf3   : > { %v3021_v25 = vpop.permute.xlu1 %759  ;;  %v3023_v43 = vpop.permute.xlu0 %765 }
  0xf4   : > { %4077 = vst [vmem:[#allocation42_spill] sm:$0xff] %v3021_v25  ;;  %4078 = vst [vmem:[#allocation43_spill] sm:$0xff] %v3023_v43  ;;  %v1871_v25 = vld [vmem:[%s4029_s1 + $0x18] sm:$0xff] }
  0xf5   : > { %1003 = vrot.lane.b32.xlu1 %v2668_v31, %s2497_s22  ;;  %1009 = vrot.lane.b32.xlu0 %v2672_v32, %s2497_s22 }
  0xf7   : > { %v3029_v44 = vpop.permute.xlu1 %763  ;;  %v3031_v35 = vpop.permute.xlu0 %769 }
  0xf8   : > { %4079 = vst [vmem:[#allocation44_spill] sm:$0xff] %v3029_v44  ;;  %4080 = vst [vmem:[#allocation45_spill] sm:$0xff] %v3031_v35  ;;  %v1870_v44 = vld [vmem:[%s4029_s1 + $0x10] sm:$0xff] }
  0xf9   : > { %1007 = vrot.lane.b32.xlu1 %v2684_v38, %s2497_s22  ;;  %1031 = vrot.lane.b32.xlu0 %v2709_v51, %s2497_s22 }
  0xfb   : > { %v3037_v27 = vpop.permute.xlu1 %767  ;;  %v3039_v47 = vpop.permute.xlu0 %773 }
  0xfc   : > { %4081 = vst [vmem:[#allocation46_spill] sm:$0xff] %v3037_v27 }
  0xfd   : > { %1029 = vrot.lane.b32.xlu1 %v2701_v48, %s2497_s22  ;;  %1157 = vrot.lane.b32.xlu0 %v2785_v18, %s2498_s23 }
  0xff   : > { %v3045_v32 = vpop.permute.xlu1 %771  ;;  %v3047_v35 = vpop.permute.xlu0 %777 }
 0x100   : > { %4082 = vst [vmem:[#allocation47_spill] sm:$0xff] %v3045_v32 }
 0x101   : > { %1125 = vrot.lane.b32.xlu1 %v2745_v2, %s2498_s23  ;;  %1159 = vrot.lane.b32.xlu0 %v2793_v21, %s2498_s23  ;;  %v1868_v2 = vld [vmem:[%s4029_s1] sm:$0xff]  ;;  %v1869_v21 = vld [vmem:[%s4029_s1 + $0x8] sm:$0xff] }
 0x102   : > { %v2435_v32 = vpack.c.bf16 %v1869_v21, %v1868_v2  ;;  %v2439_v21 = vpack.c.bf16 %v1871_v25, %v1870_v44 }
 0x103   : > { %v3053_v51 = vpop.permute.xlu1 %775  ;;  %v3055_v27 = vpop.permute.xlu0 %781 }
 0x104   : > { %2443 = vmatprep.subr.bf16.mxu1 %v2435_v32  ;;  %2436 = vmatprep.subr.bf16.mxu0 %v2435_v32 }
 0x105   : > { %1127 = vrot.lane.b32.xlu1 %v2753_v5, %s2498_s23  ;;  %1285 = vrot.lane.b32.xlu0 %v2929_v60, %s2499_s24 }
 0x106   : > { %2446 = vmatpush3.bf16.msra.mxu1 %v2435_v32  ;;  %2438 = vmatpush3.bf16.msra.mxu0 %v2435_v32 }
 0x107   : > { %v3061_v48 = vpop.permute.xlu1 %779  ;;  %v3063_v18 = vpop.permute.xlu0 %785  ;;  %2444 = vmatprep.subr.bf16.mxu1 %v2439_v21  ;;  %2440 = vmatprep.subr.bf16.mxu0 %v2439_v21 }
 0x108   : > { %4083 = vst [vmem:[#allocation48_spill] sm:$0xff] %v3063_v18 }
 0x109   : > { %1253 = vrot.lane.b32.xlu1 %v2845_v56, %s2499_s24  ;;  %1287 = vrot.lane.b32.xlu0 %v2947_v14, %s2499_s24 }
 0x10a   : > { %2447 = vmatpush3.bf16.msra.mxu1 %v2439_v21  ;;  %2442 = vmatpush3.bf16.msra.mxu0 %v2439_v21 }
 0x10b   : > { %v3075_v5 = vpop.permute.xlu1 %783  ;;  %v3077_v43 = vpop.permute.xlu0 %789 }
 0x10c   : > { %4084 = vst [vmem:[#allocation49_spill] sm:$0xff] %v3077_v43 }
 0x10d   : > { %1255 = vrot.lane.b32.xlu1 %v2863_v63, %s2499_s24  ;;  %1413 = vrot.lane.b32.xlu0 %v2706_v50, %s2500_s6 }
 0x10f   : > { %v3089_v2 = vpop.permute.xlu1 %787  ;;  %v3091_v43 = vpop.permute.xlu0 %793 }
 0x110   : > { %4085 = vst [vmem:[#allocation50_spill] sm:$0xff] %v3089_v2  ;;  %4086 = vst [vmem:[#allocation51_spill] sm:$0xff] %v3091_v43  ;;  %v1872_v2 = vld [vmem:[%s4029_s1 + $0x20] sm:$0xf] }
 0x111   : > { %1381 = vrot.lane.b32.xlu1 %v2649_v26, %s2500_s6  ;;  %1383 = vrot.lane.b32.xlu0 %v2668_v31, %s2500_s6 }
 0x112   : > { %2445 = vmatprep.subr.msk.mxu1 %vm1977_vm2, %v1872_v2  ;;  %2385 = vmatprep.subr.msk.mxu0 %vm1977_vm2, %v1872_v2 }
 0x113   : > { %v3097_v37 = vpop.permute.xlu1 %791  ;;  %v3102_v25 = vpop.permute.xlu0 %797  ;;  %2448 = vmatpush3.msk.msra.mxu1 %vm1977_vm2, %v1872_v2  ;;  %2386 = vmatpush3.msk.msra.mxu0 %vm1977_vm2, %v1872_v2 }
 0x114   : > { %4087 = vst [vmem:[#allocation52_spill] sm:$0xff] %v3097_v37  ;;  %4088 = vst [vmem:[#allocation53_spill] sm:$0xff] %v3102_v25 }
 0x115   : > { %1033 = vrot.lane.b32.xlu1 %v2706_v50, %s2497_s22  ;;  %1509 = vrot.lane.b32.xlu0 %v2750_v4, %s2501_s9 }
 0x117   : > { %v3108_v26 = vpop.permute.xlu1 %795  ;;  %v3110_v31 = vpop.permute.xlu0 %801 }
 0x118   : > { %4089 = vst [vmem:[#allocation54_spill] sm:$0xff] %v3108_v26  ;;  %4090 = vst [vmem:[#allocation55_spill] sm:$0xff] %v3110_v31 }
 0x119   : > { %1415 = vrot.lane.b32.xlu1 %v2717_v53, %s2500_s6  ;;  %1035 = vrot.lane.b32.xlu0 %v2717_v53, %s2497_s22 }
 0x11b   : > { %v3116_v44 = vpop.permute.xlu1 %799  ;;  %v3118_v50 = vpop.permute.xlu0 %869 }
 0x11c   : > { %4091 = vst [vmem:[#allocation56_spill] sm:$0xff] %v3116_v44 }
 0x11d   : > { %1541 = vrot.lane.b32.xlu1 %v2790_v20, %s2501_s9  ;;  %1161 = vrot.lane.b32.xlu0 %v2790_v20, %s2498_s23 }
 0x11f   : > { %v3124_v32 = vpop.permute.xlu1 %803  ;;  %v3126_v2 = vpop.permute.xlu0 %873 }
 0x120   : > { %4092 = vst [vmem:[#allocation57_spill] sm:$0xff] %v3124_v32 }
 0x121   : > { %1129 = vrot.lane.b32.xlu1 %v2750_v4, %s2498_s23  ;;  %1543 = vrot.lane.b32.xlu0 %v2801_v23, %s2501_s9 }
 0x123   : > { %v3132_v53 = vpop.permute.xlu1 %871  ;;  %v3134_v21 = vpop.permute.xlu0 %877 }
 0x125   : > { %1511 = vrot.lane.b32.xlu1 %v2761_v7, %s2501_s9  ;;  %1163 = vrot.lane.b32.xlu0 %v2801_v23, %s2498_s23 }
 0x127   : > { %v3140_v20 = vpop.permute.xlu1 %875  ;;  %v3142_v32 = vpop.permute.xlu0 %881 }
 0x129   : > { %1131 = vrot.lane.b32.xlu1 %v2761_v7, %s2498_s23  ;;  %1289 = vrot.lane.b32.xlu0 %v2941_v58, %s2499_s24  ;;  %v540_v58 = vld [vmem:[#allocation2 + $0x141] sm:$0xff] }
 0x12b   : > { %v3148_v4 = vpop.permute.xlu1 %879  ;;  %v3150_v31 = vpop.permute.xlu0 %885 }
 0x12c   : > { %4093 = vst [vmem:[#allocation58_spill] sm:$0xff] %v3150_v31 }
 0x12d   : > { %1257 = vrot.lane.b32.xlu1 %v2857_v61, %s2499_s24  ;;  %1291 = vrot.lane.b32.xlu0 %v2959_v0, %s2499_s24 }
 0x12f   : > { %v3156_v23 = vpop.permute.xlu1 %883  ;;  %v3158_v44 = vpop.permute.xlu0 %889 }
 0x130   : > { %4094 = vst [vmem:[#allocation59_spill] sm:$0xff] %v3156_v23  ;;  %4095 = vst [vmem:[#allocation60_spill] sm:$0xff] %v3158_v44 }
 0x131   : > { %1259 = vrot.lane.b32.xlu1 %v2875_v10, %s2499_s24  ;;  %1417 = vrot.lane.b32.xlu0 %v2713_v52, %s2500_s6 }
 0x133   : > { %v3164_v7 = vpop.permute.xlu1 %887  ;;  %v3166_v25 = vpop.permute.xlu0 %893 }
 0x134   : > { %4096 = vst [vmem:[#allocation61_spill] sm:$0xff] %v3164_v7  ;;  %4097 = vst [vmem:[#allocation62_spill] sm:$0xff] %v3166_v25  ;;  %v539_v7 = vld [vmem:[#allocation2 + $0x139] sm:$0xff] }
 0x135   : > { %1385 = vrot.lane.b32.xlu1 %v2664_v30, %s2500_s6  ;;  %1387 = vrot.lane.b32.xlu0 %v2684_v38, %s2500_s6 }
 0x137   : > { %v3172_v61 = vpop.permute.xlu1 %891  ;;  %v3174_v0 = vpop.permute.xlu0 %897 }
 0x138   : > { %4098 = vst [vmem:[#allocation63_spill] sm:$0xff] %v3172_v61  ;;  %4099 = vst [vmem:[#allocation64_spill] sm:$0xff] %v3174_v0 }
 0x139   : > { %1037 = vrot.lane.b32.xlu1 %v2713_v52, %s2497_s22  ;;  %1513 = vrot.lane.b32.xlu0 %v2757_v6, %s2501_s9 }
 0x13b   : > { %v3180_v10 = vpop.permute.xlu1 %895  ;;  %v3182_v26 = vpop.permute.xlu0 %901 }
 0x13c   : > { %4100 = vst [vmem:[#allocation65_spill] sm:$0xff] %v3180_v10 }
 0x13d   : > { %1419 = vrot.lane.b32.xlu1 %v2725_v55, %s2500_s6  ;;  %1039 = vrot.lane.b32.xlu0 %v2725_v55, %s2497_s22 }
 0x13f   : > { %v3188_v30 = vpop.permute.xlu1 %899  ;;  %v3190_v38 = vpop.permute.xlu0 %905 }
 0x140   : > { %4101 = vst [vmem:[#allocation66_spill] sm:$0xff] %v3188_v30 }
 0x141   : > { %1545 = vrot.lane.b32.xlu1 %v2797_v22, %s2501_s9  ;;  %1165 = vrot.lane.b32.xlu0 %v2797_v22, %s2498_s23 }
 0x143   : > { %v3196_v52 = vpop.permute.xlu1 %903  ;;  %v3198_v0 = vpop.permute.xlu0 %909 }
 0x145   : > { %1133 = vrot.lane.b32.xlu1 %v2757_v6, %s2498_s23  ;;  %1547 = vrot.lane.b32.xlu0 %v2809_v28, %s2501_s9 }
 0x147   : > { %v3204_v55 = vpop.permute.xlu1 %907  ;;  %v3206_v30 = vpop.permute.xlu0 %913 }
 0x148   : > { %4102 = vst [vmem:[#allocation67_spill] sm:$0xff] %v3206_v30 }
 0x149   : > { %1515 = vrot.lane.b32.xlu1 %v2769_v9, %s2501_s9  ;;  %1167 = vrot.lane.b32.xlu0 %v2809_v28, %s2498_s23 }
 0x14b   : > { %v3212_v22 = vpop.permute.xlu1 %911  ;;  %v3214_v10 = vpop.permute.xlu0 %917 }
 0x14c   : > { %4103 = vst [vmem:[#allocation68_spill] sm:$0xff] %v3214_v10  ;;  %v524_v10 = vld [vmem:[#allocation2 + $0x81] sm:$0xff] }
 0x14d   : > { %1135 = vrot.lane.b32.xlu1 %v2769_v9, %s2498_s23  ;;  %1293 = vrot.lane.b32.xlu0 %v2953_v12, %s2499_s24  ;;  %v521_v9 = vld [vmem:[#allocation2 + $0x61] sm:$0xff] }
 0x14f   : > { %v3220_v6 = vpop.permute.xlu1 %915  ;;  %v3222_v25 = vpop.permute.xlu0 %921 }
 0x150   : > { %4104 = vst [vmem:[#allocation69_spill] sm:$0xff] %v3220_v6  ;;  %4105 = vst [vmem:[#allocation70_spill] sm:$0xff] %v3222_v25  ;;  %v522_v25 = vld [vmem:[#allocation2 + $0x69] sm:$0xff] }
 0x151   : > { %1261 = vrot.lane.b32.xlu1 %v2869_v1, %s2499_s24  ;;  %1295 = vrot.lane.b32.xlu0 %v2971_v46, %s2499_s24 }
 0x153   : > { %v3228_v28 = vpop.permute.xlu1 %919  ;;  %v3230_v61 = vpop.permute.xlu0 %925 }
 0x154   : > { %4106 = vst [vmem:[#allocation71_spill] sm:$0xff] %v3228_v28  ;;  %4107 = vst [vmem:[#allocation72_spill] sm:$0xff] %v3230_v61 }
 0x155   : > { %1263 = vrot.lane.b32.xlu1 %v2887_v15, %s2499_s24  ;;  %1421 = vrot.lane.b32.xlu0 %v2721_v54, %s2500_s6 }
 0x157   : > { %v3236_v12 = vpop.permute.xlu1 %923  ;;  %v3238_v43 = vpop.permute.xlu0 %929 }
 0x158   : > { %4108 = vst [vmem:[#allocation73_spill] sm:$0xff] %v3236_v12  ;;  %4109 = vst [vmem:[#allocation74_spill] sm:$0xff] %v3238_v43 }
 0x159   : > { %1389 = vrot.lane.b32.xlu1 %v521_v9, %s2500_s6  ;;  %1391 = vrot.lane.b32.xlu0 %v522_v25, %s2500_s6 }
 0x15b   : > { %v3242_v1 = vpop.permute.xlu1 %927  ;;  %v998_v46 = vpop.permute.xlu0 %997 }
 0x15c   : > { %4110 = vst [vmem:[#allocation75_spill] sm:$0xff] %v3242_v1 }
 0x15d   : > { %1041 = vrot.lane.b32.xlu1 %v2721_v54, %s2497_s22  ;;  %1517 = vrot.lane.b32.xlu0 %v2765_v8, %s2501_s9  ;;  %v443_v54 = vld [vmem:[#allocation2 + $0x129] sm:$0xff] }
 0x15f   : > { %v3248_v15 = vpop.permute.xlu1 %931  ;;  %v3250_v61 = vpop.permute.xlu0 %1001 }
 0x160   : > { %4111 = vst [vmem:[#allocation76_spill] sm:$0xff] %v3248_v15 }
 0x161   : > { %1423 = vrot.lane.b32.xlu1 %v2731_v57, %s2500_s6  ;;  %1011 = vrot.lane.b32.xlu0 %v522_v25, %s2497_s22 }
 0x163   : > { %v3255_v9 = vpop.permute.xlu1 %999  ;;  %v3257_v43 = vpop.permute.xlu0 %1005 }
 0x165   : > { %1549 = vrot.lane.b32.xlu1 %v2805_v24, %s2501_s9  ;;  %1137 = vrot.lane.b32.xlu0 %v2765_v8, %s2498_s23 }
 0x167   : > { %v3263_v1 = vpop.permute.xlu1 %1003  ;;  %v3265_v15 = vpop.permute.xlu0 %1009 }
 0x169   : > { %1043 = vrot.lane.b32.xlu1 %v443_v54, %s2497_s22  ;;  %1519 = vrot.lane.b32.xlu0 %v2775_v11, %s2501_s9 }
 0x16b   : > { %v3270_v57 = vpop.permute.xlu1 %1007  ;;  %v3272_v25 = vpop.permute.xlu0 %1031 }
 0x16d   : > { %1169 = vrot.lane.b32.xlu1 %v2805_v24, %s2498_s23  ;;  %1139 = vrot.lane.b32.xlu0 %v2775_v11, %s2498_s23  ;;  %v523_v11 = vld [vmem:[#allocation2 + $0x79] sm:$0xff] }
 0x16f   : > { %v1030_v8 = vpop.permute.xlu1 %1029  ;;  %v1158_v12 = vpop.permute.xlu0 %1157 }
 0x171   : > { %1551 = vrot.lane.b32.xlu1 %v2817_v34, %s2501_s9  ;;  %1265 = vrot.lane.b32.xlu0 %v2881_v13, %s2499_s24 }
 0x173   : > { %v1126_v54 = vpop.permute.xlu1 %1125  ;;  %v3282_v44 = vpop.permute.xlu0 %1159 }
 0x175   : > { %1171 = vrot.lane.b32.xlu1 %v2817_v34, %s2498_s23  ;;  %1267 = vrot.lane.b32.xlu0 %v2896_v29, %s2499_s24  ;;  %v292_v29 = vld [vmem:[#allocation2] sm:$0xff] }
 0x177   : > { %v3288_v24 = vpop.permute.xlu1 %1127  ;;  %v1286_v28 = vpop.permute.xlu0 %1285 }
 0x179   : > { %1297 = vrot.lane.b32.xlu1 %v2965_v3, %s2499_s24  ;;  %1393 = vrot.lane.b32.xlu0 %v523_v11, %s2500_s6  ;;  %v1605_v3 = vsel %vm171_vm0, %v292_v29, %v2813_v33  ;;  %v1621_v33 = vsel %vm171_vm0, %v2908_v17, %v2889_v16 }
 0x17b   : > { %v1254_v37 = vpop.permute.xlu1 %1253  ;;  %v3293_v13 = vpop.permute.xlu0 %1287 }
 0x17d   : > { %1299 = vrot.lane.b32.xlu1 %v2983_v59, %s2499_s24  ;;  %1013 = vrot.lane.b32.xlu0 %v523_v11, %s2497_s22  ;;  %v1638_v59 = vsel %vm1637_vm3, %v1605_v3, %v2973_v41  ;;  %v555_v11 = vld [vmem:[#allocation2 + $0x7a] sm:$0xff] }
 0x17e   : > { %v1671_v23 = vsel %vm1670_vm4, %v1638_v59, %v3118_v50  ;;  %v1654_v50 = vsel %vm1637_vm3, %v1621_v33, %v3039_v47 }
 0x17f   : > { %v3298_v34 = vpop.permute.xlu1 %1255  ;;  %v1414_v31 = vpop.permute.xlu0 %1413  ;;  %v1704_v18 = vsel %vm1703_vm5, %v1671_v23, %v998_v46  ;;  %v1687_v23 = vsel %vm1670_vm4, %v1654_v50, %v3182_v26  ;;  %v293_v26 = vld [vmem:[#allocation2 + $0x8] sm:$0xff] }
 0x180   : > { %v1737_v29 = vsel %vm1736_vm6, %v1704_v18, %v1126_v54  ;;  %v1720_v18 = vsel %vm1703_vm5, %v1687_v23, %v1030_v8  ;;  %v571_v54 = vld [vmem:[#allocation2 + $0x13a] sm:$0xff]  ;;  %v1622_v8 = vsel %vm171_vm0, %v2923_v42, %v2903_v40  ;;  %v1606_v50 = vsel %vm171_vm0, %v293_v26, %v2820_v36  ;;  %v572_v23 = vld [vmem:[#allocation2 + $0x142] sm:$0xff] }
 0x181   : > { %1425 = vrot.lane.b32.xlu1 %v539_v7, %s2500_s6  ;;  %1395 = vrot.lane.b32.xlu0 %v524_v10, %s2500_s6  ;;  %v1655_v33 = vsel %vm1637_vm3, %v1622_v8, %v3053_v51  ;;  %v1639_v40 = vsel %vm1637_vm3, %v1606_v50, %v2990_v62  ;;  %v4112_v8 = vld [vmem:[#allocation3_spill] sm:$0xff]  ;;  %v526_v50 = vld [vmem:[#allocation2 + $0x99] sm:$0xff] }
 0x182   : > { %v1672_v51 = vsel %vm1670_vm4, %v1639_v40, %v3132_v53 }
 0x183   : > { %v1382_v6 = vpop.permute.xlu1 %1381  ;;  %v1384_v30 = vpop.permute.xlu0 %1383 }
 0x185   : > { %1045 = vrot.lane.b32.xlu1 %v539_v7, %s2497_s22  ;;  %1521 = vrot.lane.b32.xlu0 %v555_v11, %s2501_s9  ;;  %v1770_v7 = vsel %vm1769_vm7, %v1737_v29, %v1254_v37  ;;  %v1753_v37 = vsel %vm1736_vm6, %v1720_v18, %v1158_v12  ;;  %v556_v29 = vld [vmem:[#allocation2 + $0x82] sm:$0xff]  ;;  %v494_v18 = vld [vmem:[#allocation2 + $0x98] sm:$0xff] }
 0x186   : > { %v1803_v16 = vsel %vm1802_vm9, %v1770_v7, %v1382_v6  ;;  %v1786_v6 = vsel %vm1769_vm7, %v1753_v37, %v1286_v28  ;;  %v1688_v28 = vsel %vm1670_vm4, %v1655_v33, %v3196_v52 }
 0x187   : > { %v3315_v41 = vpop.permute.xlu1 %1033  ;;  %v1510_v17 = vpop.permute.xlu0 %1509  ;;  %v1819_v59 = vsel %vm1802_vm9, %v1786_v6, %v1414_v31  ;;  %v1721_v42 = vsel %vm1703_vm5, %v1688_v28, %v3272_v25  ;;  %v541_v6 = vld [vmem:[#allocation2 + $0x151] sm:$0xff] }
 0x188   : > { %v1836_v46 = vsel %vm1835_vm8, %v1803_v16, %v1510_v17  ;;  %v1754_v36 = vsel %vm1736_vm6, %v1721_v42, %v3282_v44 }
 0x189   : > { %1427 = vrot.lane.b32.xlu1 %v540_v58, %s2500_s6  ;;  %1015 = vrot.lane.b32.xlu0 %v524_v10, %s2497_s22  ;;  %v1787_v52 = vsel %vm1769_vm7, %v1754_v36, %v3293_v13  ;;  %v493_v13 = vld [vmem:[#allocation2 + $0x90] sm:$0xff] }
 0x18a   : > { %2387 = vmatprep.mubr.msk.f32.mxu0 %vm1880_vm10, %v1836_v46  ;;  %v557_v36 = vld [vmem:[#allocation2 + $0x92] sm:$0xff] }
 0x18b   : > { %v1416_v47 = vpop.permute.xlu1 %1415  ;;  %v3329_v3 = vpop.permute.xlu0 %1035 }
 0x18c   : > { %v1820_v25 = vsel %vm1802_vm9, %v1787_v52, %v1416_v47  ;;  %v4116_v52 = vld [vmem:[#allocation23_spill] sm:$0xff] }
 0x18d   : > { %1553 = vrot.lane.b32.xlu1 %v571_v54, %s2501_s9  ;;  %1141 = vrot.lane.b32.xlu0 %v555_v11, %s2498_s23 }
 0x18f   : > { %v1542_v10 = vpop.permute.xlu1 %1541  ;;  %v3345_v7 = vpop.permute.xlu0 %1161 }
 0x190   : > { %v1852_v12 = vsel %vm1835_vm8, %v1819_v59, %v1542_v10  ;;  %v4113_v59 = vld [vmem:[#allocation7_spill] sm:$0xff] }
 0x191   : > { %1047 = vrot.lane.b32.xlu1 %v540_v58, %s2497_s22  ;;  %2411 = vmatprep.mubr.msk.f32.mxu1 %vm1880_vm10, %v1852_v12  ;;  %v1705_v58 = vsel %vm1703_vm5, %v1672_v51, %v3255_v9  ;;  %v1607_v10 = vsel %vm171_vm0, %v4113_v59, %v4112_v8  ;;  %v4114_v12 = vld [vmem:[#allocation36_spill] sm:$0xff]  ;;  %v4120_v8 = vld [vmem:[#allocation11_spill] sm:$0xff] }
 0x192   : > { %1523 = vrot.lane.b32.xlu0 %v556_v29, %s2501_s9  ;;  %v1738_v62 = vsel %vm1736_vm6, %v1705_v58, %v3288_v24  ;;  %v4115_v58 = vld [vmem:[#allocation19_spill] sm:$0xff] }
 0x193   : > { %v1130_v31 = vpop.permute.xlu1 %1129  ;;  %v1544_v11 = vpop.permute.xlu0 %1543  ;;  %v1771_v44 = vsel %vm1769_vm7, %v1738_v62, %v3298_v34  ;;  %v1623_v62 = vsel %vm171_vm0, %v4116_v52, %v4115_v58  ;;  %v495_v52 = vld [vmem:[#allocation2 + $0xa8] sm:$0xff] }
 0x194   : > { %v1853_v53 = vsel %vm1835_vm8, %v1820_v25, %v1544_v11  ;;  %v1804_v16 = vsel %vm1802_vm9, %v1771_v44, %v1384_v30  ;;  %v542_v11 = vld [vmem:[#allocation2 + $0x159] sm:$0xff] }
 0x195   : > { %1173 = vrot.lane.b32.xlu1 %v571_v54, %s2498_s23  ;;  %2412 = vmatmul.mubr.msk.f32.vlgmr.msra.gmra.mrb[0].mxu1 %vm1880_vm10, %v1853_v53  ;;  %v525_v54 = vld [vmem:[#allocation2 + $0x91] sm:$0xff] }
 0x196   : > { %1143 = vrot.lane.b32.xlu0 %v556_v29, %s2498_s23  ;;  %v1640_v29 = vsel %vm1637_vm3, %v1607_v10, %v4114_v12 }
 0x197   : > { %v1512_v9 = vpop.permute.xlu1 %1511  ;;  %v3373_v17 = vpop.permute.xlu0 %1163 }
 0x198   : > { %v1837_v24 = vsel %vm1835_vm8, %v1804_v16, %v1512_v9 }
 0x199   : > { %1555 = vrot.lane.b32.xlu1 %v572_v23, %s2501_s9  ;;  %2388 = vmatmul.mubr.msk.f32.vlgmr.msra.gmra.mrb[0].mxu0 %vm1880_vm10, %v1837_v24  ;;  %v573_v24 = vld [vmem:[#allocation2 + $0x152] sm:$0xff] }
 0x19a   : > { %1269 = vrot.lane.b32.xlu0 %v493_v13, %s2499_s24  ;;  %v4117_v13 = vld [vmem:[#allocation21_spill] sm:$0xff] }
 0x19b   : > { %v3378_v34 = vpop.permute.xlu1 %1131  ;;  %v1290_v30 = vpop.permute.xlu0 %1289 }
 0x19d   : > { %1175 = vrot.lane.b32.xlu1 %v572_v23, %s2498_s23 }
 0x19e   : > { %1271 = vrot.lane.b32.xlu0 %v494_v18, %s2499_s24 }
 0x19f   : > { %v1258_v46 = vpop.permute.xlu1 %1257  ;;  %v1292_v47 = vpop.permute.xlu0 %1291 }
 0x1a1   : > { %1301 = vrot.lane.b32.xlu1 %v2977_v49, %s2499_s24  ;;  %v1673_v49 = vsel %vm1670_vm4, %v1640_v29, %v3126_v2 }
 0x1a2   : > { %1397 = vrot.lane.b32.xlu0 %v525_v54, %s2500_s6 }
 0x1a3   : > { %v1260_v37 = vpop.permute.xlu1 %1259  ;;  %v1418_v26 = vpop.permute.xlu0 %1417 }
 0x1a5   : > { %1303 = vrot.lane.b32.xlu1 %v2992_v19, %s2499_s24  ;;  %v1706_v19 = vsel %vm1703_vm5, %v1673_v49, %v3250_v61  ;;  %v1656_v61 = vsel %vm1637_vm3, %v1623_v62, %v3047_v35 }
 0x1a6   : > { %1017 = vrot.lane.b32.xlu0 %v525_v54, %s2497_s22  ;;  %v1739_v40 = vsel %vm1736_vm6, %v1706_v19, %v1130_v31  ;;  %v1689_v44 = vsel %vm1670_vm4, %v1656_v61, %v3190_v38  ;;  %v4118_v38 = vld [vmem:[#allocation27_spill] sm:$0xff]  ;;  %v558_v19 = vld [vmem:[#allocation2 + $0x9a] sm:$0xff]  ;;  %v511_v61 = vld [vmem:[#allocation2 + $0x168] sm:$0xff] }
 0x1a7   : > { %v1386_v33 = vpop.permute.xlu1 %1385  ;;  %v1388_v28 = vpop.permute.xlu0 %1387  ;;  %v1772_v51 = vsel %vm1769_vm7, %v1739_v40, %v1258_v46  ;;  %v1722_v23 = vsel %vm1703_vm5, %v1689_v44, %v3315_v41  ;;  %v1624_v18 = vsel %vm171_vm0, %v4118_v38, %v4117_v13 }
 0x1a8   : > { %v1805_v2 = vsel %vm1802_vm9, %v1772_v51, %v1386_v33  ;;  %v1755_v16 = vsel %vm1736_vm6, %v1722_v23, %v3345_v7  ;;  %v1657_v41 = vsel %vm1637_vm3, %v1624_v18, %v3061_v48  ;;  %v4122_v23 = vld [vmem:[#allocation4_spill] sm:$0xff] }
 0x1a9   : > { %1429 = vrot.lane.b32.xlu1 %v541_v6, %s2500_s6  ;;  %v1788_v35 = vsel %vm1769_vm7, %v1755_v16, %v1290_v30  ;;  %v1690_v30 = vsel %vm1670_vm4, %v1657_v41, %v3204_v55  ;;  %v1609_v16 = vsel %vm171_vm0, %v2845_v56, %v4122_v23 }
 0x1aa   : > { %1399 = vrot.lane.b32.xlu0 %v526_v50, %s2500_s6  ;;  %v1821_v46 = vsel %vm1802_vm9, %v1788_v35, %v1418_v26  ;;  %v4121_v26 = vld [vmem:[#allocation38_spill] sm:$0xff]  ;;  %v1723_v48 = vsel %vm1703_vm5, %v1690_v30, %v3329_v3 }
 0x1ab   : > { %v3400_v42 = vpop.permute.xlu1 %1037  ;;  %v1514_v25 = vpop.permute.xlu0 %1513  ;;  %v1756_v29 = vsel %vm1736_vm6, %v1723_v48, %v3373_v17 }
 0x1ac   : > { %v1838_v31 = vsel %vm1835_vm8, %v1805_v2, %v1514_v25  ;;  %v1789_v49 = vsel %vm1769_vm7, %v1756_v29, %v1292_v47  ;;  %v496_v2 = vld [vmem:[#allocation2 + $0xb0] sm:$0xff] }
 0x1ad   : > { %1049 = vrot.lane.b32.xlu1 %v541_v6, %s2497_s22  ;;  %2390 = vmatprep.mubr.msk.f32.mxu0 %vm1880_vm10, %v1838_v31  ;;  %v4119_v6 = vld [vmem:[#allocation5_spill] sm:$0xff] }
 0x1ae   : > { %1525 = vrot.lane.b32.xlu0 %v557_v36, %s2501_s9  ;;  %v1608_v59 = vsel %vm171_vm0, %v4120_v8, %v4119_v6  ;;  %v528_v6 = vld [vmem:[#allocation2 + $0xb1] sm:$0xff] }
 0x1af   : > { %v1420_v53 = vpop.permute.xlu1 %1419  ;;  %v3419_v9 = vpop.permute.xlu0 %1039  ;;  %v1641_v33 = vsel %vm1637_vm3, %v1608_v59, %v4121_v26  ;;  %v4124_v8 = vld [vmem:[#allocation20_spill] sm:$0xff] }
 0x1b0   : > { %v1674_v12 = vsel %vm1670_vm4, %v1641_v33, %v3140_v20  ;;  %v1822_v3 = vsel %vm1802_vm9, %v1789_v49, %v1420_v53  ;;  %v512_v53 = vld [vmem:[#allocation2 + $0x170] sm:$0xff] }
 0x1b1   : > { %1431 = vrot.lane.b32.xlu1 %v542_v11, %s2500_s6 }
 0x1b2   : > { %1019 = vrot.lane.b32.xlu0 %v526_v50, %s2497_s22  ;;  %v1707_v50 = vsel %vm1703_vm5, %v1674_v12, %v3263_v1  ;;  %v559_v12 = vld [vmem:[#allocation2 + $0xaa] sm:$0xff] }
 0x1b3   : > { %v1546_v54 = vpop.permute.xlu1 %1545  ;;  %v3436_v10 = vpop.permute.xlu0 %1165  ;;  %v1740_v40 = vsel %vm1736_vm6, %v1707_v50, %v3378_v34  ;;  %v574_v34 = vld [vmem:[#allocation2 + $0x15a] sm:$0xff]  ;;  %v544_v50 = vld [vmem:[#allocation2 + $0x171] sm:$0xff] }
 0x1b4   : > { %v1854_v7 = vsel %vm1835_vm8, %v1821_v46, %v1546_v54  ;;  %v1773_v20 = vsel %vm1769_vm7, %v1740_v40, %v1260_v37  ;;  %v543_v54 = vld [vmem:[#allocation2 + $0x169] sm:$0xff] }
 0x1b5   : > { %1557 = vrot.lane.b32.xlu1 %v573_v24, %s2501_s9  ;;  %2414 = vmatprep.mubr.msk.f32.mxu1 %vm1880_vm10, %v1854_v7 }
 0x1b6   : > { %1145 = vrot.lane.b32.xlu0 %v557_v36, %s2498_s23  ;;  %v1806_v36 = vsel %vm1802_vm9, %v1773_v20, %v1388_v28  ;;  %v575_v20 = vld [vmem:[#allocation2 + $0x16a] sm:$0xff] }
 0x1b7   : > { %v1134_v55 = vpop.permute.xlu1 %1133  ;;  %v1548_v51 = vpop.permute.xlu0 %1547 }
 0x1b8   : > { %v1855_v17 = vsel %vm1835_vm8, %v1822_v3, %v1548_v51 }
 0x1b9   : > { %1051 = vrot.lane.b32.xlu1 %v542_v11, %s2497_s22  ;;  %2415 = vmatmul.mubr.msk.f32.gmra.mrb[2].mxu1 %vm1880_vm10, %v1855_v17  ;;  %v527_v11 = vld [vmem:[#allocation2 + $0xa9] sm:$0xff] }
 0x1ba   : > { %1527 = vrot.lane.b32.xlu0 %v558_v19, %s2501_s9 }
 0x1bb   : > { %v1516_v1 = vpop.permute.xlu1 %1515  ;;  %v3462_v58 = vpop.permute.xlu0 %1167 }
 0x1bc   : > { %v1839_v47 = vsel %vm1835_vm8, %v1806_v36, %v1516_v1  ;;  %v4126_v1 = vld [vmem:[#allocation24_spill] sm:$0xff] }
 0x1bd   : > { %1177 = vrot.lane.b32.xlu1 %v573_v24, %s2498_s23  ;;  %2391 = vmatmul.mubr.msk.f32.gmra.mrb[2].mxu0 %vm1880_vm10, %v1839_v47  ;;  %v4123_v24 = vld [vmem:[#allocation37_spill] sm:$0xff] }
 0x1be   : > { %1147 = vrot.lane.b32.xlu0 %v558_v19, %s2498_s23  ;;  %v1642_v13 = vsel %vm1637_vm3, %v1609_v16, %v4123_v24  ;;  %v498_v16 = vld [vmem:[#allocation2 + $0xc8] sm:$0xff]  ;;  %v513_v24 = vld [vmem:[#allocation2 + $0x180] sm:$0xff] }
 0x1bf   : > { %v1136_v37 = vpop.permute.xlu1 %1135  ;;  %v1294_v62 = vpop.permute.xlu0 %1293  ;;  %v1675_v38 = vsel %vm1670_vm4, %v1642_v13, %v3134_v21  ;;  %v1625_v21 = vsel %vm171_vm0, %v2929_v60, %v4124_v8 }
 0x1c0   : > { %v1708_v46 = vsel %vm1703_vm5, %v1675_v38, %v3257_v43  ;;  %v1658_v43 = vsel %vm1637_vm3, %v1625_v21, %v3055_v27  ;;  %v529_v38 = vld [vmem:[#allocation2 + $0xc1] sm:$0xff] }
 0x1c1   : > { %1559 = vrot.lane.b32.xlu1 %v574_v34, %s2501_s9  ;;  %v1741_v41 = vsel %vm1736_vm6, %v1708_v46, %v1134_v55  ;;  %v1691_v33 = vsel %vm1670_vm4, %v1658_v43, %v3198_v0  ;;  %v4125_v0 = vld [vmem:[#allocation8_spill] sm:$0xff]  ;;  %v514_v46 = vld [vmem:[#allocation2 + $0x188] sm:$0xff] }
 0x1c2   : > { %1273 = vrot.lane.b32.xlu0 %v495_v52, %s2499_s24  ;;  %v1724_v60 = vsel %vm1703_vm5, %v1691_v33, %v3400_v42  ;;  %v1610_v49 = vsel %vm171_vm0, %v2863_v63, %v4125_v0  ;;  %v545_v43 = vld [vmem:[#allocation2 + $0x181] sm:$0xff] }
 0x1c3   : > { %v1262_v28 = vpop.permute.xlu1 %1261  ;;  %v3469_v25 = vpop.permute.xlu0 %1295  ;;  %v1757_v29 = vsel %vm1736_vm6, %v1724_v60, %v3436_v10  ;;  %v1643_v40 = vsel %vm1637_vm3, %v1610_v49, %v3006_v39  ;;  %v530_v60 = vld [vmem:[#allocation2 + $0xc9] sm:$0xff] }
 0x1c4   : > { %v1774_v7 = vsel %vm1769_vm7, %v1741_v41, %v1262_v28  ;;  %v1790_v27 = vsel %vm1769_vm7, %v1757_v29, %v1294_v62  ;;  %v1676_v3 = vsel %vm1670_vm4, %v1643_v40, %v3148_v4  ;;  %v1626_v4 = vsel %vm171_vm0, %v2947_v14, %v4126_v1  ;;  %v560_v28 = vld [vmem:[#allocation2 + $0xb2] sm:$0xff]  ;;  %v4127_v41 = vld [vmem:[#allocation6_spill] sm:$0xff] }
 0x1c5   : > { %1179 = vrot.lane.b32.xlu1 %v574_v34, %s2498_s23  ;;  %v1709_v63 = vsel %vm1703_vm5, %v1676_v3, %v3270_v57  ;;  %v1659_v57 = vsel %vm1637_vm3, %v1626_v4, %v3075_v5  ;;  %v4131_v49 = vld [vmem:[#allocation67_spill] sm:$0xff] }
 0x1c6   : > { %1275 = vrot.lane.b32.xlu0 %v496_v2, %s2499_s24  ;;  %v1742_v17 = vsel %vm1736_vm6, %v1709_v63, %v1136_v37  ;;  %v1692_v52 = vsel %vm1670_vm4, %v1659_v57, %v3212_v22 }
 0x1c7   : > { %v1264_v31 = vpop.permute.xlu1 %1263  ;;  %v1422_v44 = vpop.permute.xlu0 %1421  ;;  %v1725_v14 = vsel %vm1703_vm5, %v1692_v52, %v3419_v9  ;;  %v576_v9 = vld [vmem:[#allocation2 + $0x172] sm:$0xff] }
 0x1c8   : > { %v1823_v19 = vsel %vm1802_vm9, %v1790_v27, %v1422_v44  ;;  %v1775_v39 = vsel %vm1769_vm7, %v1742_v17, %v1264_v31  ;;  %v1758_v2 = vsel %vm1736_vm6, %v1725_v14, %v3462_v58  ;;  %v2467_v17 = vld [vmem:[#allocation2 + $0x50] sm:$0xff] }
 0x1c9   : > { %1305 = vrot.lane.b32.xlu1 %v511_v61, %s2499_s24  ;;  %v1791_v5 = vsel %vm1769_vm7, %v1758_v2, %v3469_v25 }
 0x1ca   : > { %1401 = vrot.lane.b32.xlu0 %v527_v11, %s2500_s6 }
 0x1cb   : > { %v1390_v35 = vpop.permute.xlu1 %1389  ;;  %v1392_v18 = vpop.permute.xlu0 %1391 }
 0x1cc   : > { %v1807_v59 = vsel %vm1802_vm9, %v1774_v7, %v1390_v35  ;;  %v1808_v47 = vsel %vm1802_vm9, %v1775_v39, %v1392_v18  ;;  %v4132_v39 = vld [vmem:[#allocation10_spill] sm:$0xff] }
 0x1cd   : > { %1307 = vrot.lane.b32.xlu1 %v512_v53, %s2499_s24  ;;  %v497_v53 = vld [vmem:[#allocation2 + $0xc0] sm:$0xff]  ;;  %v1612_v1 = vsel %vm171_vm0, %v2467_v17, %v4132_v39 }
 0x1ce   : > { %1021 = vrot.lane.b32.xlu0 %v527_v11, %s2497_s22 }
 0x1cf   : > { %v3487_v56 = vpop.permute.xlu1 %1041  ;;  %v1518_v30 = vpop.permute.xlu0 %1517 }
 0x1d0   : > { %v1840_v26 = vsel %vm1835_vm8, %v1807_v59, %v1518_v30 }
 0x1d1   : > { %1433 = vrot.lane.b32.xlu1 %v543_v54, %s2500_s6  ;;  %2393 = vmatprep.mubr.msk.f32.mxu0 %vm1880_vm10, %v1840_v26 }
 0x1d2   : > { %1403 = vrot.lane.b32.xlu0 %v528_v6, %s2500_s6 }
 0x1d3   : > { %v1424_v48 = vpop.permute.xlu1 %1423  ;;  %v3506_v55 = vpop.permute.xlu0 %1011 }
 0x1d4   : > { %v1824_v22 = vsel %vm1802_vm9, %v1791_v5, %v1424_v48 }
 0x1d5   : > { %1053 = vrot.lane.b32.xlu1 %v543_v54, %s2497_s22  ;;  %v2466_v54 = vld [vmem:[#allocation2 + $0x48] sm:$0xff] }
 0x1d6   : > { %1529 = vrot.lane.b32.xlu0 %v559_v12, %s2501_s9  ;;  %v1611_v7 = vsel %vm171_vm0, %v2466_v54, %v4127_v41 }
 0x1d7   : > { %v1550_v42 = vpop.permute.xlu1 %1549  ;;  %v1138_v51 = vpop.permute.xlu0 %1137  ;;  %v1644_v8 = vsel %vm1637_vm3, %v1611_v7, %v3001_v45  ;;  %v4128_v45 = vld [vmem:[#allocation22_spill] sm:$0xff] }
 0x1d8   : > { %v1856_v10 = vsel %vm1835_vm8, %v1823_v19, %v1550_v42  ;;  %v1677_v21 = vsel %vm1670_vm4, %v1644_v8, %v3142_v32 }
 0x1d9   : > { %1435 = vrot.lane.b32.xlu1 %v544_v50, %s2500_s6  ;;  %2417 = vmatprep.mubr.msk.f32.mxu1 %vm1880_vm10, %v1856_v10  ;;  %v1710_v30 = vsel %vm1703_vm5, %v1677_v21, %v3265_v15  ;;  %v4130_v15 = vld [vmem:[#allocation48_spill] sm:$0xff]  ;;  %v561_v10 = vld [vmem:[#allocation2 + $0xc2] sm:$0xff] }
 0x1da   : > { %1023 = vrot.lane.b32.xlu0 %v528_v6, %s2497_s22  ;;  %v1743_v26 = vsel %vm1736_vm6, %v1710_v30, %v1138_v51 }
 0x1db   : > { %v3526_v36 = vpop.permute.xlu1 %1043  ;;  %v1520_v34 = vpop.permute.xlu0 %1519 }
 0x1dc   : > { %v1841_v37 = vsel %vm1835_vm8, %v1808_v47, %v1520_v34 }
 0x1dd   : > { %1561 = vrot.lane.b32.xlu1 %v575_v20, %s2501_s9  ;;  %2394 = vmatmul.mubr.msk.f32.gmra.mrb[4].mxu0 %vm1880_vm10, %v1841_v37  ;;  %v4134_v37 = vld [vmem:[#allocation59_spill] sm:$0xff] }
 0x1de   : > { %1149 = vrot.lane.b32.xlu0 %v559_v12, %s2498_s23  ;;  %v4129_v12 = vld [vmem:[#allocation29_spill] sm:$0xff] }
 0x1df   : > { %v1170_v62 = vpop.permute.xlu1 %1169  ;;  %v3545_v61 = vpop.permute.xlu0 %1139  ;;  %v1627_v32 = vsel %vm171_vm0, %v4129_v12, %v4128_v45  ;;  %v531_v45 = vld [vmem:[#allocation2 + $0xd9] sm:$0xff] }
 0x1e1   : > { %1055 = vrot.lane.b32.xlu1 %v544_v50, %s2497_s22  ;;  %v1660_v50 = vsel %vm1637_vm3, %v1627_v32, %v4130_v15  ;;  %v516_v32 = vld [vmem:[#allocation2 + $0x1a0] sm:$0xff] }
 0x1e2   : > { %1531 = vrot.lane.b32.xlu0 %v560_v28, %s2501_s9  ;;  %v1693_v19 = vsel %vm1670_vm4, %v1660_v50, %v4131_v49 }
 0x1e3   : > { %v1552_v31 = vpop.permute.xlu1 %1551  ;;  %v1266_v44 = vpop.permute.xlu0 %1265  ;;  %v1726_v40 = vsel %vm1703_vm5, %v1693_v19, %v3487_v56  ;;  %v4133_v56 = vld [vmem:[#allocation40_spill] sm:$0xff]  ;;  %v532_v19 = vld [vmem:[#allocation2 + $0xe1] sm:$0xff] }
 0x1e4   : > { %v1857_v11 = vsel %vm1835_vm8, %v1824_v22, %v1552_v31  ;;  %v1776_v48 = vsel %vm1769_vm7, %v1743_v26, %v1266_v44  ;;  %v1759_v3 = vsel %vm1736_vm6, %v1726_v40, %v1170_v62  ;;  %v1645_v34 = vsel %vm1637_vm3, %v1612_v1, %v4133_v56  ;;  %v2468_v31 = vld [vmem:[#allocation2 + $0x110] sm:$0xff]  ;;  %v563_v1 = vld [vmem:[#allocation2 + $0xda] sm:$0xff] }
 0x1e5   : > { %1181 = vrot.lane.b32.xlu1 %v575_v20, %s2498_s23  ;;  %2418 = vmatmul.mubr.msk.f32.gmra.mrb[4].mxu1 %vm1880_vm10, %v1857_v11  ;;  %v546_v20 = vld [vmem:[#allocation2 + $0x189] sm:$0xff]  ;;  %v1678_v52 = vsel %vm1670_vm4, %v1645_v34, %v4134_v37 }
 0x1e6   : > { %1151 = vrot.lane.b32.xlu0 %v560_v28, %s2498_s23  ;;  %v1711_v14 = vsel %vm1703_vm5, %v1678_v52, %v3506_v55  ;;  %v577_v28 = vld [vmem:[#allocation2 + $0x182] sm:$0xff] }
 0x1e7   : > { %v3556_v58 = vpop.permute.xlu1 %1171  ;;  %v3558_v23 = vpop.permute.xlu0 %1267  ;;  %v1744_v2 = vsel %vm1736_vm6, %v1711_v14, %v3545_v61  ;;  %v4135_v11 = vld [vmem:[#allocation26_spill] sm:$0xff]  ;;  %v4143_v14 = vld [vmem:[#allocation68_spill] sm:$0xff] }
 0x1e8   : > { %v1777_v22 = vsel %vm1769_vm7, %v1744_v2, %v3558_v23  ;;  %v1628_v44 = vsel %vm171_vm0, %v2468_v31, %v4135_v11  ;;  %v4136_v55 = vld [vmem:[#allocation50_spill] sm:$0xff] }
 0x1e9   : > { %1563 = vrot.lane.b32.xlu1 %v576_v9, %s2501_s9  ;;  %v564_v31 = vld [vmem:[#allocation2 + $0xe2] sm:$0xff] }
 0x1ea   : > { %1277 = vrot.lane.b32.xlu0 %v497_v53, %s2499_s24 }
 0x1eb   : > { %v1298_v25 = vpop.permute.xlu1 %1297  ;;  %v1394_v35 = vpop.permute.xlu0 %1393 }
 0x1ec   : > { %v1809_v29 = vsel %vm1802_vm9, %v1776_v48, %v1394_v35  ;;  %v1792_v63 = vsel %vm1769_vm7, %v1759_v3, %v1298_v25  ;;  %v1661_v25 = vsel %vm1637_vm3, %v1628_v44, %v4136_v55  ;;  %v515_v48 = vld [vmem:[#allocation2 + $0x198] sm:$0xff]  ;;  %v2471_v55 = vld [vmem:[#allocation2 + $0x68] sm:$0xff] }
 0x1ed   : > { %1183 = vrot.lane.b32.xlu1 %v576_v9, %s2498_s23 }
 0x1ee   : > { %1279 = vrot.lane.b32.xlu0 %v498_v16, %s2499_s24  ;;  %v4137_v16 = vld [vmem:[#allocation69_spill] sm:$0xff] }
 0x1ef   : > { %v3564_v13 = vpop.permute.xlu1 %1299  ;;  %v3566_v18 = vpop.permute.xlu0 %1013  ;;  %v1694_v35 = vsel %vm1670_vm4, %v1661_v25, %v4137_v16  ;;  %v4144_v25 = vld [vmem:[#allocation13_spill] sm:$0xff] }
 0x1f1   : > { %1309 = vrot.lane.b32.xlu1 %v513_v24, %s2499_s24  ;;  %v1727_v24 = vsel %vm1703_vm5, %v1694_v35, %v3526_v36  ;;  %v578_v36 = vld [vmem:[#allocation2 + $0x18a] sm:$0xff] }
 0x1f2   : > { %1405 = vrot.lane.b32.xlu0 %v529_v38, %s2500_s6  ;;  %v4145_v35 = vld [vmem:[#allocation42_spill] sm:$0xff] }
 0x1f3   : > { %v1426_v6 = vpop.permute.xlu1 %1425  ;;  %v1396_v59 = vpop.permute.xlu0 %1395 }
 0x1f4   : > { %v1825_v4 = vsel %vm1802_vm9, %v1792_v63, %v1426_v6  ;;  %v1810_v9 = vsel %vm1802_vm9, %v1777_v22, %v1396_v59  ;;  %v499_v59 = vld [vmem:[#allocation2 + $0xd8] sm:$0xff] }
 0x1f5   : > { %1311 = vrot.lane.b32.xlu1 %v514_v46, %s2499_s24  ;;  %v1760_v46 = vsel %vm1736_vm6, %v1727_v24, %v3556_v58  ;;  %v547_v63 = vld [vmem:[#allocation2 + $0x199] sm:$0xff] }
 0x1f6   : > { %1025 = vrot.lane.b32.xlu0 %v529_v38, %s2497_s22  ;;  %v562_v38 = vld [vmem:[#allocation2 + $0xca] sm:$0xff]  ;;  %v1793_v41 = vsel %vm1769_vm7, %v1760_v46, %v3564_v13 }
 0x1f7   : > { %v3581_v33 = vpop.permute.xlu1 %1045  ;;  %v1522_v27 = vpop.permute.xlu0 %1521 }
 0x1f8   : > { %v1842_v0 = vsel %vm1835_vm8, %v1809_v29, %v1522_v27  ;;  %v2469_v29 = vld [vmem:[#allocation2 + $0x60] sm:$0xff] }
 0x1f9   : > { %1437 = vrot.lane.b32.xlu1 %v545_v43, %s2500_s6  ;;  %2396 = vmatprep.mubr.msk.f32.mxu0 %vm1880_vm10, %v1842_v0  ;;  %v4138_v27 = vld [vmem:[#allocation9_spill] sm:$0xff]  ;;  %v4139_v0 = vld [vmem:[#allocation39_spill] sm:$0xff] }
 0x1fa   : > { %1407 = vrot.lane.b32.xlu0 %v530_v60, %s2500_s6  ;;  %v1613_v15 = vsel %vm171_vm0, %v2469_v29, %v4138_v27 }
 0x1fb   : > { %v1428_v42 = vpop.permute.xlu1 %1427  ;;  %v3599_v51 = vpop.permute.xlu0 %1015  ;;  %v1646_v49 = vsel %vm1637_vm3, %v1613_v15, %v4139_v0 }
 0x1fc   : > { %v1826_v7 = vsel %vm1802_vm9, %v1793_v41, %v1428_v42  ;;  %v4140_v42 = vld [vmem:[#allocation58_spill] sm:$0xff] }
 0x1fd   : > { %1057 = vrot.lane.b32.xlu1 %v545_v43, %s2497_s22  ;;  %v500_v43 = vld [vmem:[#allocation2 + $0xe0] sm:$0xff]  ;;  %v1679_v40 = vsel %vm1670_vm4, %v1646_v49, %v4140_v42 }
 0x1fe   : > { %1533 = vrot.lane.b32.xlu0 %v561_v10, %s2501_s9  ;;  %v1712_v3 = vsel %vm1703_vm5, %v1679_v40, %v3566_v18  ;;  %v4142_v18 = vld [vmem:[#allocation49_spill] sm:$0xff] }
 0x1ff   : > { %v1554_v47 = vpop.permute.xlu1 %1553  ;;  %v3612_v62 = vpop.permute.xlu0 %1141 }
 0x200   : > { %v1858_v57 = vsel %vm1835_vm8, %v1825_v4, %v1554_v47  ;;  %v2470_v4 = vld [vmem:[#allocation2 + $0x120] sm:$0xff] }
 0x201   : > { %1439 = vrot.lane.b32.xlu1 %v546_v20, %s2500_s6  ;;  %2420 = vmatprep.mubr.msk.f32.mxu1 %vm1880_vm10, %v1858_v57  ;;  %v4141_v47 = vld [vmem:[#allocation25_spill] sm:$0xff] }
 0x202   : > { %1027 = vrot.lane.b32.xlu0 %v530_v60, %s2497_s22  ;;  %v1629_v56 = vsel %vm171_vm0, %v2470_v4, %v4141_v47  ;;  %v4151_v47 = vld [vmem:[#allocation41_spill] sm:$0xff] }
 0x203   : > { %v3621_v5 = vpop.permute.xlu1 %1047  ;;  %v1662_v37 = vsel %vm1637_vm3, %v1629_v56, %v4142_v18 }
 0x204   : > { %v1524_v53 = vpop.permute.xlu0 %1523 }
 0x205   : > { %1565 = vrot.lane.b32.xlu1 %v577_v28, %s2501_s9  ;;  %v1843_v61 = vsel %vm1835_vm8, %v1810_v9, %v1524_v53  ;;  %v579_v53 = vld [vmem:[#allocation2 + $0x19a] sm:$0xff] }
 0x206   : > { %1153 = vrot.lane.b32.xlu0 %v561_v10, %s2498_s23  ;;  %2397 = vmatmul.mubr.msk.f32.gmra.mrb[6].mxu0 %vm1880_vm10, %v1843_v61  ;;  %v1614_v61 = vsel %vm171_vm0, %v2471_v55, %v4144_v25  ;;  %v4155_v25 = vld [vmem:[#allocation70_spill] sm:$0xff] }
 0x207   : > { %v3635_v23 = vpop.permute.xlu1 %1173  ;;  %v1647_v24 = vsel %vm1637_vm3, %v1614_v61, %v4145_v35 }
 0x208   : > { %v3642_v54 = vpop.permute.xlu0 %1143 }
 0x209   : > { %1059 = vrot.lane.b32.xlu1 %v546_v20, %s2497_s22  ;;  %v1745_v20 = vsel %vm1736_vm6, %v1712_v3, %v3612_v62  ;;  %v548_v62 = vld [vmem:[#allocation2 + $0x1a1] sm:$0xff] }
 0x20a   : > { %1535 = vrot.lane.b32.xlu0 %v562_v38, %s2501_s9 }
 0x20b   : > { %v1556_v6 = vpop.permute.xlu1 %1555 }
 0x20c   : > { %v1859_v8 = vsel %vm1835_vm8, %v1826_v7, %v1556_v6  ;;  %v1270_v21 = vpop.permute.xlu0 %1269  ;;  %v580_v6 = vld [vmem:[#allocation2 + $0x1a2] sm:$0xff] }
 0x20d   : > { %1185 = vrot.lane.b32.xlu1 %v577_v28, %s2498_s23  ;;  %2421 = vmatmul.mubr.msk.f32.gmra.mrb[6].mxu1 %vm1880_vm10, %v1859_v8  ;;  %v1778_v39 = vsel %vm1769_vm7, %v1745_v20, %v1270_v21  ;;  %v1695_v28 = vsel %vm1670_vm4, %v1662_v37, %v4143_v14 }
 0x20e   : > { %1155 = vrot.lane.b32.xlu0 %v562_v38, %s2498_s23  ;;  %v1728_v22 = vsel %vm1703_vm5, %v1695_v28, %v3581_v33  ;;  %v4146_v38 = vld [vmem:[#allocation61_spill] sm:$0xff]  ;;  %v2474_v28 = vld [vmem:[#allocation2 + $0x138] sm:$0xff] }
 0x20f   : > { %v3653_v58 = vpop.permute.xlu1 %1175  ;;  %v1761_v11 = vsel %vm1736_vm6, %v1728_v22, %v3635_v23  ;;  %v1680_v46 = vsel %vm1670_vm4, %v1647_v24, %v4146_v38  ;;  %v4156_v38 = vld [vmem:[#allocation15_spill] sm:$0xff] }
 0x210   : > { %v3655_v30 = vpop.permute.xlu0 %1271  ;;  %v1713_v7 = vsel %vm1703_vm5, %v1680_v46, %v3599_v51 }
 0x211   : > { %1567 = vrot.lane.b32.xlu1 %v578_v36, %s2501_s9  ;;  %v1746_v8 = vsel %vm1736_vm6, %v1713_v7, %v3642_v54  ;;  %v4149_v54 = vld [vmem:[#allocation71_spill] sm:$0xff] }
 0x212   : > { %1281 = vrot.lane.b32.xlu0 %v499_v59, %s2499_s24  ;;  %v2472_v59 = vld [vmem:[#allocation2 + $0x128] sm:$0xff] }
 0x213   : > { %v1302_v13 = vpop.permute.xlu1 %1301 }
 0x214   : > { %v1398_v26 = vpop.permute.xlu0 %1397  ;;  %v1794_v9 = vsel %vm1769_vm7, %v1761_v11, %v1302_v13  ;;  %v4147_v13 = vld [vmem:[#allocation30_spill] sm:$0xff] }
 0x215   : > { %1187 = vrot.lane.b32.xlu1 %v578_v36, %s2498_s23  ;;  %v1811_v34 = vsel %vm1802_vm9, %v1778_v39, %v1398_v26  ;;  %v1779_v36 = vsel %vm1769_vm7, %v1746_v8, %v3655_v30 }
 0x216   : > { %1283 = vrot.lane.b32.xlu0 %v500_v43, %s2499_s24  ;;  %v1630_v43 = vsel %vm171_vm0, %v2472_v59, %v4147_v13  ;;  %v4158_v59 = vld [vmem:[#allocation63_spill] sm:$0xff] }
 0x217   : > { %v3661_v60 = vpop.permute.xlu1 %1303 }
 0x218   : > { %v3663_v12 = vpop.permute.xlu0 %1017 }
 0x219   : > { %1313 = vrot.lane.b32.xlu1 %v515_v48, %s2499_s24 }
 0x21a   : > { %1409 = vrot.lane.b32.xlu0 %v531_v45, %s2500_s6  ;;  %v4148_v45 = vld [vmem:[#allocation52_spill] sm:$0xff] }
 0x21b   : > { %v1430_v50 = vpop.permute.xlu1 %1429  ;;  %v1663_v51 = vsel %vm1637_vm3, %v1630_v43, %v4148_v45 }
 0x21c   : > { %v1400_v10 = vpop.permute.xlu0 %1399  ;;  %v1827_v16 = vsel %vm1802_vm9, %v1794_v9, %v1430_v50  ;;  %v1696_v29 = vsel %vm1670_vm4, %v1663_v51, %v4149_v54  ;;  %v4154_v9 = vld [vmem:[#allocation51_spill] sm:$0xff]  ;;  %v2476_v51 = vld [vmem:[#allocation2 + $0x140] sm:$0xff] }
 0x21d   : > { %1315 = vrot.lane.b32.xlu1 %v516_v32, %s2499_s24  ;;  %v1812_v26 = vsel %vm1802_vm9, %v1779_v36, %v1400_v10  ;;  %v1729_v30 = vsel %vm1703_vm5, %v1696_v29, %v3621_v5 }
 0x21e   : > { %1411 = vrot.lane.b32.xlu0 %v532_v19, %s2500_s6  ;;  %v1762_v15 = vsel %vm1736_vm6, %v1729_v30, %v3653_v58  ;;  %v2473_v58 = vld [vmem:[#allocation2 + $0x78] sm:$0xff]  ;;  %v4160_v30 = vld [vmem:[#allocation54_spill] sm:$0xff] }
 0x21f   : > { %v3679_v17 = vpop.permute.xlu1 %1049  ;;  %v1795_v0 = vsel %vm1769_vm7, %v1762_v15, %v3661_v60 }
 0x220   : > { %v1526_v57 = vpop.permute.xlu0 %1525 }
 0x221   : > { %1441 = vrot.lane.b32.xlu1 %v547_v63, %s2500_s6  ;;  %v1844_v52 = vsel %vm1835_vm8, %v1811_v34, %v1526_v57  ;;  %v4152_v34 = vld [vmem:[#allocation60_spill] sm:$0xff] }
 0x222   : > { %1537 = vrot.lane.b32.xlu0 %v563_v1, %s2501_s9  ;;  %2399 = vmatprep.mubr.msk.f32.mxu0 %vm1880_vm10, %v1844_v52  ;;  %v4150_v1 = vld [vmem:[#allocation12_spill] sm:$0xff] }
 0x223   : > { %v1432_v2 = vpop.permute.xlu1 %1431  ;;  %v1615_v4 = vsel %vm171_vm0, %v2473_v58, %v4150_v1 }
 0x224   : > { %v3697_v44 = vpop.permute.xlu0 %1019  ;;  %v1828_v49 = vsel %vm1802_vm9, %v1795_v0, %v1432_v2  ;;  %v1648_v56 = vsel %vm1637_vm3, %v1615_v4, %v4151_v47  ;;  %v4153_v2 = vld [vmem:[#allocation28_spill] sm:$0xff] }
 0x225   : > { %1443 = vrot.lane.b32.xlu1 %v548_v62, %s2500_s6  ;;  %v1681_v57 = vsel %vm1670_vm4, %v1648_v56, %v4152_v34  ;;  %v1631_v22 = vsel %vm171_vm0, %v2474_v28, %v4153_v2  ;;  %v4163_v2 = vld [vmem:[#allocation43_spill] sm:$0xff] }
 0x226   : > { %1539 = vrot.lane.b32.xlu0 %v564_v31, %s2501_s9  ;;  %v1714_v37 = vsel %vm1703_vm5, %v1681_v57, %v3663_v12  ;;  %v2477_v57 = vld [vmem:[#allocation2 + $0x90] sm:$0xff] }
 0x227   : > { %v1558_v33 = vpop.permute.xlu1 %1557 }
 0x228   : > { %v1860_v23 = vsel %vm1835_vm8, %v1827_v16, %v1558_v33  ;;  %v1146_v41 = vpop.permute.xlu0 %1145 }
 0x229   : > { %1569 = vrot.lane.b32.xlu1 %v579_v53, %s2501_s9  ;;  %2423 = vmatprep.mubr.msk.f32.mxu1 %vm1880_vm10, %v1860_v23  ;;  %v1747_v52 = vsel %vm1736_vm6, %v1714_v37, %v1146_v41  ;;  %v1664_v53 = vsel %vm1637_vm3, %v1631_v22, %v4154_v9  ;;  %v2475_v23 = vld [vmem:[#allocation2 + $0x80] sm:$0xff]  ;;  %v4164_v9 = vld [vmem:[#allocation62_spill] sm:$0xff] }
 0x22a   : > { %v1697_v12 = vsel %vm1670_vm4, %v1664_v53, %v4155_v25  ;;  %v1616_v46 = vsel %vm171_vm0, %v2475_v23, %v4156_v38  ;;  %v2478_v38 = vld [vmem:[#allocation2 + $0x150] sm:$0xff] }
 0x22b   : > { %v3716_v21 = vpop.permute.xlu1 %1051  ;;  %v1730_v16 = vsel %vm1703_vm5, %v1697_v12, %v3679_v17 }
 0x22c   : > { %v1528_v48 = vpop.permute.xlu0 %1527 }
 0x22d   : > { %1571 = vrot.lane.b32.xlu1 %v580_v6, %s2501_s9  ;;  %v1845_v32 = vsel %vm1835_vm8, %v1812_v26, %v1528_v48  ;;  %v4157_v6 = vld [vmem:[#allocation44_spill] sm:$0xff] }
 0x22e   : > { %2400 = vmatmul.mubr.msk.f32.gmra.mrb[8].mxu0 %vm1880_vm10, %v1845_v32  ;;  %v1649_v8 = vsel %vm1637_vm3, %v1616_v46, %v4157_v6  ;;  %v4159_v32 = vld [vmem:[#allocation32_spill] sm:$0xff]  ;;  %v4165_v46 = vld [vmem:[#allocation31_spill] sm:$0xff]  ;;  %v4166_v6 = vld [vmem:[#allocation53_spill] sm:$0xff] }
 0x22f   : > { %v1178_v27 = vpop.permute.xlu1 %1177  ;;  %v1682_v17 = vsel %vm1670_vm4, %v1649_v8, %v4158_v59  ;;  %v1632_v54 = vsel %vm171_vm0, %v2476_v51, %v4159_v32  ;;  %v4167_v59 = vld [vmem:[#allocation72_spill] sm:$0xff] }
 0x230   : > { %v1148_v50 = vpop.permute.xlu0 %1147  ;;  %v1763_v33 = vsel %vm1736_vm6, %v1730_v16, %v1178_v27  ;;  %v1715_v43 = vsel %vm1703_vm5, %v1682_v17, %v3697_v44  ;;  %v1665_v15 = vsel %vm1637_vm3, %v1632_v54, %v4160_v30  ;;  %v2479_v32 = vld [vmem:[#allocation2 + $0x98] sm:$0xff]  ;;  %v4168_v54 = vld [vmem:[#allocation17_spill] sm:$0xff] }
 0x231   : > { %v1748_v26 = vsel %vm1736_vm6, %v1715_v43, %v1148_v50 }
 0x233   : > { %v1560_v19 = vpop.permute.xlu1 %1559 }
 0x234   : > { %v1861_v42 = vsel %vm1835_vm8, %v1828_v49, %v1560_v19  ;;  %v1274_v40 = vpop.permute.xlu0 %1273  ;;  %v4161_v49 = vld [vmem:[#allocation73_spill] sm:$0xff] }
 0x235   : > { %2424 = vmatmul.mubr.msk.f32.gmra.mrb[8].mxu1 %vm1880_vm10, %v1861_v42  ;;  %v1780_v14 = vsel %vm1769_vm7, %v1747_v52, %v1274_v40  ;;  %v1698_v44 = vsel %vm1670_vm4, %v1665_v15, %v4161_v49  ;;  %v4169_v15 = vld [vmem:[#allocation46_spill] sm:$0xff] }
 0x236   : > { %v1731_v19 = vsel %vm1703_vm5, %v1698_v44, %v3716_v21  ;;  %v4170_v44 = vld [vmem:[#allocation65_spill] sm:$0xff] }
 0x237   : > { %v1180_v10 = vpop.permute.xlu1 %1179 }
 0x238   : > { %v1276_v3 = vpop.permute.xlu0 %1275  ;;  %v1764_v42 = vsel %vm1736_vm6, %v1731_v19, %v1180_v10  ;;  %v3806_v10 = vld [vmem:[%s4030_s2] ss:$0 sm:$0xff] }
 0x239   : > { %v1781_v45 = vsel %vm1769_vm7, %v1748_v26, %v1276_v3 }
 0x23b   : > { %v1306_v63 = vpop.permute.xlu1 %1305 }
 0x23c   : > { %v1402_v20 = vpop.permute.xlu0 %1401  ;;  %v1796_v24 = vsel %vm1769_vm7, %v1763_v33, %v1306_v63 }
 0x23d   : > { %v1813_v31 = vsel %vm1802_vm9, %v1780_v14, %v1402_v20 }
 0x23f   : > { %v1308_v5 = vpop.permute.xlu1 %1307 }
 0x240   : > { %v3739_v39 = vpop.permute.xlu0 %1021  ;;  %v1797_v3 = vsel %vm1769_vm7, %v1764_v42, %v1308_v5 }
 0x243   : > { %v1434_v60 = vpop.permute.xlu1 %1433 }
 0x244   : > { %v1404_v18 = vpop.permute.xlu0 %1403  ;;  %v1829_v41 = vsel %vm1802_vm9, %v1796_v24, %v1434_v60 }
 0x245   : > { %v1814_v29 = vsel %vm1802_vm9, %v1781_v45, %v1404_v18  ;;  %v4162_v18 = vld [vmem:[#allocation14_spill] sm:$0xff] }
 0x246   : > { %v1617_v37 = vsel %vm171_vm0, %v2477_v57, %v4162_v18 }
 0x247   : > { %v3750_v62 = vpop.permute.xlu1 %1053  ;;  %v1650_v22 = vsel %vm1637_vm3, %v1617_v37, %v4163_v2  ;;  %v4173_v37 = vld [vmem:[#allocation75_spill] sm:$0xff] }
 0x248   : > { %v1530_v11 = vpop.permute.xlu0 %1529  ;;  %v1683_v53 = vsel %vm1670_vm4, %v1650_v22, %v4164_v9 }
 0x249   : > { %v1846_v55 = vsel %vm1835_vm8, %v1813_v31, %v1530_v11 }
 0x24a   : > { %2402 = vmatprep.mubr.msk.f32.mxu0 %vm1880_vm10, %v1846_v55 }
 0x24b   : > { %v1436_v61 = vpop.permute.xlu1 %1435 }
 0x24c   : > { %v3765_v35 = vpop.permute.xlu0 %1023  ;;  %v1830_v63 = vsel %vm1802_vm9, %v1797_v3, %v1436_v61  ;;  %v1716_v61 = vsel %vm1703_vm5, %v1683_v53, %v3739_v39 }
 0x24f   : > { %v1562_v7 = vpop.permute.xlu1 %1561 }
 0x250   : > { %v1862_v36 = vsel %vm1835_vm8, %v1829_v41, %v1562_v7  ;;  %v1150_v13 = vpop.permute.xlu0 %1149  ;;  %v1633_v41 = vsel %vm171_vm0, %v2478_v38, %v4165_v46 }
 0x251   : > { %2426 = vmatprep.mubr.msk.f32.mxu1 %vm1880_vm10, %v1862_v36  ;;  %v1749_v33 = vsel %vm1736_vm6, %v1716_v61, %v1150_v13  ;;  %v1666_v8 = vsel %vm1637_vm3, %v1633_v41, %v4166_v6 }
 0x252   : > { %v1699_v17 = vsel %vm1670_vm4, %v1666_v8, %v4167_v59 }
 0x253   : > { %v3780_v48 = vpop.permute.xlu1 %1055  ;;  %v1732_v43 = vsel %vm1703_vm5, %v1699_v17, %v3750_v62 }
 0x254   : > { %v1532_v27 = vpop.permute.xlu0 %1531 }
 0x255   : > { %v1847_v0 = vsel %vm1835_vm8, %v1814_v29, %v1532_v27  ;;  %v1618_v29 = vsel %vm171_vm0, %v2479_v32, %v4168_v54  ;;  %v4178_v54 = vld [vmem:[#allocation47_spill] sm:$0xff] }
 0x256   : > { %2403 = vmatmul.mubr.msk.f32.gmra.mrb[10].mxu0 %vm1880_vm10, %v1847_v0  ;;  %v1651_v0 = vsel %vm1637_vm3, %v1618_v29, %v4169_v15 }
 0x257   : > { %v1182_v50 = vpop.permute.xlu1 %1181  ;;  %v1684_v62 = vsel %vm1670_vm4, %v1651_v0, %v4170_v44  ;;  %v4180_v0 = vld [vmem:[#allocation66_spill] sm:$0xff] }
 0x258   : > { %v1152_v40 = vpop.permute.xlu0 %1151  ;;  %v1765_v26 = vsel %vm1736_vm6, %v1732_v43, %v1182_v50  ;;  %v1717_v19 = vsel %vm1703_vm5, %v1684_v62, %v3765_v35  ;;  %v4177_v43 = vld [vmem:[#allocation18_spill] sm:$0xff] }
 0x259   : > { %v1750_v42 = vsel %vm1736_vm6, %v1717_v19, %v1152_v40 }
 0x25b   : > { %v1564_v20 = vpop.permute.xlu1 %1563 }
 0x25c   : > { %v1863_v58 = vsel %vm1835_vm8, %v1830_v63, %v1564_v20  ;;  %v1278_v1 = vpop.permute.xlu0 %1277  ;;  %v2480_v20 = vld [vmem:[#allocation2 + $0x158] sm:$0xff] }
 0x25d   : > { %2427 = vmatmul.mubr.msk.f32.gmra.mrb[10].mxu1 %vm1880_vm10, %v1863_v58  ;;  %v1782_v23 = vsel %vm1769_vm7, %v1749_v33, %v1278_v1  ;;  %v4171_v58 = vld [vmem:[#allocation34_spill] sm:$0xff] }
 0x25e   : > { %v1634_v1 = vsel %vm171_vm0, %v2480_v20, %v4171_v58  ;;  %v4182_v20 = vld [vmem:[#allocation74_spill] sm:$0xff] }
 0x25f   : > { %v3799_v4 = vpop.permute.xlu1 %1183 }
 0x260   : > { %v1280_v60 = vpop.permute.xlu0 %1279 }
 0x261   : > { %v1783_v63 = vsel %vm1769_vm7, %v1750_v42, %v1280_v60 }
 0x263   : > { %v1310_v47 = vpop.permute.xlu1 %1309 }
 0x264   : > { %v1406_v56 = vpop.permute.xlu0 %1405  ;;  %v1798_v51 = vsel %vm1769_vm7, %v1765_v26, %v1310_v47 }
 0x265   : > { %v1815_v39 = vsel %vm1802_vm9, %v1782_v23, %v1406_v56  ;;  %v4175_v23 = vld [vmem:[#allocation45_spill] sm:$0xff] }
 0x267   : > { %v3801_v21 = vpop.permute.xlu1 %1311 }
 0x268   : > { %v3808_v5 = vpop.permute.xlu0 %1025  ;;  %v2413_v34 = vpop.f32.mrb[0].mxu1 }
 0x269   : > { %v2133_v52 = vadd.f32 %v2413_v34, %v3806_v10  ;;  %v2127_v14 = vpop.f32.mrb[1].mxu1  ;;  %v4172_v34 = vld [vmem:[#allocation56_spill] sm:$0xff] }
 0x26a   : > { %v2128_v31 = vadd.f32 %v3806_v10, %v2127_v14  ;;  %v1667_v57 = vsel %vm1637_vm3, %v1634_v1, %v4172_v34 }
 0x26b   : > { %v1438_v28 = vpop.permute.xlu1 %1437  ;;  %2223 = vst.msk [vmem:[%s3815_s17 + $0x88] sm:$0xff] %vm1637_vm3, %v2133_v52  ;;  %v1700_v35 = vsel %vm1670_vm4, %v1667_v57, %v4173_v37  ;;  %v2484_v57 = vld [vmem:[#allocation2 + $0x170] sm:$0xff] }
 0x26c   : > { %v2389_v11 = vpop.f32.mrb[0].mxu0  ;;  %v1408_v25 = vpop.permute.xlu0 %1407  ;;  %2222 = vst.msk [vmem:[%s3815_s17 + $0x80] sm:$0xff] %vm1637_vm3, %v2128_v31  ;;  %v1831_v27 = vsel %vm1802_vm9, %v1798_v51, %v1438_v28  ;;  %v1733_v60 = vsel %vm1703_vm5, %v1700_v35, %v3780_v48 }
 0x26d   : > { %v2053_v55 = vadd.f32 %v2389_v11, %v3806_v10  ;;  %v2047_v12 = vpop.f32.mrb[1].mxu0  ;;  %v1816_v47 = vsel %vm1802_vm9, %v1783_v63, %v1408_v25  ;;  %v1766_v52 = vsel %vm1736_vm6, %v1733_v60, %v3799_v4  ;;  %v2481_v4 = vld [vmem:[#allocation2 + $0xa8] sm:$0xff] }
 0x26e   : > { %v2048_v16 = vadd.f32 %v3806_v10, %v2047_v12  ;;  %v1799_v28 = vsel %vm1769_vm7, %v1766_v52, %v3801_v21  ;;  %v4174_v12 = vld [vmem:[#allocation16_spill] sm:$0xff]  ;;  %v4184_v52 = vld [vmem:[#allocation57_spill] sm:$0xff] }
 0x26f   : > { %2207 = vst.msk [vmem:[%s3815_s17 + $0x8] sm:$0xff] %vm1637_vm3, %v2053_v55  ;;  %v3836_v24 = vpop.permute.xlu1 %1057  ;;  %v1619_v61 = vsel %vm171_vm0, %v2481_v4, %v4174_v12 }
 0x270   : > { %2206 = vst.msk [vmem:[%s3815_s17] sm:$0xff] %vm1637_vm3, %v2048_v16  ;;  %v1534_v7 = vpop.permute.xlu0 %1533  ;;  %v1652_v38 = vsel %vm1637_vm3, %v1619_v61, %v4175_v23 }
 0x271   : > { %v1848_v36 = vsel %vm1835_vm8, %v1815_v39, %v1534_v7  ;;  %v4176_v39 = vld [vmem:[#allocation64_spill] sm:$0xff] }
 0x272   : > { %2405 = vmatprep.mubr.msk.f32.mxu0 %vm1880_vm10, %v1848_v36  ;;  %v1685_v7 = vsel %vm1670_vm4, %v1652_v38, %v4176_v39 }
 0x273   : > { %v1440_v13 = vpop.permute.xlu1 %1439  ;;  %v1718_v59 = vsel %vm1703_vm5, %v1685_v7, %v3808_v5  ;;  %v2483_v5 = vld [vmem:[#allocation2 + $0x168] sm:$0xff] }
 0x274   : > { %v3853_v45 = vpop.permute.xlu0 %1027  ;;  %v1832_v2 = vsel %vm1802_vm9, %v1799_v28, %v1440_v13  ;;  %v2482_v13 = vld [vmem:[#allocation2 + $0xb0] sm:$0xff] }
 0x275   : > { %v1620_v26 = vsel %vm171_vm0, %v2482_v13, %v4177_v43 }
 0x276   : > { %v1653_v29 = vsel %vm1637_vm3, %v1620_v26, %v4178_v54 }
 0x277   : > { %v1566_v30 = vpop.permute.xlu1 %1565 }
 0x278   : > { %v1864_v49 = vsel %vm1835_vm8, %v1831_v27, %v1566_v30  ;;  %v1154_v50 = vpop.permute.xlu0 %1153  ;;  %v4179_v30 = vld [vmem:[#allocation33_spill] sm:$0xff] }
 0x279   : > { %2429 = vmatprep.mubr.msk.f32.mxu1 %vm1880_vm10, %v1864_v49  ;;  %v1751_v51 = vsel %vm1736_vm6, %v1718_v59, %v1154_v50  ;;  %v1635_v15 = vsel %vm171_vm0, %v2483_v5, %v4179_v30  ;;  %v1686_v49 = vsel %vm1670_vm4, %v1653_v29, %v4180_v0  ;;  %v4181_v50 = vld [vmem:[#allocation55_spill] sm:$0xff] }
 0x27a   : > { %v1668_v19 = vsel %vm1637_vm3, %v1635_v15, %v4181_v50  ;;  %v1719_v42 = vsel %vm1703_vm5, %v1686_v49, %v3853_v45 }
 0x27b   : > { %v3868_v3 = vpop.permute.xlu1 %1059  ;;  %v1701_v58 = vsel %vm1670_vm4, %v1668_v19, %v4182_v20 }
 0x27c   : > { %v1536_v56 = vpop.permute.xlu0 %1535 }
 0x27d   : > { %v1849_v18 = vsel %vm1835_vm8, %v1816_v47, %v1536_v56  ;;  %v1734_v56 = vsel %vm1703_vm5, %v1701_v58, %v3836_v24 }
 0x27e   : > { %2406 = vmatmul.mubr.msk.f32.gmra.mrb[12].mxu0 %vm1880_vm10, %v1849_v18  ;;  %v4183_v18 = vld [vmem:[#allocation35_spill] sm:$0xff] }
 0x27f   : > { %v1186_v40 = vpop.permute.xlu1 %1185  ;;  %v1636_v37 = vsel %vm171_vm0, %v2484_v57, %v4183_v18 }
 0x280   : > { %v1156_v14 = vpop.permute.xlu0 %1155  ;;  %v1767_v45 = vsel %vm1736_vm6, %v1734_v56, %v1186_v40 }
 0x281   : > { %v1752_v1 = vsel %vm1736_vm6, %v1719_v42, %v1156_v14  ;;  %v1669_v14 = vsel %vm1637_vm3, %v1636_v37, %v4184_v52 }
 0x283   : > { %v1568_v22 = vpop.permute.xlu1 %1567 }
 0x284   : > { %v1865_v31 = vsel %vm1835_vm8, %v1832_v2, %v1568_v22  ;;  %v1282_v11 = vpop.permute.xlu0 %1281  ;;  %v4185_v22 = vld [vmem:[#allocation76_spill] sm:$0xff] }
 0x285   : > { %2430 = vmatmul.mubr.msk.f32.gmra.mrb[12].mxu1 %vm1880_vm10, %v1865_v31  ;;  %v1784_v27 = vsel %vm1769_vm7, %v1751_v51, %v1282_v11  ;;  %v1702_v24 = vsel %vm1670_vm4, %v1669_v14, %v4185_v22 }
 0x286   : > { %v1735_v40 = vsel %vm1703_vm5, %v1702_v24, %v3868_v3 }
 0x287   : > { %v1188_v9 = vpop.permute.xlu1 %1187 }
 0x288   : > { %v1284_v53 = vpop.permute.xlu0 %1283 }
 0x289   : > { %v1785_v34 = vsel %vm1769_vm7, %v1752_v1, %v1284_v53 }
 0x28b   : > { %v1314_v55 = vpop.permute.xlu1 %1313 }
 0x28c   : > { %v1410_v48 = vpop.permute.xlu0 %1409  ;;  %v2416_v25 = vpop.f32.mrb[2].mxu1  ;;  %v1800_v28 = vsel %vm1769_vm7, %v1767_v45, %v1314_v55 }
 0x28d   : > { %v2143_v21 = vadd.f32 %v2416_v25, %v3806_v10  ;;  %v2137_v16 = vpop.f32.mrb[3].mxu1  ;;  %v1817_v44 = vsel %vm1802_vm9, %v1784_v27, %v1410_v48  ;;  %v1768_v48 = vsel %vm1736_vm6, %v1735_v40, %v1188_v9 }
 0x28e   : > { %v2138_v46 = vadd.f32 %v3806_v10, %v2137_v16 }
 0x28f   : > { %v1316_v33 = vpop.permute.xlu1 %1315  ;;  %2225 = vst.msk [vmem:[%s3815_s17 + $0x98] sm:$0xff] %vm1637_vm3, %v2143_v21 }
 0x290   : > { %v2392_v41 = vpop.f32.mrb[2].mxu0  ;;  %v1412_v8 = vpop.permute.xlu0 %1411  ;;  %2224 = vst.msk [vmem:[%s3815_s17 + $0x90] sm:$0xff] %vm1637_vm3, %v2138_v46  ;;  %v1801_v55 = vsel %vm1769_vm7, %v1768_v48, %v1316_v33 }
 0x291   : > { %v2063_v6 = vadd.f32 %v2392_v41, %v3806_v10  ;;  %v2057_v36 = vpop.f32.mrb[3].mxu0  ;;  %v1818_v35 = vsel %vm1802_vm9, %v1785_v34, %v1412_v8 }
 0x292   : > { %v2058_v17 = vadd.f32 %v3806_v10, %v2057_v36 }
 0x293   : > { %2209 = vst.msk [vmem:[%s3815_s17 + $0x18] sm:$0xff] %vm1637_vm3, %v2063_v6  ;;  %v1442_v32 = vpop.permute.xlu1 %1441 }
 0x294   : > { %2208 = vst.msk [vmem:[%s3815_s17 + $0x10] sm:$0xff] %vm1637_vm3, %v2058_v17  ;;  %v1538_v62 = vpop.permute.xlu0 %1537  ;;  %v1833_v31 = vsel %vm1802_vm9, %v1800_v28, %v1442_v32 }
 0x295   : > { %v1850_v63 = vsel %vm1835_vm8, %v1817_v44, %v1538_v62 }
 0x296   : > { %2408 = vmatprep.mubr.msk.f32.mxu0 %vm1880_vm10, %v1850_v63 }
 0x297   : > { %v1444_v47 = vpop.permute.xlu1 %1443 }
 0x298   : > { %v1540_v60 = vpop.permute.xlu0 %1539  ;;  %v1834_v25 = vsel %vm1802_vm9, %v1801_v55, %v1444_v47 }
 0x299   : > { %v1851_v2 = vsel %vm1835_vm8, %v1818_v35, %v1540_v60 }
 0x29a   : > { %2409 = vmatmul.mubr.msk.f32.gmra.mrb[14].mxu0 %vm1880_vm10, %v1851_v2 }
 0x29b   : > { %v1570_v11 = vpop.permute.xlu1 %1569 }
 0x29c   : > { %v1866_v53 = vsel %vm1835_vm8, %v1833_v31, %v1570_v11 }
 0x29d   : > { %2432 = vmatprep.mubr.msk.f32.mxu1 %vm1880_vm10, %v1866_v53 }
 0x29f   : > { %v1572_v4 = vpop.permute.xlu1 %1571 }
 0x2a0   : > { %v1867_v12 = vsel %vm1835_vm8, %v1834_v25, %v1572_v4 }
 0x2a1   : > { %2433 = vmatmul.mubr.msk.f32.gmra.mrb[14].mxu1 %vm1880_vm10, %v1867_v12 }
 0x2b0   : > { %v2395_v61 = vpop.f32.mrb[4].mxu0 }
 0x2b1   : > { %v2073_v3 = vadd.f32 %v2395_v61, %v3806_v10  ;;  %v2067_v21 = vpop.f32.mrb[5].mxu0 }
 0x2b2   : > { %v2068_v9 = vadd.f32 %v3806_v10, %v2067_v21 }
 0x2b3   : > { %2211 = vst.msk [vmem:[%s3815_s17 + $0x28] sm:$0xff] %vm1637_vm3, %v2073_v3 }
 0x2b4   : > { %2210 = vst.msk [vmem:[%s3815_s17 + $0x20] sm:$0xff] %vm1637_vm3, %v2068_v9 }
 0x2b8   : > { %v2419_v16 = vpop.f32.mrb[4].mxu1 }
 0x2b9   : > { %v2153_v33 = vadd.f32 %v2419_v16, %v3806_v10  ;;  %v2147_v23 = vpop.f32.mrb[5].mxu1 }
 0x2ba   : > { %v2148_v38 = vadd.f32 %v3806_v10, %v2147_v23 }
 0x2bb   : > { %2227 = vst.msk [vmem:[%s3815_s17 + $0xa8] sm:$0xff] %vm1637_vm3, %v2153_v33 }
 0x2bc   : > { %2226 = vst.msk [vmem:[%s3815_s17 + $0xa0] sm:$0xff] %vm1637_vm3, %v2148_v38 }
 0x2d9   : > { %v2398_v46 = vpop.f32.mrb[6].mxu0 }
 0x2da   : > { %v2083_v41 = vadd.f32 %v2398_v46, %v3806_v10  ;;  %v2077_v39 = vpop.f32.mrb[7].mxu0 }
 0x2db   : > { %v2078_v7 = vadd.f32 %v3806_v10, %v2077_v39 }
 0x2dc   : > { %2213 = vst.msk [vmem:[%s3815_s17 + $0x38] sm:$0xff] %vm1637_vm3, %v2083_v41 }
 0x2dd   : > { %2212 = vst.msk [vmem:[%s3815_s17 + $0x30] sm:$0xff] %vm1637_vm3, %v2078_v7 }
 0x2e0   : > { %v2422_v6 = vpop.f32.mrb[6].mxu1 }
 0x2e1   : > { %v2163_v8 = vadd.f32 %v2422_v6, %v3806_v10  ;;  %v2157_v36 = vpop.f32.mrb[7].mxu1 }
 0x2e2   : > { %v2158_v59 = vadd.f32 %v3806_v10, %v2157_v36 }
 0x2e3   : > { %2229 = vst.msk [vmem:[%s3815_s17 + $0xb8] sm:$0xff] %vm1637_vm3, %v2163_v8 }
 0x2e4   : > { %2228 = vst.msk [vmem:[%s3815_s17 + $0xb0] sm:$0xff] %vm1637_vm3, %v2158_v59 }
 0x301   : > { %v2401_v17 = vpop.f32.mrb[8].mxu0 }
 0x302   : > { %v2093_v13 = vadd.f32 %v2401_v17, %v3806_v10  ;;  %v2087_v43 = vpop.f32.mrb[9].mxu0 }
 0x303   : > { %v2088_v26 = vadd.f32 %v3806_v10, %v2087_v43 }
 0x304   : > { %2215 = vst.msk [vmem:[%s3815_s17 + $0x48] sm:$0xff] %vm1637_vm3, %v2093_v13 }
 0x305   : > { %2214 = vst.msk [vmem:[%s3815_s17 + $0x40] sm:$0xff] %vm1637_vm3, %v2088_v26 }
 0x308   : > { %v2425_v51 = vpop.f32.mrb[8].mxu1 }
 0x309   : > { %v2173_v32 = vadd.f32 %v2425_v51, %v3806_v10  ;;  %v2167_v54 = vpop.f32.mrb[9].mxu1 }
 0x30a   : > { %v2168_v29 = vadd.f32 %v3806_v10, %v2167_v54 }
 0x30b   : > { %2231 = vst.msk [vmem:[%s3815_s17 + $0xc8] sm:$0xff] %vm1637_vm3, %v2173_v32 }
 0x30c   : > { %2230 = vst.msk [vmem:[%s3815_s17 + $0xc0] sm:$0xff] %vm1637_vm3, %v2168_v29 }
 0x329   : > { %v2404_v27 = vpop.f32.mrb[10].mxu0 }
 0x32a   : > { %v2103_v5 = vadd.f32 %v2404_v27, %v3806_v10  ;;  %v2097_v30 = vpop.f32.mrb[11].mxu0 }
 0x32b   : > { %v2098_v15 = vadd.f32 %v3806_v10, %v2097_v30 }
 0x32c   : > { %2217 = vst.msk [vmem:[%s3815_s17 + $0x58] sm:$0xff] %vm1637_vm3, %v2103_v5 }
 0x32d   : > { %2216 = vst.msk [vmem:[%s3815_s17 + $0x50] sm:$0xff] %vm1637_vm3, %v2098_v15 }
 0x330   : > { %v2428_v0 = vpop.f32.mrb[10].mxu1 }
 0x331   : > { %v2183_v49 = vadd.f32 %v2428_v0, %v3806_v10  ;;  %v2177_v44 = vpop.f32.mrb[11].mxu1 }
 0x332   : > { %v2178_v62 = vadd.f32 %v3806_v10, %v2177_v44 }
 0x333   : > { %2233 = vst.msk [vmem:[%s3815_s17 + $0xd8] sm:$0xff] %vm1637_vm3, %v2183_v49 }
 0x334   : > { %2232 = vst.msk [vmem:[%s3815_s17 + $0xd0] sm:$0xff] %vm1637_vm3, %v2178_v62 }
 0x351   : > { %v2407_v50 = vpop.f32.mrb[12].mxu0 }
 0x352   : > { %v2113_v19 = vadd.f32 %v2407_v50, %v3806_v10  ;;  %v2107_v42 = vpop.f32.mrb[13].mxu0 }
 0x353   : > { %v2108_v63 = vadd.f32 %v3806_v10, %v2107_v42 }
 0x354   : > { %2219 = vst.msk [vmem:[%s3815_s17 + $0x68] sm:$0xff] %vm1637_vm3, %v2113_v19 }
 0x355   : > { %2218 = vst.msk [vmem:[%s3815_s17 + $0x60] sm:$0xff] %vm1637_vm3, %v2108_v63 }
 0x358   : > { %v2431_v20 = vpop.f32.mrb[12].mxu1 }
 0x359   : > { %v2193_v58 = vadd.f32 %v2431_v20, %v3806_v10  ;;  %v2187_v1 = vpop.f32.mrb[13].mxu1 }
 0x35a   : > { %v2188_v47 = vadd.f32 %v3806_v10, %v2187_v1 }
 0x35b   : > { %2235 = vst.msk [vmem:[%s3815_s17 + $0xe8] sm:$0xff] %vm1637_vm3, %v2193_v58 }
 0x35c   : > { %2234 = vst.msk [vmem:[%s3815_s17 + $0xe0] sm:$0xff] %vm1637_vm3, %v2188_v47 }
 0x36d   : > { %v2410_v56 = vpop.f32.mrb[14].mxu0 }
 0x36e   : > { %v2123_v34 = vadd.f32 %v2410_v56, %v3806_v10  ;;  %v2117_v57 = vpop.f32.mrb[15].mxu0 }
 0x36f   : > { %v2118_v18 = vadd.f32 %v3806_v10, %v2117_v57 }
 0x370   : > { %2221 = vst.msk [vmem:[%s3815_s17 + $0x78] sm:$0xff] %vm1637_vm3, %v2123_v34 }
 0x371   : > { %2220 = vst.msk [vmem:[%s3815_s17 + $0x70] sm:$0xff] %vm1637_vm3, %v2118_v18 }
 0x374   : > { %v2434_v37 = vpop.f32.mrb[14].mxu1 }
 0x375   : > { %v2203_v45 = vadd.f32 %v2434_v37, %v3806_v10  ;;  %v2197_v35 = vpop.f32.mrb[15].mxu1 }
 0x376   : > { %v2198_v60 = vadd.f32 %v3806_v10, %v2197_v35 }
 0x377   : > { %2237 = vst.msk [vmem:[%s3815_s17 + $0xf8] sm:$0xff] %vm1637_vm3, %v2203_v45 }
 0x378   : > { %2236 = vst.msk [vmem:[%s3815_s17 + $0xf0] sm:$0xff] %vm1637_vm3, %v2198_v60 }
 0x379 PF: > { %s13_s12 = sadd.s32 1, %s2491_s12  }
 0x37a   : > { %p10_p4 = scmp.ge.s32.totalorder %s13_s12, 4  }
 0x37c   :  { %12 = sbr.rel (!%p10_p4) target bundleno = 1 (0x1), region = 64 }

// kernel: tpu_custom_call.1
= control target key start
LH: loop header
LB: loop body
LE: loop exit
PB: predicated region body
PF: predicated region fallthrough
CT: control target
= control target key end

     0   :  { %s2522_s12 = smov 0   ;;  %s4028_s0 = inlined_call_operand.vmem [shape: f32[2,16,16,4], index: 0, kind: input, shape index: {}]   ;;  %s4029_s1 = inlined_call_operand.vmem [shape: f32[36,8], index: 1, kind: input, shape index: {}]   ;;  %s4030_s2 = inlined_call_operand.vmem [shape: f32[1,8], index: 2, kind: input, shape index: {}]   ;;  %s4031_s3 = inlined_call_operand.vmem [shape: f32[2,256,8], index: 3, kind: output, shape index: {}]  }
   0x1 LB: > { %s2293_s13 = sadd.s32 4294967295, %s2491_s12   ;;  %p2297_p0 = scmp.ge.s32.totalorder %s2491_s12, 1  ;;  %s2491_s12 = sphi %s2522_s12, %s13_s12  }
   0x2   : > { %p137_p1 = scmp.lt.s32.totalorder %s2491_s12, 3 }
   0x4   : > { %p138_p2 = pnand %p2297_p0, %p137_p1 }
   0x6   : > { %141 = sbr.rel (%p138_p2) target bundleno = 889 (0x379), region = 32 }
   0xd   : > { %vm171_vm0 = vcmask 31744   ;;  %vm174_vm1 = vcmask 25600   ;;  %p2532_p3 = scmp.lt.s32.totalorder %s2293_s13, 1  ;;  %v2493_v0 = vmov 0.0   ;;  %s2494_s19 = smov 4   ;;  %vm1977_vm2 = vcmask 1043456  }
   0xe   : > { %172 = vst.msk [vmem:[#allocation2] sm:$0xff] %vm171_vm0, %v2493_v0  ;;  %173 = vst.msk [vmem:[#allocation2 + $0x8] sm:$0xff] %vm171_vm0, %v2493_v0  ;;  %s2495_s20 = smov 8   ;;  %s2496_s21 = smov 12   ;;  %vm1637_vm3 = vcmask 64512   ;;  %vm1670_vm4 = vcmask 97280  }
   0xf   : > { %176 = vst.msk [vmem:[#allocation2 + $0x18] sm:$0xff] %vm171_vm0, %v2493_v0  ;;  %177 = vst.msk [vmem:[#allocation2 + $0x20] sm:$0xff] %vm171_vm0, %v2493_v0  ;;  %s4187_s13 = smov (!%p2532_p3, %s2293_s13), 1  ;;  %s2497_s22 = smov 16   ;;  %vm1703_vm5 = vcmask 130048   ;;  %vm1736_vm6 = vcmask 162816  }
  0x10   : > { %179 = vst.msk [vmem:[#allocation2 + $0x30] sm:$0xff] %vm171_vm0, %v2493_v0  ;;  %180 = vst.msk [vmem:[#allocation2 + $0x38] sm:$0xff] %vm171_vm0, %v2493_v0  ;;  %s2338_s15 = sshll.u32 %s4187_s13, 8  ;;  %s2498_s23 = smov 20   ;;  %vm1769_vm7 = vcmask 195584   ;;  %vm1835_vm8 = vcmask 261120  }
  0x11   : > { %182 = vst.msk [vmem:[#allocation2 + $0x48] sm:$0xff] %vm171_vm0, %v2493_v0  ;;  %183 = vst.msk [vmem:[#allocation2 + $0x50] sm:$0xff] %vm171_vm0, %v2493_v0  ;;  %s2602_s18 = scalar_lea.vmem %s4028_s0, %s2338_s15  ;;  %s2499_s24 = smov 24   ;;  %vm1802_vm9 = vcmask 228352   ;;  %vm1880_vm10 = vcmask 293888  }
  0x12   : > { %185 = vst.msk [vmem:[#allocation2 + $0x60] sm:$0xff] %vm171_vm0, %v2493_v0  ;;  %186 = vst.msk [vmem:[#allocation2 + $0x68] sm:$0xff] %vm171_vm0, %v2493_v0  ;;  %v227_v1 = vld [vmem:[%s2602_s18] sm:$0xff]  ;;  %v229_v2 = vld [vmem:[%s2602_s18 + $0x10] sm:$0xff]  ;;  %s2500_s6 = smov 28   ;;  %s2501_s9 = smov 32  }
  0x13   : > { %188 = vst.msk [vmem:[#allocation2 + $0x78] sm:$0xff] %vm171_vm0, %v2493_v0  ;;  %189 = vst.msk [vmem:[#allocation2 + $0x80] sm:$0xff] %vm171_vm0, %v2493_v0  ;;  %v228_v3 = vld [vmem:[%s2602_s18 + $0x8] sm:$0xff]  ;;  %v231_v4 = vld [vmem:[%s2602_s18 + $0x20] sm:$0xff]  ;;  %s3815_s17 = scalar_lea.vmem %s4031_s3, %s2338_s15 }
  0x14   : > { %191 = vst.msk [vmem:[#allocation2 + $0x90] sm:$0xff] %vm171_vm0, %v2493_v0  ;;  %192 = vst.msk [vmem:[#allocation2 + $0x98] sm:$0xff] %vm171_vm0, %v2493_v0  ;;  %v230_v5 = vld [vmem:[%s2602_s18 + $0x18] sm:$0xff]  ;;  %v233_v6 = vld [vmem:[%s2602_s18 + $0x30] sm:$0xff] }
  0x15   : > { %194 = vst.msk [vmem:[#allocation2 + $0xa8] sm:$0xff] %vm171_vm0, %v2493_v0  ;;  %195 = vst.msk [vmem:[#allocation2 + $0xb0] sm:$0xff] %vm171_vm0, %v2493_v0  ;;  %v324_v7 = vld [vmem:[#allocation2 + $0x1] sm:$0xff]  ;;  %v234_v11 = vld [vmem:[%s2602_s18 + $0x38] sm:$0xff] }
  0x16   : > { %197 = vst.msk [vmem:[#allocation2 + $0xc0] sm:$0xff] %vm171_vm0, %v2493_v0  ;;  %198 = vst.msk [vmem:[#allocation2 + $0xc8] sm:$0xff] %vm171_vm0, %v2493_v0  ;;  %v232_v9 = vld [vmem:[%s2602_s18 + $0x28] sm:$0xff]  ;;  %613 = vrot.lane.b32.xlu0 %v324_v7, %s2494_s19  ;;  %v235_v10 = vld [vmem:[%s2602_s18 + $0x40] sm:$0xff] }
  0x17   : > { %200 = vst.msk [vmem:[#allocation2 + $0xd8] sm:$0xff] %vm171_vm0, %v2493_v0  ;;  %201 = vst.msk [vmem:[#allocation2 + $0xe0] sm:$0xff] %vm171_vm0, %v2493_v0  ;;  %v237_v12 = vld [vmem:[%s2602_s18 + $0x50] sm:$0xff]  ;;  %v236_v13 = vld [vmem:[%s2602_s18 + $0x48] sm:$0xff] }
  0x18   : > { %203 = vst.msk [vmem:[#allocation2 + $0xf0] sm:$0xff] %vm171_vm0, %v2493_v0  ;;  %204 = vst.msk [vmem:[#allocation2 + $0xf8] sm:$0xff] %vm171_vm0, %v2493_v0  ;;  %v239_v14 = vld [vmem:[%s2602_s18 + $0x60] sm:$0xff]  ;;  %v238_v15 = vld [vmem:[%s2602_s18 + $0x58] sm:$0xff] }
  0x19   : > { %206 = vst.msk [vmem:[#allocation2 + $0x108] sm:$0xff] %vm171_vm0, %v2493_v0  ;;  %207 = vst.msk [vmem:[#allocation2 + $0x110] sm:$0xff] %vm171_vm0, %v2493_v0  ;;  %v241_v16 = vld [vmem:[%s2602_s18 + $0x70] sm:$0xff]  ;;  %v240_v17 = vld [vmem:[%s2602_s18 + $0x68] sm:$0xff] }
  0x1a   : > { %209 = vst.msk [vmem:[#allocation2 + $0x120] sm:$0xff] %vm171_vm0, %v2493_v0  ;;  %210 = vst.msk [vmem:[#allocation2 + $0x128] sm:$0xff] %vm171_vm0, %v2493_v0  ;;  %v243_v18 = vld [vmem:[%s2602_s18 + $0x80] sm:$0xff]  ;;  %v242_v19 = vld [vmem:[%s2602_s18 + $0x78] sm:$0xff] }
  0x1b   : > { %212 = vst.msk [vmem:[#allocation2 + $0x138] sm:$0xff] %vm171_vm0, %v2493_v0  ;;  %213 = vst.msk [vmem:[#allocation2 + $0x140] sm:$0xff] %vm171_vm0, %v2493_v0  ;;  %v245_v20 = vld [vmem:[%s2602_s18 + $0x90] sm:$0xff]  ;;  %v244_v21 = vld [vmem:[%s2602_s18 + $0x88] sm:$0xff] }
  0x1c   : > { %215 = vst.msk [vmem:[#allocation2 + $0x150] sm:$0xff] %vm171_vm0, %v2493_v0  ;;  %216 = vst.msk [vmem:[#allocation2 + $0x158] sm:$0xff] %vm171_vm0, %v2493_v0  ;;  %v247_v22 = vld [vmem:[%s2602_s18 + $0xa0] sm:$0xff]  ;;  %v246_v23 = vld [vmem:[%s2602_s18 + $0x98] sm:$0xff] }
  0x1d   : > { %218 = vst.msk [vmem:[#allocation2 + $0x168] sm:$0xff] %vm171_vm0, %v2493_v0  ;;  %219 = vst.msk [vmem:[#allocation2 + $0x170] sm:$0xff] %vm171_vm0, %v2493_v0  ;;  %v249_v24 = vld [vmem:[%s2602_s18 + $0xb0] sm:$0xff]  ;;  %v248_v28 = vld [vmem:[%s2602_s18 + $0xa8] sm:$0xff] }
  0x1e   : > { %221 = vst.msk [vmem:[#allocation2 + $0x180] sm:$0xff] %vm171_vm0, %v2493_v0  ;;  %222 = vst.msk [vmem:[#allocation2 + $0x188] sm:$0xff] %vm171_vm0, %v2493_v0  ;;  %v251_v29 = vld [vmem:[%s2602_s18 + $0xc0] sm:$0xff]  ;;  %v250_v33 = vld [vmem:[%s2602_s18 + $0xb8] sm:$0xff] }
  0x1f   : > { %224 = vst.msk [vmem:[#allocation2 + $0x198] sm:$0xff] %vm171_vm0, %v2493_v0  ;;  %225 = vst.msk [vmem:[#allocation2 + $0x1a0] sm:$0xff] %vm171_vm0, %v2493_v0  ;;  %v253_v34 = vld [vmem:[%s2602_s18 + $0xd0] sm:$0xff]  ;;  %v252_v35 = vld [vmem:[%s2602_s18 + $0xc8] sm:$0xff] }
  0x20   : > { %175 = vst.msk [vmem:[#allocation2 + $0x10] sm:$0x3] %vm174_vm1, %v2493_v0  ;;  %178 = vst.msk [vmem:[#allocation2 + $0x28] sm:$0x3] %vm174_vm1, %v2493_v0  ;;  %v255_v36 = vld [vmem:[%s2602_s18 + $0xe0] sm:$0xff]  ;;  %v254_v37 = vld [vmem:[%s2602_s18 + $0xd8] sm:$0xff] }
  0x21   : > { %181 = vst.msk [vmem:[#allocation2 + $0x40] sm:$0x3] %vm174_vm1, %v2493_v0  ;;  %184 = vst.msk [vmem:[#allocation2 + $0x58] sm:$0x3] %vm174_vm1, %v2493_v0  ;;  %v256_v39 = vld [vmem:[%s2602_s18 + $0xe8] sm:$0xff]  ;;  %v257_v58 = vld [vmem:[%s2602_s18 + $0xf0] sm:$0xff] }
  0x22   : > { %187 = vst.msk [vmem:[#allocation2 + $0x70] sm:$0x3] %vm174_vm1, %v2493_v0  ;;  %190 = vst.msk [vmem:[#allocation2 + $0x88] sm:$0x3] %vm174_vm1, %v2493_v0  ;;  %v258_v62 = vld [vmem:[%s2602_s18 + $0xf8] sm:$0xff] }
  0x23   : > { %193 = vst.msk [vmem:[#allocation2 + $0xa0] sm:$0x3] %vm174_vm1, %v2493_v0  ;;  %196 = vst.msk [vmem:[#allocation2 + $0xb8] sm:$0x3] %vm174_vm1, %v2493_v0 }
  0x24   : > { %199 = vst.msk [vmem:[#allocation2 + $0xd0] sm:$0x3] %vm174_vm1, %v2493_v0  ;;  %202 = vst.msk [vmem:[#allocation2 + $0xe8] sm:$0x3] %vm174_vm1, %v2493_v0 }
  0x25   : > { %205 = vst.msk [vmem:[#allocation2 + $0x100] sm:$0x3] %vm174_vm1, %v2493_v0  ;;  %208 = vst.msk [vmem:[#allocation2 + $0x118] sm:$0x3] %vm174_vm1, %v2493_v0 }
  0x26   : > { %211 = vst.msk [vmem:[#allocation2 + $0x130] sm:$0x3] %vm174_vm1, %v2493_v0  ;;  %214 = vst.msk [vmem:[#allocation2 + $0x148] sm:$0x3] %vm174_vm1, %v2493_v0 }
  0x27   : > { %217 = vst.msk [vmem:[#allocation2 + $0x160] sm:$0x3] %vm174_vm1, %v2493_v0  ;;  %220 = vst.msk [vmem:[#allocation2 + $0x178] sm:$0x3] %vm174_vm1, %v2493_v0  ;;  %v325_v8 = vld [vmem:[#allocation2 + $0x9] sm:$0xff] }
  0x28   : > { %223 = vst.msk [vmem:[#allocation2 + $0x190] sm:$0x3] %vm174_vm1, %v2493_v0  ;;  %226 = vst.msk [vmem:[#allocation2 + $0x1a8] sm:$0x3] %vm174_vm1, %v2493_v0  ;;  %615 = vrot.lane.b32.xlu0 %v325_v8, %s2494_s19  ;;  %v356_v0 = vld [vmem:[#allocation2 + $0x2] sm:$0xff] }
  0x29   : > { %260 = vst.msk [vmem:[#allocation2 + $0x19] sm:$0xff] %vm171_vm0, %v227_v1  ;;  %262 = vst.msk [vmem:[#allocation2 + $0x31] sm:$0xff] %vm171_vm0, %v229_v2 }
  0x2a   : > { %261 = vst.msk [vmem:[#allocation2 + $0x21] sm:$0xff] %vm171_vm0, %v228_v3  ;;  %264 = vst.msk [vmem:[#allocation2 + $0x49] sm:$0xff] %vm171_vm0, %v231_v4  ;;  %v357_v3 = vld [vmem:[#allocation2 + $0xa] sm:$0xff] }
  0x2b   : > { %263 = vst.msk [vmem:[#allocation2 + $0x39] sm:$0xff] %vm171_vm0, %v230_v5  ;;  %266 = vst.msk [vmem:[#allocation2 + $0x61] sm:$0xff] %vm171_vm0, %v233_v6 }
  0x2c   : > { %265 = vst.msk [vmem:[#allocation2 + $0x51] sm:$0xff] %vm171_vm0, %v232_v9  ;;  %268 = vst.msk [vmem:[#allocation2 + $0x79] sm:$0xff] %vm171_vm0, %v235_v10 }
  0x2d   : > { %267 = vst.msk [vmem:[#allocation2 + $0x69] sm:$0xff] %vm171_vm0, %v234_v11  ;;  %270 = vst.msk [vmem:[#allocation2 + $0x91] sm:$0xff] %vm171_vm0, %v237_v12 }
  0x2e   : > { %269 = vst.msk [vmem:[#allocation2 + $0x81] sm:$0xff] %vm171_vm0, %v236_v13  ;;  %272 = vst.msk [vmem:[#allocation2 + $0xa9] sm:$0xff] %vm171_vm0, %v239_v14 }
  0x2f   : > { %271 = vst.msk [vmem:[#allocation2 + $0x99] sm:$0xff] %vm171_vm0, %v238_v15  ;;  %274 = vst.msk [vmem:[#allocation2 + $0xc1] sm:$0xff] %vm171_vm0, %v241_v16 }
  0x30   : > { %273 = vst.msk [vmem:[#allocation2 + $0xb1] sm:$0xff] %vm171_vm0, %v240_v17  ;;  %276 = vst.msk [vmem:[#allocation2 + $0xd9] sm:$0xff] %vm171_vm0, %v243_v18  ;;  %v2647_v25 = vld [vmem:[#allocation2 + $0x19] sm:$0xff]  ;;  %v2649_v26 = vld [vmem:[#allocation2 + $0x31] sm:$0xff] }
  0x31   : > { %275 = vst.msk [vmem:[#allocation2 + $0xc9] sm:$0xff] %vm171_vm0, %v242_v19  ;;  %278 = vst.msk [vmem:[#allocation2 + $0xf1] sm:$0xff] %vm171_vm0, %v245_v20  ;;  %617 = vrot.lane.b32.xlu1 %v2647_v25, %s2494_s19  ;;  %v2656_v27 = vld [vmem:[#allocation2 + $0x21] sm:$0xff]  ;;  %621 = vrot.lane.b32.xlu0 %v2649_v26, %s2494_s19  ;;  %v2664_v30 = vld [vmem:[#allocation2 + $0x49] sm:$0xff] }
  0x32   : > { %277 = vst.msk [vmem:[#allocation2 + $0xe1] sm:$0xff] %vm171_vm0, %v244_v21  ;;  %280 = vst.msk [vmem:[#allocation2 + $0x109] sm:$0xff] %vm171_vm0, %v247_v22  ;;  %v2668_v31 = vld [vmem:[#allocation2 + $0x39] sm:$0xff]  ;;  %v2672_v32 = vld [vmem:[#allocation2 + $0x61] sm:$0xff] }
  0x33   : > { %279 = vst.msk [vmem:[#allocation2 + $0xf9] sm:$0xff] %vm171_vm0, %v246_v23  ;;  %282 = vst.msk [vmem:[#allocation2 + $0x121] sm:$0xff] %vm171_vm0, %v249_v24  ;;  %v2684_v38 = vld [vmem:[#allocation2 + $0x51] sm:$0xff]  ;;  %v334_v40 = vld [vmem:[#allocation2 + $0x79] sm:$0xff] }
  0x34   : > { %281 = vst.msk [vmem:[#allocation2 + $0x111] sm:$0xff] %vm171_vm0, %v248_v28  ;;  %284 = vst.msk [vmem:[#allocation2 + $0x139] sm:$0xff] %vm171_vm0, %v251_v29  ;;  %v333_v41 = vld [vmem:[#allocation2 + $0x69] sm:$0xff]  ;;  %v336_v42 = vld [vmem:[#allocation2 + $0x91] sm:$0xff] }
  0x35   : > { %619 = vrot.lane.b32.xlu1 %v2656_v27, %s2494_s19  ;;  %625 = vrot.lane.b32.xlu0 %v2664_v30, %s2494_s19  ;;  %283 = vst.msk [vmem:[#allocation2 + $0x129] sm:$0xff] %vm171_vm0, %v250_v33  ;;  %286 = vst.msk [vmem:[#allocation2 + $0x151] sm:$0xff] %vm171_vm0, %v253_v34  ;;  %v335_v43 = vld [vmem:[#allocation2 + $0x81] sm:$0xff]  ;;  %v338_v44 = vld [vmem:[#allocation2 + $0xa9] sm:$0xff] }
  0x36   : > { %285 = vst.msk [vmem:[#allocation2 + $0x141] sm:$0xff] %vm171_vm0, %v252_v35  ;;  %288 = vst.msk [vmem:[#allocation2 + $0x169] sm:$0xff] %vm171_vm0, %v255_v36  ;;  %v337_v45 = vld [vmem:[#allocation2 + $0x99] sm:$0xff]  ;;  %v340_v46 = vld [vmem:[#allocation2 + $0xc1] sm:$0xff] }
  0x37   : > { %287 = vst.msk [vmem:[#allocation2 + $0x159] sm:$0xff] %vm171_vm0, %v254_v37  ;;  %289 = vst.msk [vmem:[#allocation2 + $0x171] sm:$0xff] %vm171_vm0, %v256_v39  ;;  %v339_v47 = vld [vmem:[#allocation2 + $0xb1] sm:$0xff]  ;;  %v2701_v48 = vld [vmem:[#allocation2 + $0xd9] sm:$0xff] }
  0x38   : > { %v341_v49 = vld [vmem:[#allocation2 + $0xc9] sm:$0xff]  ;;  %v2706_v50 = vld [vmem:[#allocation2 + $0xf1] sm:$0xff]  ;;  %290 = vst.msk [vmem:[#allocation2 + $0x181] sm:$0xff] %vm171_vm0, %v257_v58  ;;  %291 = vst.msk [vmem:[#allocation2 + $0x189] sm:$0xff] %vm171_vm0, %v258_v62 }
  0x39   : > { %623 = vrot.lane.b32.xlu1 %v2668_v31, %s2494_s19  ;;  %629 = vrot.lane.b32.xlu0 %v2672_v32, %s2494_s19  ;;  %v2709_v51 = vld [vmem:[#allocation2 + $0xe1] sm:$0xff]  ;;  %v2713_v52 = vld [vmem:[#allocation2 + $0x109] sm:$0xff]  ;;  %v2750_v4 = vld [vmem:[#allocation2 + $0x32] sm:$0xff] }
  0x3a   : > { %v2717_v53 = vld [vmem:[#allocation2 + $0xf9] sm:$0xff]  ;;  %v2721_v54 = vld [vmem:[#allocation2 + $0x121] sm:$0xff]  ;;  %v2757_v6 = vld [vmem:[#allocation2 + $0x4a] sm:$0xff] }
  0x3b   : > { %v2725_v55 = vld [vmem:[#allocation2 + $0x111] sm:$0xff]  ;;  %v350_v56 = vld [vmem:[#allocation2 + $0x139] sm:$0xff]  ;;  %v2753_v5 = vld [vmem:[#allocation2 + $0x22] sm:$0xff] }
  0x3c   : > { %v2731_v57 = vld [vmem:[#allocation2 + $0x129] sm:$0xff]  ;;  %v352_v59 = vld [vmem:[#allocation2 + $0x151] sm:$0xff]  ;;  %v2745_v2 = vld [vmem:[#allocation2 + $0x1a] sm:$0xff] }
  0x3d   : > { %627 = vrot.lane.b32.xlu1 %v2684_v38, %s2494_s19  ;;  %633 = vrot.lane.b32.xlu0 %v334_v40, %s2494_s19  ;;  %v351_v60 = vld [vmem:[#allocation2 + $0x141] sm:$0xff]  ;;  %v354_v61 = vld [vmem:[#allocation2 + $0x169] sm:$0xff]  ;;  %v2769_v9 = vld [vmem:[#allocation2 + $0x52] sm:$0xff] }
  0x3e   : > { %v353_v63 = vld [vmem:[#allocation2 + $0x159] sm:$0xff]  ;;  %v355_v1 = vld [vmem:[#allocation2 + $0x171] sm:$0xff]  ;;  %v2765_v8 = vld [vmem:[#allocation2 + $0x62] sm:$0xff] }
  0x3f   : > { %v2761_v7 = vld [vmem:[#allocation2 + $0x3a] sm:$0xff]  ;;  %v2775_v11 = vld [vmem:[#allocation2 + $0x6a] sm:$0xff]  ;;  %v368_v12 = vld [vmem:[#allocation2 + $0x92] sm:$0xff] }
  0x40   : > { %v366_v10 = vld [vmem:[#allocation2 + $0x7a] sm:$0xff]  ;;  %v367_v13 = vld [vmem:[#allocation2 + $0x82] sm:$0xff]  ;;  %v370_v14 = vld [vmem:[#allocation2 + $0xaa] sm:$0xff] }
  0x41   : > { %631 = vrot.lane.b32.xlu1 %v333_v41, %s2494_s19  ;;  %637 = vrot.lane.b32.xlu0 %v336_v42, %s2494_s19  ;;  %v369_v15 = vld [vmem:[#allocation2 + $0x9a] sm:$0xff]  ;;  %v372_v16 = vld [vmem:[#allocation2 + $0xc2] sm:$0xff]  ;;  %v371_v17 = vld [vmem:[#allocation2 + $0xb2] sm:$0xff] }
  0x42   : > { %v2785_v18 = vld [vmem:[#allocation2 + $0xda] sm:$0xff]  ;;  %v373_v19 = vld [vmem:[#allocation2 + $0xca] sm:$0xff]  ;;  %v2790_v20 = vld [vmem:[#allocation2 + $0xf2] sm:$0xff] }
  0x43   : > { %v2793_v21 = vld [vmem:[#allocation2 + $0xe2] sm:$0xff]  ;;  %v2797_v22 = vld [vmem:[#allocation2 + $0x10a] sm:$0xff]  ;;  %v2801_v23 = vld [vmem:[#allocation2 + $0xfa] sm:$0xff] }
  0x44   : > { %v2805_v24 = vld [vmem:[#allocation2 + $0x122] sm:$0xff]  ;;  %v2809_v28 = vld [vmem:[#allocation2 + $0x112] sm:$0xff]  ;;  %v382_v29 = vld [vmem:[#allocation2 + $0x13a] sm:$0xff] }
  0x45   : > { %635 = vrot.lane.b32.xlu1 %v335_v43, %s2494_s19  ;;  %641 = vrot.lane.b32.xlu0 %v338_v44, %s2494_s19  ;;  %v2817_v34 = vld [vmem:[#allocation2 + $0x12a] sm:$0xff]  ;;  %v384_v35 = vld [vmem:[#allocation2 + $0x152] sm:$0xff]  ;;  %v383_v37 = vld [vmem:[#allocation2 + $0x142] sm:$0xff] }
  0x46   : > { %v386_v40 = vld [vmem:[#allocation2 + $0x16a] sm:$0xff]  ;;  %v385_v42 = vld [vmem:[#allocation2 + $0x15a] sm:$0xff] }
  0x49   : > { %639 = vrot.lane.b32.xlu1 %v337_v45, %s2494_s19  ;;  %645 = vrot.lane.b32.xlu0 %v340_v46, %s2494_s19  ;;  %v2836_v45 = vld [vmem:[#allocation2 + $0x18] sm:$0xff] }
  0x4a   : > { %4042 = vst [vmem:[#allocation7_spill] sm:$0xff] %v2836_v45  ;;  %v387_v46 = vld [vmem:[#allocation2 + $0x172] sm:$0xff] }
  0x4d   : > { %643 = vrot.lane.b32.xlu1 %v339_v47, %s2494_s19  ;;  %649 = vrot.lane.b32.xlu0 %v2701_v48, %s2494_s19 }
  0x51   : > { %647 = vrot.lane.b32.xlu1 %v341_v49, %s2494_s19  ;;  %653 = vrot.lane.b32.xlu0 %v2706_v50, %s2494_s19 }
  0x55   : > { %651 = vrot.lane.b32.xlu1 %v2709_v51, %s2494_s19  ;;  %657 = vrot.lane.b32.xlu0 %v2713_v52, %s2494_s19 }
  0x59   : > { %655 = vrot.lane.b32.xlu1 %v2717_v53, %s2494_s19  ;;  %661 = vrot.lane.b32.xlu0 %v2721_v54, %s2494_s19 }
  0x5d   : > { %659 = vrot.lane.b32.xlu1 %v2725_v55, %s2494_s19  ;;  %665 = vrot.lane.b32.xlu0 %v350_v56, %s2494_s19  ;;  %v2845_v56 = vld [vmem:[#allocation2 + $0x30] sm:$0xff] }
  0x61   : > { %663 = vrot.lane.b32.xlu1 %v2731_v57, %s2494_s19  ;;  %669 = vrot.lane.b32.xlu0 %v352_v59, %s2494_s19  ;;  %v2851_v59 = vld [vmem:[#allocation2 + $0x20] sm:$0xff] }
  0x62   : > { %4046 = vst [vmem:[#allocation11_spill] sm:$0xff] %v2851_v59 }
  0x65   : > { %667 = vrot.lane.b32.xlu1 %v351_v60, %s2494_s19  ;;  %673 = vrot.lane.b32.xlu0 %v354_v61, %s2494_s19  ;;  %v2857_v61 = vld [vmem:[#allocation2 + $0x48] sm:$0xff] }
  0x69   : > { %671 = vrot.lane.b32.xlu1 %v353_v63, %s2494_s19  ;;  %741 = vrot.lane.b32.xlu0 %v356_v0, %s2495_s20  ;;  %v2863_v63 = vld [vmem:[#allocation2 + $0x38] sm:$0xff] }
  0x6d   : > { %675 = vrot.lane.b32.xlu1 %v355_v1, %s2494_s19  ;;  %745 = vrot.lane.b32.xlu0 %v2745_v2, %s2495_s20  ;;  %v2869_v1 = vld [vmem:[#allocation2 + $0x60] sm:$0xff] }
  0x71   : > { %743 = vrot.lane.b32.xlu1 %v357_v3, %s2495_s20  ;;  %749 = vrot.lane.b32.xlu0 %v2750_v4, %s2495_s20 }
  0x75   : > { %747 = vrot.lane.b32.xlu1 %v2753_v5, %s2495_s20  ;;  %753 = vrot.lane.b32.xlu0 %v2757_v6, %s2495_s20 }
  0x79   : > { %751 = vrot.lane.b32.xlu1 %v2761_v7, %s2495_s20  ;;  %757 = vrot.lane.b32.xlu0 %v2765_v8, %s2495_s20 }
  0x7d   : > { %755 = vrot.lane.b32.xlu1 %v2769_v9, %s2495_s20  ;;  %761 = vrot.lane.b32.xlu0 %v366_v10, %s2495_s20  ;;  %v2875_v10 = vld [vmem:[#allocation2 + $0x50] sm:$0xff] }
  0x81   : > { %759 = vrot.lane.b32.xlu1 %v2775_v11, %s2495_s20  ;;  %765 = vrot.lane.b32.xlu0 %v368_v12, %s2495_s20 }
  0x85   : > { %763 = vrot.lane.b32.xlu1 %v367_v13, %s2495_s20  ;;  %769 = vrot.lane.b32.xlu0 %v370_v14, %s2495_s20  ;;  %v2881_v13 = vld [vmem:[#allocation2 + $0x78] sm:$0xff] }
  0x88   : > { %v2813_v33 = vpop.permute.xlu0 %613 }
  0x89   : > { %767 = vrot.lane.b32.xlu1 %v369_v15, %s2495_s20  ;;  %773 = vrot.lane.b32.xlu0 %v372_v16, %s2495_s20  ;;  %v2887_v15 = vld [vmem:[#allocation2 + $0x68] sm:$0xff] }
  0x8d   : > { %771 = vrot.lane.b32.xlu1 %v371_v17, %s2495_s20  ;;  %777 = vrot.lane.b32.xlu0 %v2785_v18, %s2495_s20  ;;  %v304_v17 = vld [vmem:[#allocation2 + $0x90] sm:$0xff] }
  0x91   : > { %775 = vrot.lane.b32.xlu1 %v373_v19, %s2495_s20  ;;  %781 = vrot.lane.b32.xlu0 %v2790_v20, %s2495_s20 }
  0x95   : > { %779 = vrot.lane.b32.xlu1 %v2793_v21, %s2495_s20  ;;  %785 = vrot.lane.b32.xlu0 %v2797_v22, %s2495_s20 }
  0x99   : > { %783 = vrot.lane.b32.xlu1 %v2801_v23, %s2495_s20  ;;  %789 = vrot.lane.b32.xlu0 %v2805_v24, %s2495_s20 }
  0x9a   : > { %v2820_v36 = vpop.permute.xlu0 %615 }
  0x9d   : > { %787 = vrot.lane.b32.xlu1 %v2809_v28, %s2495_s20  ;;  %793 = vrot.lane.b32.xlu0 %v382_v29, %s2495_s20  ;;  %v2896_v29 = vld [vmem:[#allocation2 + $0x80] sm:$0xff] }
  0xa1   : > { %791 = vrot.lane.b32.xlu1 %v2817_v34, %s2495_s20  ;;  %797 = vrot.lane.b32.xlu0 %v384_v35, %s2495_s20 }
  0xa3   : > { %v2825_v39 = vpop.permute.xlu1 %617  ;;  %v2827_v41 = vpop.permute.xlu0 %621 }
  0xa4   : > { %4038 = vst [vmem:[#allocation3_spill] sm:$0xff] %v2825_v39  ;;  %4039 = vst [vmem:[#allocation4_spill] sm:$0xff] %v2827_v41 }
  0xa5   : > { %795 = vrot.lane.b32.xlu1 %v383_v37, %s2495_s20  ;;  %801 = vrot.lane.b32.xlu0 %v386_v40, %s2495_s20  ;;  %v306_v37 = vld [vmem:[#allocation2 + $0xa8] sm:$0xff] }
  0xa7   : > { %v2831_v43 = vpop.permute.xlu1 %619  ;;  %v2833_v44 = vpop.permute.xlu0 %625 }
  0xa8   : > { %4040 = vst [vmem:[#allocation5_spill] sm:$0xff] %v2831_v43  ;;  %4041 = vst [vmem:[#allocation6_spill] sm:$0xff] %v2833_v44 }
  0xa9   : > { %799 = vrot.lane.b32.xlu1 %v385_v42, %s2495_s20  ;;  %869 = vrot.lane.b32.xlu0 %v2836_v45, %s2496_s21  ;;  %v305_v42 = vld [vmem:[#allocation2 + $0x98] sm:$0xff] }
  0xab   : > { %v2840_v47 = vpop.permute.xlu1 %623  ;;  %v2842_v49 = vpop.permute.xlu0 %629 }
  0xac   : > { %4043 = vst [vmem:[#allocation8_spill] sm:$0xff] %v2840_v47  ;;  %4044 = vst [vmem:[#allocation9_spill] sm:$0xff] %v2842_v49 }
  0xad   : > { %803 = vrot.lane.b32.xlu1 %v387_v46, %s2495_s20  ;;  %873 = vrot.lane.b32.xlu0 %v2845_v56, %s2496_s21 }
  0xaf   : > { %v2849_v58 = vpop.permute.xlu1 %627  ;;  %v2853_v60 = vpop.permute.xlu0 %633 }
  0xb0   : > { %4045 = vst [vmem:[#allocation10_spill] sm:$0xff] %v2849_v58  ;;  %4047 = vst [vmem:[#allocation12_spill] sm:$0xff] %v2853_v60  ;;  %v2929_v60 = vld [vmem:[#allocation2 + $0xf0] sm:$0xff]  ;;  %v2941_v58 = vld [vmem:[#allocation2 + $0x108] sm:$0xff] }
  0xb1   : > { %871 = vrot.lane.b32.xlu1 %v2851_v59, %s2496_s21  ;;  %877 = vrot.lane.b32.xlu0 %v2857_v61, %s2496_s21  ;;  %4064 = vst [vmem:[#allocation29_spill] sm:$0xff] %v2941_v58  ;;  %v2983_v59 = vld [vmem:[#allocation2 + $0x140] sm:$0xff] }
  0xb3   : > { %v2861_v62 = vpop.permute.xlu1 %631  ;;  %v2865_v0 = vpop.permute.xlu0 %637 }
  0xb4   : > { %4048 = vst [vmem:[#allocation13_spill] sm:$0xff] %v2861_v62  ;;  %4049 = vst [vmem:[#allocation14_spill] sm:$0xff] %v2865_v0  ;;  %v2935_v62 = vld [vmem:[#allocation2 + $0xe0] sm:$0xff] }
  0xb5   : > { %875 = vrot.lane.b32.xlu1 %v2863_v63, %s2496_s21  ;;  %881 = vrot.lane.b32.xlu0 %v2869_v1, %s2496_s21  ;;  %4062 = vst [vmem:[#allocation27_spill] sm:$0xff] %v2935_v62 }
  0xb7   : > { %v2873_v3 = vpop.permute.xlu1 %635  ;;  %v2877_v12 = vpop.permute.xlu0 %641 }
  0xb8   : > { %4050 = vst [vmem:[#allocation15_spill] sm:$0xff] %v2873_v3  ;;  %4051 = vst [vmem:[#allocation16_spill] sm:$0xff] %v2877_v12  ;;  %v307_v12 = vld [vmem:[#allocation2 + $0xb0] sm:$0xff] }
  0xb9   : > { %879 = vrot.lane.b32.xlu1 %v2875_v10, %s2496_s21  ;;  %885 = vrot.lane.b32.xlu0 %v2881_v13, %s2496_s21 }
  0xbb   : > { %v2885_v14 = vpop.permute.xlu1 %639  ;;  %v2889_v16 = vpop.permute.xlu0 %645 }
  0xbc   : > { %4052 = vst [vmem:[#allocation17_spill] sm:$0xff] %v2885_v14 }
  0xbd   : > { %883 = vrot.lane.b32.xlu1 %v2887_v15, %s2496_s21  ;;  %889 = vrot.lane.b32.xlu0 %v304_v17, %s2496_s21  ;;  %v2908_v17 = vld [vmem:[#allocation2 + $0xc0] sm:$0xff] }
  0xbf   : > { %v2894_v19 = vpop.permute.xlu1 %643  ;;  %v2898_v35 = vpop.permute.xlu0 %649 }
  0xc0   : > { %4053 = vst [vmem:[#allocation18_spill] sm:$0xff] %v2894_v19  ;;  %4054 = vst [vmem:[#allocation19_spill] sm:$0xff] %v2898_v35 }
  0xc1   : > { %887 = vrot.lane.b32.xlu1 %v2896_v29, %s2496_s21  ;;  %893 = vrot.lane.b32.xlu0 %v306_v37, %s2496_s21  ;;  %v2917_v37 = vld [vmem:[#allocation2 + $0xd8] sm:$0xff] }
  0xc2   : > { %4058 = vst [vmem:[#allocation23_spill] sm:$0xff] %v2917_v37 }
  0xc3   : > { %v2903_v40 = vpop.permute.xlu1 %647  ;;  %v2905_v46 = vpop.permute.xlu0 %653 }
  0xc4   : > { %4055 = vst [vmem:[#allocation20_spill] sm:$0xff] %v2905_v46  ;;  %v2971_v46 = vld [vmem:[#allocation2 + $0x128] sm:$0xff] }
  0xc5   : > { %891 = vrot.lane.b32.xlu1 %v305_v42, %s2496_s21  ;;  %897 = vrot.lane.b32.xlu0 %v2908_v17, %s2496_s21  ;;  %v2923_v42 = vld [vmem:[#allocation2 + $0xc8] sm:$0xff] }
  0xc7   : > { %v2912_v19 = vpop.permute.xlu1 %651  ;;  %v2914_v14 = vpop.permute.xlu0 %657 }
  0xc8   : > { %4056 = vst [vmem:[#allocation21_spill] sm:$0xff] %v2912_v19  ;;  %4057 = vst [vmem:[#allocation22_spill] sm:$0xff] %v2914_v14  ;;  %v2947_v14 = vld [vmem:[#allocation2 + $0xf8] sm:$0xff] }
  0xc9   : > { %895 = vrot.lane.b32.xlu1 %v307_v12, %s2496_s21  ;;  %901 = vrot.lane.b32.xlu0 %v2917_v37, %s2496_s21  ;;  %v2992_v19 = vld [vmem:[#allocation2 + $0x158] sm:$0xff]  ;;  %v418_v37 = vld [vmem:[#allocation2 + $0x180] sm:$0xff] }
  0xcb   : > { %v2921_v0 = vpop.permute.xlu1 %655  ;;  %v2925_v3 = vpop.permute.xlu0 %661 }
  0xcc   : > { %4059 = vst [vmem:[#allocation24_spill] sm:$0xff] %v2921_v0  ;;  %4060 = vst [vmem:[#allocation25_spill] sm:$0xff] %v2925_v3  ;;  %v2959_v0 = vld [vmem:[#allocation2 + $0x110] sm:$0xff] }
  0xcd   : > { %899 = vrot.lane.b32.xlu1 %v2923_v42, %s2496_s21  ;;  %905 = vrot.lane.b32.xlu0 %v2929_v60, %s2496_s21 }
  0xcf   : > { %v2933_v12 = vpop.permute.xlu1 %659  ;;  %v2937_v49 = vpop.permute.xlu0 %665 }
  0xd0   : > { %4061 = vst [vmem:[#allocation26_spill] sm:$0xff] %v2933_v12  ;;  %4063 = vst [vmem:[#allocation28_spill] sm:$0xff] %v2937_v49  ;;  %v2953_v12 = vld [vmem:[#allocation2 + $0x120] sm:$0xff] }
  0xd1   : > { %903 = vrot.lane.b32.xlu1 %v2935_v62, %s2496_s21  ;;  %909 = vrot.lane.b32.xlu0 %v2941_v58, %s2496_s21 }
  0xd3   : > { %v2945_v3 = vpop.permute.xlu1 %663  ;;  %v2949_v44 = vpop.permute.xlu0 %669 }
  0xd4   : > { %4065 = vst [vmem:[#allocation30_spill] sm:$0xff] %v2945_v3  ;;  %4066 = vst [vmem:[#allocation31_spill] sm:$0xff] %v2949_v44  ;;  %v2965_v3 = vld [vmem:[#allocation2 + $0x138] sm:$0xff] }
  0xd5   : > { %907 = vrot.lane.b32.xlu1 %v2947_v14, %s2496_s21  ;;  %913 = vrot.lane.b32.xlu0 %v2953_v12, %s2496_s21 }
  0xd7   : > { %v2957_v49 = vpop.permute.xlu1 %667  ;;  %v2961_v47 = vpop.permute.xlu0 %673 }
  0xd8   : > { %4067 = vst [vmem:[#allocation32_spill] sm:$0xff] %v2957_v49  ;;  %4068 = vst [vmem:[#allocation33_spill] sm:$0xff] %v2961_v47  ;;  %v2977_v49 = vld [vmem:[#allocation2 + $0x150] sm:$0xff] }
  0xd9   : > { %911 = vrot.lane.b32.xlu1 %v2959_v0, %s2496_s21  ;;  %917 = vrot.lane.b32.xlu0 %v2965_v3, %s2496_s21 }
  0xdb   : > { %v2969_v44 = vpop.permute.xlu1 %671  ;;  %v2973_v41 = vpop.permute.xlu0 %741 }
  0xdc   : > { %4069 = vst [vmem:[#allocation34_spill] sm:$0xff] %v2969_v44  ;;  %v322_v44 = vld [vmem:[#allocation2 + $0x168] sm:$0xff] }
  0xdd   : > { %915 = vrot.lane.b32.xlu1 %v2971_v46, %s2496_s21  ;;  %921 = vrot.lane.b32.xlu0 %v2977_v49, %s2496_s21 }
  0xdf   : > { %v2981_v47 = vpop.permute.xlu1 %675  ;;  %v2985_v43 = vpop.permute.xlu0 %745 }
  0xe0   : > { %4070 = vst [vmem:[#allocation35_spill] sm:$0xff] %v2981_v47  ;;  %4071 = vst [vmem:[#allocation36_spill] sm:$0xff] %v2985_v43  ;;  %v323_v43 = vld [vmem:[#allocation2 + $0x170] sm:$0xff] }
  0xe1   : > { %919 = vrot.lane.b32.xlu1 %v2983_v59, %s2496_s21  ;;  %925 = vrot.lane.b32.xlu0 %v322_v44, %s2496_s21  ;;  %v419_v44 = vld [vmem:[#allocation2 + $0x188] sm:$0xff] }
  0xe3   : > { %v2990_v62 = vpop.permute.xlu1 %743  ;;  %v2994_v35 = vpop.permute.xlu0 %749 }
  0xe4   : > { %4072 = vst [vmem:[#allocation37_spill] sm:$0xff] %v2994_v35 }
  0xe5   : > { %923 = vrot.lane.b32.xlu1 %v2992_v19, %s2496_s21  ;;  %929 = vrot.lane.b32.xlu0 %v418_v37, %s2496_s21 }
  0xe7   : > { %v2999_v47 = vpop.permute.xlu1 %747  ;;  %v3001_v45 = vpop.permute.xlu0 %753 }
  0xe8   : > { %4073 = vst [vmem:[#allocation38_spill] sm:$0xff] %v2999_v47 }
  0xe9   : > { %927 = vrot.lane.b32.xlu1 %v323_v43, %s2496_s21  ;;  %997 = vrot.lane.b32.xlu0 %v2647_v25, %s2497_s22 }
  0xeb   : > { %v3006_v39 = vpop.permute.xlu1 %751  ;;  %v3008_v35 = vpop.permute.xlu0 %757 }
  0xec   : > { %4074 = vst [vmem:[#allocation39_spill] sm:$0xff] %v3008_v35 }
  0xed   : > { %931 = vrot.lane.b32.xlu1 %v419_v44, %s2496_s21  ;;  %1001 = vrot.lane.b32.xlu0 %v2649_v26, %s2497_s22 }
  0xef   : > { %v3013_v37 = vpop.permute.xlu1 %755  ;;  %v3015_v47 = vpop.permute.xlu0 %761 }
  0xf0   : > { %4075 = vst [vmem:[#allocation40_spill] sm:$0xff] %v3013_v37  ;;  %4076 = vst [vmem:[#allocation41_spill] sm:$0xff] %v3015_v47 }
  0xf1   : > { %999 = vrot.lane.b32.xlu1 %v2656_v27, %s2497_s22  ;;  %1005 = vrot.lane.b32.xlu0 %v2664_v30, %s2497_s22 }
  0xf3   : > { %v3021_v25 = vpop.permute.xlu1 %759  ;;  %v3023_v43 = vpop.permute.xlu0 %765 }
  0xf4   : > { %4077 = vst [vmem:[#allocation42_spill] sm:$0xff] %v3021_v25  ;;  %4078 = vst [vmem:[#allocation43_spill] sm:$0xff] %v3023_v43  ;;  %v1871_v25 = vld [vmem:[%s4029_s1 + $0x18] sm:$0xff] }
  0xf5   : > { %1003 = vrot.lane.b32.xlu1 %v2668_v31, %s2497_s22  ;;  %1009 = vrot.lane.b32.xlu0 %v2672_v32, %s2497_s22 }
  0xf7   : > { %v3029_v44 = vpop.permute.xlu1 %763  ;;  %v3031_v35 = vpop.permute.xlu0 %769 }
  0xf8   : > { %4079 = vst [vmem:[#allocation44_spill] sm:$0xff] %v3029_v44  ;;  %4080 = vst [vmem:[#allocation45_spill] sm:$0xff] %v3031_v35  ;;  %v1870_v44 = vld [vmem:[%s4029_s1 + $0x10] sm:$0xff] }
  0xf9   : > { %1007 = vrot.lane.b32.xlu1 %v2684_v38, %s2497_s22  ;;  %1031 = vrot.lane.b32.xlu0 %v2709_v51, %s2497_s22 }
  0xfb   : > { %v3037_v27 = vpop.permute.xlu1 %767  ;;  %v3039_v47 = vpop.permute.xlu0 %773 }
  0xfc   : > { %4081 = vst [vmem:[#allocation46_spill] sm:$0xff] %v3037_v27 }
  0xfd   : > { %1029 = vrot.lane.b32.xlu1 %v2701_v48, %s2497_s22  ;;  %1157 = vrot.lane.b32.xlu0 %v2785_v18, %s2498_s23 }
  0xff   : > { %v3045_v32 = vpop.permute.xlu1 %771  ;;  %v3047_v35 = vpop.permute.xlu0 %777 }
 0x100   : > { %4082 = vst [vmem:[#allocation47_spill] sm:$0xff] %v3045_v32 }
 0x101   : > { %1125 = vrot.lane.b32.xlu1 %v2745_v2, %s2498_s23  ;;  %1159 = vrot.lane.b32.xlu0 %v2793_v21, %s2498_s23  ;;  %v1868_v2 = vld [vmem:[%s4029_s1] sm:$0xff]  ;;  %v1869_v21 = vld [vmem:[%s4029_s1 + $0x8] sm:$0xff] }
 0x102   : > { %v2435_v32 = vpack.c.bf16 %v1869_v21, %v1868_v2  ;;  %v2439_v21 = vpack.c.bf16 %v1871_v25, %v1870_v44 }
 0x103   : > { %v3053_v51 = vpop.permute.xlu1 %775  ;;  %v3055_v27 = vpop.permute.xlu0 %781 }
 0x104   : > { %2443 = vmatprep.subr.bf16.mxu1 %v2435_v32  ;;  %2436 = vmatprep.subr.bf16.mxu0 %v2435_v32 }
 0x105   : > { %1127 = vrot.lane.b32.xlu1 %v2753_v5, %s2498_s23  ;;  %1285 = vrot.lane.b32.xlu0 %v2929_v60, %s2499_s24 }
 0x106   : > { %2446 = vmatpush3.bf16.msra.mxu1 %v2435_v32  ;;  %2438 = vmatpush3.bf16.msra.mxu0 %v2435_v32 }
 0x107   : > { %v3061_v48 = vpop.permute.xlu1 %779  ;;  %v3063_v18 = vpop.permute.xlu0 %785  ;;  %2444 = vmatprep.subr.bf16.mxu1 %v2439_v21  ;;  %2440 = vmatprep.subr.bf16.mxu0 %v2439_v21 }
 0x108   : > { %4083 = vst [vmem:[#allocation48_spill] sm:$0xff] %v3063_v18 }
 0x109   : > { %1253 = vrot.lane.b32.xlu1 %v2845_v56, %s2499_s24  ;;  %1287 = vrot.lane.b32.xlu0 %v2947_v14, %s2499_s24 }
 0x10a   : > { %2447 = vmatpush3.bf16.msra.mxu1 %v2439_v21  ;;  %2442 = vmatpush3.bf16.msra.mxu0 %v2439_v21 }
 0x10b   : > { %v3075_v5 = vpop.permute.xlu1 %783  ;;  %v3077_v43 = vpop.permute.xlu0 %789 }
 0x10c   : > { %4084 = vst [vmem:[#allocation49_spill] sm:$0xff] %v3077_v43 }
 0x10d   : > { %1255 = vrot.lane.b32.xlu1 %v2863_v63, %s2499_s24  ;;  %1413 = vrot.lane.b32.xlu0 %v2706_v50, %s2500_s6 }
 0x10f   : > { %v3089_v2 = vpop.permute.xlu1 %787  ;;  %v3091_v43 = vpop.permute.xlu0 %793 }
 0x110   : > { %4085 = vst [vmem:[#allocation50_spill] sm:$0xff] %v3089_v2  ;;  %4086 = vst [vmem:[#allocation51_spill] sm:$0xff] %v3091_v43  ;;  %v1872_v2 = vld [vmem:[%s4029_s1 + $0x20] sm:$0xf] }
 0x111   : > { %1381 = vrot.lane.b32.xlu1 %v2649_v26, %s2500_s6  ;;  %1383 = vrot.lane.b32.xlu0 %v2668_v31, %s2500_s6 }
 0x112   : > { %2445 = vmatprep.subr.msk.mxu1 %vm1977_vm2, %v1872_v2  ;;  %2385 = vmatprep.subr.msk.mxu0 %vm1977_vm2, %v1872_v2 }
 0x113   : > { %v3097_v37 = vpop.permute.xlu1 %791  ;;  %v3102_v25 = vpop.permute.xlu0 %797  ;;  %2448 = vmatpush3.msk.msra.mxu1 %vm1977_vm2, %v1872_v2  ;;  %2386 = vmatpush3.msk.msra.mxu0 %vm1977_vm2, %v1872_v2 }
 0x114   : > { %4087 = vst [vmem:[#allocation52_spill] sm:$0xff] %v3097_v37  ;;  %4088 = vst [vmem:[#allocation53_spill] sm:$0xff] %v3102_v25 }
 0x115   : > { %1033 = vrot.lane.b32.xlu1 %v2706_v50, %s2497_s22  ;;  %1509 = vrot.lane.b32.xlu0 %v2750_v4, %s2501_s9 }
 0x117   : > { %v3108_v26 = vpop.permute.xlu1 %795  ;;  %v3110_v31 = vpop.permute.xlu0 %801 }
 0x118   : > { %4089 = vst [vmem:[#allocation54_spill] sm:$0xff] %v3108_v26  ;;  %4090 = vst [vmem:[#allocation55_spill] sm:$0xff] %v3110_v31 }
 0x119   : > { %1415 = vrot.lane.b32.xlu1 %v2717_v53, %s2500_s6  ;;  %1035 = vrot.lane.b32.xlu0 %v2717_v53, %s2497_s22 }
 0x11b   : > { %v3116_v44 = vpop.permute.xlu1 %799  ;;  %v3118_v50 = vpop.permute.xlu0 %869 }
 0x11c   : > { %4091 = vst [vmem:[#allocation56_spill] sm:$0xff] %v3116_v44 }
 0x11d   : > { %1541 = vrot.lane.b32.xlu1 %v2790_v20, %s2501_s9  ;;  %1161 = vrot.lane.b32.xlu0 %v2790_v20, %s2498_s23 }
 0x11f   : > { %v3124_v32 = vpop.permute.xlu1 %803  ;;  %v3126_v2 = vpop.permute.xlu0 %873 }
 0x120   : > { %4092 = vst [vmem:[#allocation57_spill] sm:$0xff] %v3124_v32 }
 0x121   : > { %1129 = vrot.lane.b32.xlu1 %v2750_v4, %s2498_s23  ;;  %1543 = vrot.lane.b32.xlu0 %v2801_v23, %s2501_s9 }
 0x123   : > { %v3132_v53 = vpop.permute.xlu1 %871  ;;  %v3134_v21 = vpop.permute.xlu0 %877 }
 0x125   : > { %1511 = vrot.lane.b32.xlu1 %v2761_v7, %s2501_s9  ;;  %1163 = vrot.lane.b32.xlu0 %v2801_v23, %s2498_s23 }
 0x127   : > { %v3140_v20 = vpop.permute.xlu1 %875  ;;  %v3142_v32 = vpop.permute.xlu0 %881 }
 0x129   : > { %1131 = vrot.lane.b32.xlu1 %v2761_v7, %s2498_s23  ;;  %1289 = vrot.lane.b32.xlu0 %v2941_v58, %s2499_s24  ;;  %v540_v58 = vld [vmem:[#allocation2 + $0x141] sm:$0xff] }
 0x12b   : > { %v3148_v4 = vpop.permute.xlu1 %879  ;;  %v3150_v31 = vpop.permute.xlu0 %885 }
 0x12c   : > { %4093 = vst [vmem:[#allocation58_spill] sm:$0xff] %v3150_v31 }
 0x12d   : > { %1257 = vrot.lane.b32.xlu1 %v2857_v61, %s2499_s24  ;;  %1291 = vrot.lane.b32.xlu0 %v2959_v0, %s2499_s24 }
 0x12f   : > { %v3156_v23 = vpop.permute.xlu1 %883  ;;  %v3158_v44 = vpop.permute.xlu0 %889 }
 0x130   : > { %4094 = vst [vmem:[#allocation59_spill] sm:$0xff] %v3156_v23  ;;  %4095 = vst [vmem:[#allocation60_spill] sm:$0xff] %v3158_v44 }
 0x131   : > { %1259 = vrot.lane.b32.xlu1 %v2875_v10, %s2499_s24  ;;  %1417 = vrot.lane.b32.xlu0 %v2713_v52, %s2500_s6 }
 0x133   : > { %v3164_v7 = vpop.permute.xlu1 %887  ;;  %v3166_v25 = vpop.permute.xlu0 %893 }
 0x134   : > { %4096 = vst [vmem:[#allocation61_spill] sm:$0xff] %v3164_v7  ;;  %4097 = vst [vmem:[#allocation62_spill] sm:$0xff] %v3166_v25  ;;  %v539_v7 = vld [vmem:[#allocation2 + $0x139] sm:$0xff] }
 0x135   : > { %1385 = vrot.lane.b32.xlu1 %v2664_v30, %s2500_s6  ;;  %1387 = vrot.lane.b32.xlu0 %v2684_v38, %s2500_s6 }
 0x137   : > { %v3172_v61 = vpop.permute.xlu1 %891  ;;  %v3174_v0 = vpop.permute.xlu0 %897 }
 0x138   : > { %4098 = vst [vmem:[#allocation63_spill] sm:$0xff] %v3172_v61  ;;  %4099 = vst [vmem:[#allocation64_spill] sm:$0xff] %v3174_v0 }
 0x139   : > { %1037 = vrot.lane.b32.xlu1 %v2713_v52, %s2497_s22  ;;  %1513 = vrot.lane.b32.xlu0 %v2757_v6, %s2501_s9 }
 0x13b   : > { %v3180_v10 = vpop.permute.xlu1 %895  ;;  %v3182_v26 = vpop.permute.xlu0 %901 }
 0x13c   : > { %4100 = vst [vmem:[#allocation65_spill] sm:$0xff] %v3180_v10 }
 0x13d   : > { %1419 = vrot.lane.b32.xlu1 %v2725_v55, %s2500_s6  ;;  %1039 = vrot.lane.b32.xlu0 %v2725_v55, %s2497_s22 }
 0x13f   : > { %v3188_v30 = vpop.permute.xlu1 %899  ;;  %v3190_v38 = vpop.permute.xlu0 %905 }
 0x140   : > { %4101 = vst [vmem:[#allocation66_spill] sm:$0xff] %v3188_v30 }
 0x141   : > { %1545 = vrot.lane.b32.xlu1 %v2797_v22, %s2501_s9  ;;  %1165 = vrot.lane.b32.xlu0 %v2797_v22, %s2498_s23 }
 0x143   : > { %v3196_v52 = vpop.permute.xlu1 %903  ;;  %v3198_v0 = vpop.permute.xlu0 %909 }
 0x145   : > { %1133 = vrot.lane.b32.xlu1 %v2757_v6, %s2498_s23  ;;  %1547 = vrot.lane.b32.xlu0 %v2809_v28, %s2501_s9 }
 0x147   : > { %v3204_v55 = vpop.permute.xlu1 %907  ;;  %v3206_v30 = vpop.permute.xlu0 %913 }
 0x148   : > { %4102 = vst [vmem:[#allocation67_spill] sm:$0xff] %v3206_v30 }
 0x149   : > { %1515 = vrot.lane.b32.xlu1 %v2769_v9, %s2501_s9  ;;  %1167 = vrot.lane.b32.xlu0 %v2809_v28, %s2498_s23 }
 0x14b   : > { %v3212_v22 = vpop.permute.xlu1 %911  ;;  %v3214_v10 = vpop.permute.xlu0 %917 }
 0x14c   : > { %4103 = vst [vmem:[#allocation68_spill] sm:$0xff] %v3214_v10  ;;  %v524_v10 = vld [vmem:[#allocation2 + $0x81] sm:$0xff] }
 0x14d   : > { %1135 = vrot.lane.b32.xlu1 %v2769_v9, %s2498_s23  ;;  %1293 = vrot.lane.b32.xlu0 %v2953_v12, %s2499_s24  ;;  %v521_v9 = vld [vmem:[#allocation2 + $0x61] sm:$0xff] }
 0x14f   : > { %v3220_v6 = vpop.permute.xlu1 %915  ;;  %v3222_v25 = vpop.permute.xlu0 %921 }
 0x150   : > { %4104 = vst [vmem:[#allocation69_spill] sm:$0xff] %v3220_v6  ;;  %4105 = vst [vmem:[#allocation70_spill] sm:$0xff] %v3222_v25  ;;  %v522_v25 = vld [vmem:[#allocation2 + $0x69] sm:$0xff] }
 0x151   : > { %1261 = vrot.lane.b32.xlu1 %v2869_v1, %s2499_s24  ;;  %1295 = vrot.lane.b32.xlu0 %v2971_v46, %s2499_s24 }
 0x153   : > { %v3228_v28 = vpop.permute.xlu1 %919  ;;  %v3230_v61 = vpop.permute.xlu0 %925 }
 0x154   : > { %4106 = vst [vmem:[#allocation71_spill] sm:$0xff] %v3228_v28  ;;  %4107 = vst [vmem:[#allocation72_spill] sm:$0xff] %v3230_v61 }
 0x155   : > { %1263 = vrot.lane.b32.xlu1 %v2887_v15, %s2499_s24  ;;  %1421 = vrot.lane.b32.xlu0 %v2721_v54, %s2500_s6 }
 0x157   : > { %v3236_v12 = vpop.permute.xlu1 %923  ;;  %v3238_v43 = vpop.permute.xlu0 %929 }
 0x158   : > { %4108 = vst [vmem:[#allocation73_spill] sm:$0xff] %v3236_v12  ;;  %4109 = vst [vmem:[#allocation74_spill] sm:$0xff] %v3238_v43 }
 0x159   : > { %1389 = vrot.lane.b32.xlu1 %v521_v9, %s2500_s6  ;;  %1391 = vrot.lane.b32.xlu0 %v522_v25, %s2500_s6 }
 0x15b   : > { %v3242_v1 = vpop.permute.xlu1 %927  ;;  %v998_v46 = vpop.permute.xlu0 %997 }
 0x15c   : > { %4110 = vst [vmem:[#allocation75_spill] sm:$0xff] %v3242_v1 }
 0x15d   : > { %1041 = vrot.lane.b32.xlu1 %v2721_v54, %s2497_s22  ;;  %1517 = vrot.lane.b32.xlu0 %v2765_v8, %s2501_s9  ;;  %v443_v54 = vld [vmem:[#allocation2 + $0x129] sm:$0xff] }
 0x15f   : > { %v3248_v15 = vpop.permute.xlu1 %931  ;;  %v3250_v61 = vpop.permute.xlu0 %1001 }
 0x160   : > { %4111 = vst [vmem:[#allocation76_spill] sm:$0xff] %v3248_v15 }
 0x161   : > { %1423 = vrot.lane.b32.xlu1 %v2731_v57, %s2500_s6  ;;  %1011 = vrot.lane.b32.xlu0 %v522_v25, %s2497_s22 }
 0x163   : > { %v3255_v9 = vpop.permute.xlu1 %999  ;;  %v3257_v43 = vpop.permute.xlu0 %1005 }
 0x165   : > { %1549 = vrot.lane.b32.xlu1 %v2805_v24, %s2501_s9  ;;  %1137 = vrot.lane.b32.xlu0 %v2765_v8, %s2498_s23 }
 0x167   : > { %v3263_v1 = vpop.permute.xlu1 %1003  ;;  %v3265_v15 = vpop.permute.xlu0 %1009 }
 0x169   : > { %1043 = vrot.lane.b32.xlu1 %v443_v54, %s2497_s22  ;;  %1519 = vrot.lane.b32.xlu0 %v2775_v11, %s2501_s9 }
 0x16b   : > { %v3270_v57 = vpop.permute.xlu1 %1007  ;;  %v3272_v25 = vpop.permute.xlu0 %1031 }
 0x16d   : > { %1169 = vrot.lane.b32.xlu1 %v2805_v24, %s2498_s23  ;;  %1139 = vrot.lane.b32.xlu0 %v2775_v11, %s2498_s23  ;;  %v523_v11 = vld [vmem:[#allocation2 + $0x79] sm:$0xff] }
 0x16f   : > { %v1030_v8 = vpop.permute.xlu1 %1029  ;;  %v1158_v12 = vpop.permute.xlu0 %1157 }
 0x171   : > { %1551 = vrot.lane.b32.xlu1 %v2817_v34, %s2501_s9  ;;  %1265 = vrot.lane.b32.xlu0 %v2881_v13, %s2499_s24 }
 0x173   : > { %v1126_v54 = vpop.permute.xlu1 %1125  ;;  %v3282_v44 = vpop.permute.xlu0 %1159 }
 0x175   : > { %1171 = vrot.lane.b32.xlu1 %v2817_v34, %s2498_s23  ;;  %1267 = vrot.lane.b32.xlu0 %v2896_v29, %s2499_s24  ;;  %v292_v29 = vld [vmem:[#allocation2] sm:$0xff] }
 0x177   : > { %v3288_v24 = vpop.permute.xlu1 %1127  ;;  %v1286_v28 = vpop.permute.xlu0 %1285 }
 0x179   : > { %1297 = vrot.lane.b32.xlu1 %v2965_v3, %s2499_s24  ;;  %1393 = vrot.lane.b32.xlu0 %v523_v11, %s2500_s6  ;;  %v1605_v3 = vsel %vm171_vm0, %v292_v29, %v2813_v33  ;;  %v1621_v33 = vsel %vm171_vm0, %v2908_v17, %v2889_v16 }
 0x17b   : > { %v1254_v37 = vpop.permute.xlu1 %1253  ;;  %v3293_v13 = vpop.permute.xlu0 %1287 }
 0x17d   : > { %1299 = vrot.lane.b32.xlu1 %v2983_v59, %s2499_s24  ;;  %1013 = vrot.lane.b32.xlu0 %v523_v11, %s2497_s22  ;;  %v1638_v59 = vsel %vm1637_vm3, %v1605_v3, %v2973_v41  ;;  %v555_v11 = vld [vmem:[#allocation2 + $0x7a] sm:$0xff] }
 0x17e   : > { %v1671_v23 = vsel %vm1670_vm4, %v1638_v59, %v3118_v50  ;;  %v1654_v50 = vsel %vm1637_vm3, %v1621_v33, %v3039_v47 }
 0x17f   : > { %v3298_v34 = vpop.permute.xlu1 %1255  ;;  %v1414_v31 = vpop.permute.xlu0 %1413  ;;  %v1704_v18 = vsel %vm1703_vm5, %v1671_v23, %v998_v46  ;;  %v1687_v23 = vsel %vm1670_vm4, %v1654_v50, %v3182_v26  ;;  %v293_v26 = vld [vmem:[#allocation2 + $0x8] sm:$0xff] }
 0x180   : > { %v1737_v29 = vsel %vm1736_vm6, %v1704_v18, %v1126_v54  ;;  %v1720_v18 = vsel %vm1703_vm5, %v1687_v23, %v1030_v8  ;;  %v571_v54 = vld [vmem:[#allocation2 + $0x13a] sm:$0xff]  ;;  %v1622_v8 = vsel %vm171_vm0, %v2923_v42, %v2903_v40  ;;  %v1606_v50 = vsel %vm171_vm0, %v293_v26, %v2820_v36  ;;  %v572_v23 = vld [vmem:[#allocation2 + $0x142] sm:$0xff] }
 0x181   : > { %1425 = vrot.lane.b32.xlu1 %v539_v7, %s2500_s6  ;;  %1395 = vrot.lane.b32.xlu0 %v524_v10, %s2500_s6  ;;  %v1655_v33 = vsel %vm1637_vm3, %v1622_v8, %v3053_v51  ;;  %v1639_v40 = vsel %vm1637_vm3, %v1606_v50, %v2990_v62  ;;  %v4112_v8 = vld [vmem:[#allocation3_spill] sm:$0xff]  ;;  %v526_v50 = vld [vmem:[#allocation2 + $0x99] sm:$0xff] }
 0x182   : > { %v1672_v51 = vsel %vm1670_vm4, %v1639_v40, %v3132_v53 }
 0x183   : > { %v1382_v6 = vpop.permute.xlu1 %1381  ;;  %v1384_v30 = vpop.permute.xlu0 %1383 }
 0x185   : > { %1045 = vrot.lane.b32.xlu1 %v539_v7, %s2497_s22  ;;  %1521 = vrot.lane.b32.xlu0 %v555_v11, %s2501_s9  ;;  %v1770_v7 = vsel %vm1769_vm7, %v1737_v29, %v1254_v37  ;;  %v1753_v37 = vsel %vm1736_vm6, %v1720_v18, %v1158_v12  ;;  %v556_v29 = vld [vmem:[#allocation2 + $0x82] sm:$0xff]  ;;  %v494_v18 = vld [vmem:[#allocation2 + $0x98] sm:$0xff] }
 0x186   : > { %v1803_v16 = vsel %vm1802_vm9, %v1770_v7, %v1382_v6  ;;  %v1786_v6 = vsel %vm1769_vm7, %v1753_v37, %v1286_v28  ;;  %v1688_v28 = vsel %vm1670_vm4, %v1655_v33, %v3196_v52 }
 0x187   : > { %v3315_v41 = vpop.permute.xlu1 %1033  ;;  %v1510_v17 = vpop.permute.xlu0 %1509  ;;  %v1819_v59 = vsel %vm1802_vm9, %v1786_v6, %v1414_v31  ;;  %v1721_v42 = vsel %vm1703_vm5, %v1688_v28, %v3272_v25  ;;  %v541_v6 = vld [vmem:[#allocation2 + $0x151] sm:$0xff] }
 0x188   : > { %v1836_v46 = vsel %vm1835_vm8, %v1803_v16, %v1510_v17  ;;  %v1754_v36 = vsel %vm1736_vm6, %v1721_v42, %v3282_v44 }
 0x189   : > { %1427 = vrot.lane.b32.xlu1 %v540_v58, %s2500_s6  ;;  %1015 = vrot.lane.b32.xlu0 %v524_v10, %s2497_s22  ;;  %v1787_v52 = vsel %vm1769_vm7, %v1754_v36, %v3293_v13  ;;  %v493_v13 = vld [vmem:[#allocation2 + $0x90] sm:$0xff] }
 0x18a   : > { %2387 = vmatprep.mubr.msk.f32.mxu0 %vm1880_vm10, %v1836_v46  ;;  %v557_v36 = vld [vmem:[#allocation2 + $0x92] sm:$0xff] }
 0x18b   : > { %v1416_v47 = vpop.permute.xlu1 %1415  ;;  %v3329_v3 = vpop.permute.xlu0 %1035 }
 0x18c   : > { %v1820_v25 = vsel %vm1802_vm9, %v1787_v52, %v1416_v47  ;;  %v4116_v52 = vld [vmem:[#allocation23_spill] sm:$0xff] }
 0x18d   : > { %1553 = vrot.lane.b32.xlu1 %v571_v54, %s2501_s9  ;;  %1141 = vrot.lane.b32.xlu0 %v555_v11, %s2498_s23 }
 0x18f   : > { %v1542_v10 = vpop.permute.xlu1 %1541  ;;  %v3345_v7 = vpop.permute.xlu0 %1161 }
 0x190   : > { %v1852_v12 = vsel %vm1835_vm8, %v1819_v59, %v1542_v10  ;;  %v4113_v59 = vld [vmem:[#allocation7_spill] sm:$0xff] }
 0x191   : > { %1047 = vrot.lane.b32.xlu1 %v540_v58, %s2497_s22  ;;  %2411 = vmatprep.mubr.msk.f32.mxu1 %vm1880_vm10, %v1852_v12  ;;  %v1705_v58 = vsel %vm1703_vm5, %v1672_v51, %v3255_v9  ;;  %v1607_v10 = vsel %vm171_vm0, %v4113_v59, %v4112_v8  ;;  %v4114_v12 = vld [vmem:[#allocation36_spill] sm:$0xff]  ;;  %v4120_v8 = vld [vmem:[#allocation11_spill] sm:$0xff] }
 0x192   : > { %1523 = vrot.lane.b32.xlu0 %v556_v29, %s2501_s9  ;;  %v1738_v62 = vsel %vm1736_vm6, %v1705_v58, %v3288_v24  ;;  %v4115_v58 = vld [vmem:[#allocation19_spill] sm:$0xff] }
 0x193   : > { %v1130_v31 = vpop.permute.xlu1 %1129  ;;  %v1544_v11 = vpop.permute.xlu0 %1543  ;;  %v1771_v44 = vsel %vm1769_vm7, %v1738_v62, %v3298_v34  ;;  %v1623_v62 = vsel %vm171_vm0, %v4116_v52, %v4115_v58  ;;  %v495_v52 = vld [vmem:[#allocation2 + $0xa8] sm:$0xff] }
 0x194   : > { %v1853_v53 = vsel %vm1835_vm8, %v1820_v25, %v1544_v11  ;;  %v1804_v16 = vsel %vm1802_vm9, %v1771_v44, %v1384_v30  ;;  %v542_v11 = vld [vmem:[#allocation2 + $0x159] sm:$0xff] }
 0x195   : > { %1173 = vrot.lane.b32.xlu1 %v571_v54, %s2498_s23  ;;  %2412 = vmatmul.mubr.msk.f32.vlgmr.msra.gmra.mrb[0].mxu1 %vm1880_vm10, %v1853_v53  ;;  %v525_v54 = vld [vmem:[#allocation2 + $0x91] sm:$0xff] }
 0x196   : > { %1143 = vrot.lane.b32.xlu0 %v556_v29, %s2498_s23  ;;  %v1640_v29 = vsel %vm1637_vm3, %v1607_v10, %v4114_v12 }
 0x197   : > { %v1512_v9 = vpop.permute.xlu1 %1511  ;;  %v3373_v17 = vpop.permute.xlu0 %1163 }
 0x198   : > { %v1837_v24 = vsel %vm1835_vm8, %v1804_v16, %v1512_v9 }
 0x199   : > { %1555 = vrot.lane.b32.xlu1 %v572_v23, %s2501_s9  ;;  %2388 = vmatmul.mubr.msk.f32.vlgmr.msra.gmra.mrb[0].mxu0 %vm1880_vm10, %v1837_v24  ;;  %v573_v24 = vld [vmem:[#allocation2 + $0x152] sm:$0xff] }
 0x19a   : > { %1269 = vrot.lane.b32.xlu0 %v493_v13, %s2499_s24  ;;  %v4117_v13 = vld [vmem:[#allocation21_spill] sm:$0xff] }
 0x19b   : > { %v3378_v34 = vpop.permute.xlu1 %1131  ;;  %v1290_v30 = vpop.permute.xlu0 %1289 }
 0x19d   : > { %1175 = vrot.lane.b32.xlu1 %v572_v23, %s2498_s23 }
 0x19e   : > { %1271 = vrot.lane.b32.xlu0 %v494_v18, %s2499_s24 }
 0x19f   : > { %v1258_v46 = vpop.permute.xlu1 %1257  ;;  %v1292_v47 = vpop.permute.xlu0 %1291 }
 0x1a1   : > { %1301 = vrot.lane.b32.xlu1 %v2977_v49, %s2499_s24  ;;  %v1673_v49 = vsel %vm1670_vm4, %v1640_v29, %v3126_v2 }
 0x1a2   : > { %1397 = vrot.lane.b32.xlu0 %v525_v54, %s2500_s6 }
 0x1a3   : > { %v1260_v37 = vpop.permute.xlu1 %1259  ;;  %v1418_v26 = vpop.permute.xlu0 %1417 }
 0x1a5   : > { %1303 = vrot.lane.b32.xlu1 %v2992_v19, %s2499_s24  ;;  %v1706_v19 = vsel %vm1703_vm5, %v1673_v49, %v3250_v61  ;;  %v1656_v61 = vsel %vm1637_vm3, %v1623_v62, %v3047_v35 }
 0x1a6   : > { %1017 = vrot.lane.b32.xlu0 %v525_v54, %s2497_s22  ;;  %v1739_v40 = vsel %vm1736_vm6, %v1706_v19, %v1130_v31  ;;  %v1689_v44 = vsel %vm1670_vm4, %v1656_v61, %v3190_v38  ;;  %v4118_v38 = vld [vmem:[#allocation27_spill] sm:$0xff]  ;;  %v558_v19 = vld [vmem:[#allocation2 + $0x9a] sm:$0xff]  ;;  %v511_v61 = vld [vmem:[#allocation2 + $0x168] sm:$0xff] }
 0x1a7   : > { %v1386_v33 = vpop.permute.xlu1 %1385  ;;  %v1388_v28 = vpop.permute.xlu0 %1387  ;;  %v1772_v51 = vsel %vm1769_vm7, %v1739_v40, %v1258_v46  ;;  %v1722_v23 = vsel %vm1703_vm5, %v1689_v44, %v3315_v41  ;;  %v1624_v18 = vsel %vm171_vm0, %v4118_v38, %v4117_v13 }
 0x1a8   : > { %v1805_v2 = vsel %vm1802_vm9, %v1772_v51, %v1386_v33  ;;  %v1755_v16 = vsel %vm1736_vm6, %v1722_v23, %v3345_v7  ;;  %v1657_v41 = vsel %vm1637_vm3, %v1624_v18, %v3061_v48  ;;  %v4122_v23 = vld [vmem:[#allocation4_spill] sm:$0xff] }
 0x1a9   : > { %1429 = vrot.lane.b32.xlu1 %v541_v6, %s2500_s6  ;;  %v1788_v35 = vsel %vm1769_vm7, %v1755_v16, %v1290_v30  ;;  %v1690_v30 = vsel %vm1670_vm4, %v1657_v41, %v3204_v55  ;;  %v1609_v16 = vsel %vm171_vm0, %v2845_v56, %v4122_v23 }
 0x1aa   : > { %1399 = vrot.lane.b32.xlu0 %v526_v50, %s2500_s6  ;;  %v1821_v46 = vsel %vm1802_vm9, %v1788_v35, %v1418_v26  ;;  %v4121_v26 = vld [vmem:[#allocation38_spill] sm:$0xff]  ;;  %v1723_v48 = vsel %vm1703_vm5, %v1690_v30, %v3329_v3 }
 0x1ab   : > { %v3400_v42 = vpop.permute.xlu1 %1037  ;;  %v1514_v25 = vpop.permute.xlu0 %1513  ;;  %v1756_v29 = vsel %vm1736_vm6, %v1723_v48, %v3373_v17 }
 0x1ac   : > { %v1838_v31 = vsel %vm1835_vm8, %v1805_v2, %v1514_v25  ;;  %v1789_v49 = vsel %vm1769_vm7, %v1756_v29, %v1292_v47  ;;  %v496_v2 = vld [vmem:[#allocation2 + $0xb0] sm:$0xff] }
 0x1ad   : > { %1049 = vrot.lane.b32.xlu1 %v541_v6, %s2497_s22  ;;  %2390 = vmatprep.mubr.msk.f32.mxu0 %vm1880_vm10, %v1838_v31  ;;  %v4119_v6 = vld [vmem:[#allocation5_spill] sm:$0xff] }
 0x1ae   : > { %1525 = vrot.lane.b32.xlu0 %v557_v36, %s2501_s9  ;;  %v1608_v59 = vsel %vm171_vm0, %v4120_v8, %v4119_v6  ;;  %v528_v6 = vld [vmem:[#allocation2 + $0xb1] sm:$0xff] }
 0x1af   : > { %v1420_v53 = vpop.permute.xlu1 %1419  ;;  %v3419_v9 = vpop.permute.xlu0 %1039  ;;  %v1641_v33 = vsel %vm1637_vm3, %v1608_v59, %v4121_v26  ;;  %v4124_v8 = vld [vmem:[#allocation20_spill] sm:$0xff] }
 0x1b0   : > { %v1674_v12 = vsel %vm1670_vm4, %v1641_v33, %v3140_v20  ;;  %v1822_v3 = vsel %vm1802_vm9, %v1789_v49, %v1420_v53  ;;  %v512_v53 = vld [vmem:[#allocation2 + $0x170] sm:$0xff] }
 0x1b1   : > { %1431 = vrot.lane.b32.xlu1 %v542_v11, %s2500_s6 }
 0x1b2   : > { %1019 = vrot.lane.b32.xlu0 %v526_v50, %s2497_s22  ;;  %v1707_v50 = vsel %vm1703_vm5, %v1674_v12, %v3263_v1  ;;  %v559_v12 = vld [vmem:[#allocation2 + $0xaa] sm:$0xff] }
 0x1b3   : > { %v1546_v54 = vpop.permute.xlu1 %1545  ;;  %v3436_v10 = vpop.permute.xlu0 %1165  ;;  %v1740_v40 = vsel %vm1736_vm6, %v1707_v50, %v3378_v34  ;;  %v574_v34 = vld [vmem:[#allocation2 + $0x15a] sm:$0xff]  ;;  %v544_v50 = vld [vmem:[#allocation2 + $0x171] sm:$0xff] }
 0x1b4   : > { %v1854_v7 = vsel %vm1835_vm8, %v1821_v46, %v1546_v54  ;;  %v1773_v20 = vsel %vm1769_vm7, %v1740_v40, %v1260_v37  ;;  %v543_v54 = vld [vmem:[#allocation2 + $0x169] sm:$0xff] }
 0x1b5   : > { %1557 = vrot.lane.b32.xlu1 %v573_v24, %s2501_s9  ;;  %2414 = vmatprep.mubr.msk.f32.mxu1 %vm1880_vm10, %v1854_v7 }
 0x1b6   : > { %1145 = vrot.lane.b32.xlu0 %v557_v36, %s2498_s23  ;;  %v1806_v36 = vsel %vm1802_vm9, %v1773_v20, %v1388_v28  ;;  %v575_v20 = vld [vmem:[#allocation2 + $0x16a] sm:$0xff] }
 0x1b7   : > { %v1134_v55 = vpop.permute.xlu1 %1133  ;;  %v1548_v51 = vpop.permute.xlu0 %1547 }
 0x1b8   : > { %v1855_v17 = vsel %vm1835_vm8, %v1822_v3, %v1548_v51 }
 0x1b9   : > { %1051 = vrot.lane.b32.xlu1 %v542_v11, %s2497_s22  ;;  %2415 = vmatmul.mubr.msk.f32.gmra.mrb[2].mxu1 %vm1880_vm10, %v1855_v17  ;;  %v527_v11 = vld [vmem:[#allocation2 + $0xa9] sm:$0xff] }
 0x1ba   : > { %1527 = vrot.lane.b32.xlu0 %v558_v19, %s2501_s9 }
 0x1bb   : > { %v1516_v1 = vpop.permute.xlu1 %1515  ;;  %v3462_v58 = vpop.permute.xlu0 %1167 }
 0x1bc   : > { %v1839_v47 = vsel %vm1835_vm8, %v1806_v36, %v1516_v1  ;;  %v4126_v1 = vld [vmem:[#allocation24_spill] sm:$0xff] }
 0x1bd   : > { %1177 = vrot.lane.b32.xlu1 %v573_v24, %s2498_s23  ;;  %2391 = vmatmul.mubr.msk.f32.gmra.mrb[2].mxu0 %vm1880_vm10, %v1839_v47  ;;  %v4123_v24 = vld [vmem:[#allocation37_spill] sm:$0xff] }
 0x1be   : > { %1147 = vrot.lane.b32.xlu0 %v558_v19, %s2498_s23  ;;  %v1642_v13 = vsel %vm1637_vm3, %v1609_v16, %v4123_v24  ;;  %v498_v16 = vld [vmem:[#allocation2 + $0xc8] sm:$0xff]  ;;  %v513_v24 = vld [vmem:[#allocation2 + $0x180] sm:$0xff] }
 0x1bf   : > { %v1136_v37 = vpop.permute.xlu1 %1135  ;;  %v1294_v62 = vpop.permute.xlu0 %1293  ;;  %v1675_v38 = vsel %vm1670_vm4, %v1642_v13, %v3134_v21  ;;  %v1625_v21 = vsel %vm171_vm0, %v2929_v60, %v4124_v8 }
 0x1c0   : > { %v1708_v46 = vsel %vm1703_vm5, %v1675_v38, %v3257_v43  ;;  %v1658_v43 = vsel %vm1637_vm3, %v1625_v21, %v3055_v27  ;;  %v529_v38 = vld [vmem:[#allocation2 + $0xc1] sm:$0xff] }
 0x1c1   : > { %1559 = vrot.lane.b32.xlu1 %v574_v34, %s2501_s9  ;;  %v1741_v41 = vsel %vm1736_vm6, %v1708_v46, %v1134_v55  ;;  %v1691_v33 = vsel %vm1670_vm4, %v1658_v43, %v3198_v0  ;;  %v4125_v0 = vld [vmem:[#allocation8_spill] sm:$0xff]  ;;  %v514_v46 = vld [vmem:[#allocation2 + $0x188] sm:$0xff] }
 0x1c2   : > { %1273 = vrot.lane.b32.xlu0 %v495_v52, %s2499_s24  ;;  %v1724_v60 = vsel %vm1703_vm5, %v1691_v33, %v3400_v42  ;;  %v1610_v49 = vsel %vm171_vm0, %v2863_v63, %v4125_v0  ;;  %v545_v43 = vld [vmem:[#allocation2 + $0x181] sm:$0xff] }
 0x1c3   : > { %v1262_v28 = vpop.permute.xlu1 %1261  ;;  %v3469_v25 = vpop.permute.xlu0 %1295  ;;  %v1757_v29 = vsel %vm1736_vm6, %v1724_v60, %v3436_v10  ;;  %v1643_v40 = vsel %vm1637_vm3, %v1610_v49, %v3006_v39  ;;  %v530_v60 = vld [vmem:[#allocation2 + $0xc9] sm:$0xff] }
 0x1c4   : > { %v1774_v7 = vsel %vm1769_vm7, %v1741_v41, %v1262_v28  ;;  %v1790_v27 = vsel %vm1769_vm7, %v1757_v29, %v1294_v62  ;;  %v1676_v3 = vsel %vm1670_vm4, %v1643_v40, %v3148_v4  ;;  %v1626_v4 = vsel %vm171_vm0, %v2947_v14, %v4126_v1  ;;  %v560_v28 = vld [vmem:[#allocation2 + $0xb2] sm:$0xff]  ;;  %v4127_v41 = vld [vmem:[#allocation6_spill] sm:$0xff] }
 0x1c5   : > { %1179 = vrot.lane.b32.xlu1 %v574_v34, %s2498_s23  ;;  %v1709_v63 = vsel %vm1703_vm5, %v1676_v3, %v3270_v57  ;;  %v1659_v57 = vsel %vm1637_vm3, %v1626_v4, %v3075_v5  ;;  %v4131_v49 = vld [vmem:[#allocation67_spill] sm:$0xff] }
 0x1c6   : > { %1275 = vrot.lane.b32.xlu0 %v496_v2, %s2499_s24  ;;  %v1742_v17 = vsel %vm1736_vm6, %v1709_v63, %v1136_v37  ;;  %v1692_v52 = vsel %vm1670_vm4, %v1659_v57, %v3212_v22 }
 0x1c7   : > { %v1264_v31 = vpop.permute.xlu1 %1263  ;;  %v1422_v44 = vpop.permute.xlu0 %1421  ;;  %v1725_v14 = vsel %vm1703_vm5, %v1692_v52, %v3419_v9  ;;  %v576_v9 = vld [vmem:[#allocation2 + $0x172] sm:$0xff] }
 0x1c8   : > { %v1823_v19 = vsel %vm1802_vm9, %v1790_v27, %v1422_v44  ;;  %v1775_v39 = vsel %vm1769_vm7, %v1742_v17, %v1264_v31  ;;  %v1758_v2 = vsel %vm1736_vm6, %v1725_v14, %v3462_v58  ;;  %v2467_v17 = vld [vmem:[#allocation2 + $0x50] sm:$0xff] }
 0x1c9   : > { %1305 = vrot.lane.b32.xlu1 %v511_v61, %s2499_s24  ;;  %v1791_v5 = vsel %vm1769_vm7, %v1758_v2, %v3469_v25 }
 0x1ca   : > { %1401 = vrot.lane.b32.xlu0 %v527_v11, %s2500_s6 }
 0x1cb   : > { %v1390_v35 = vpop.permute.xlu1 %1389  ;;  %v1392_v18 = vpop.permute.xlu0 %1391 }
 0x1cc   : > { %v1807_v59 = vsel %vm1802_vm9, %v1774_v7, %v1390_v35  ;;  %v1808_v47 = vsel %vm1802_vm9, %v1775_v39, %v1392_v18  ;;  %v4132_v39 = vld [vmem:[#allocation10_spill] sm:$0xff] }
 0x1cd   : > { %1307 = vrot.lane.b32.xlu1 %v512_v53, %s2499_s24  ;;  %v497_v53 = vld [vmem:[#allocation2 + $0xc0] sm:$0xff]  ;;  %v1612_v1 = vsel %vm171_vm0, %v2467_v17, %v4132_v39 }
 0x1ce   : > { %1021 = vrot.lane.b32.xlu0 %v527_v11, %s2497_s22 }
 0x1cf   : > { %v3487_v56 = vpop.permute.xlu1 %1041  ;;  %v1518_v30 = vpop.permute.xlu0 %1517 }
 0x1d0   : > { %v1840_v26 = vsel %vm1835_vm8, %v1807_v59, %v1518_v30 }
 0x1d1   : > { %1433 = vrot.lane.b32.xlu1 %v543_v54, %s2500_s6  ;;  %2393 = vmatprep.mubr.msk.f32.mxu0 %vm1880_vm10, %v1840_v26 }
 0x1d2   : > { %1403 = vrot.lane.b32.xlu0 %v528_v6, %s2500_s6 }
 0x1d3   : > { %v1424_v48 = vpop.permute.xlu1 %1423  ;;  %v3506_v55 = vpop.permute.xlu0 %1011 }
 0x1d4   : > { %v1824_v22 = vsel %vm1802_vm9, %v1791_v5, %v1424_v48 }
 0x1d5   : > { %1053 = vrot.lane.b32.xlu1 %v543_v54, %s2497_s22  ;;  %v2466_v54 = vld [vmem:[#allocation2 + $0x48] sm:$0xff] }
 0x1d6   : > { %1529 = vrot.lane.b32.xlu0 %v559_v12, %s2501_s9  ;;  %v1611_v7 = vsel %vm171_vm0, %v2466_v54, %v4127_v41 }
 0x1d7   : > { %v1550_v42 = vpop.permute.xlu1 %1549  ;;  %v1138_v51 = vpop.permute.xlu0 %1137  ;;  %v1644_v8 = vsel %vm1637_vm3, %v1611_v7, %v3001_v45  ;;  %v4128_v45 = vld [vmem:[#allocation22_spill] sm:$0xff] }
 0x1d8   : > { %v1856_v10 = vsel %vm1835_vm8, %v1823_v19, %v1550_v42  ;;  %v1677_v21 = vsel %vm1670_vm4, %v1644_v8, %v3142_v32 }
 0x1d9   : > { %1435 = vrot.lane.b32.xlu1 %v544_v50, %s2500_s6  ;;  %2417 = vmatprep.mubr.msk.f32.mxu1 %vm1880_vm10, %v1856_v10  ;;  %v1710_v30 = vsel %vm1703_vm5, %v1677_v21, %v3265_v15  ;;  %v4130_v15 = vld [vmem:[#allocation48_spill] sm:$0xff]  ;;  %v561_v10 = vld [vmem:[#allocation2 + $0xc2] sm:$0xff] }
 0x1da   : > { %1023 = vrot.lane.b32.xlu0 %v528_v6, %s2497_s22  ;;  %v1743_v26 = vsel %vm1736_vm6, %v1710_v30, %v1138_v51 }
 0x1db   : > { %v3526_v36 = vpop.permute.xlu1 %1043  ;;  %v1520_v34 = vpop.permute.xlu0 %1519 }
 0x1dc   : > { %v1841_v37 = vsel %vm1835_vm8, %v1808_v47, %v1520_v34 }
 0x1dd   : > { %1561 = vrot.lane.b32.xlu1 %v575_v20, %s2501_s9  ;;  %2394 = vmatmul.mubr.msk.f32.gmra.mrb[4].mxu0 %vm1880_vm10, %v1841_v37  ;;  %v4134_v37 = vld [vmem:[#allocation59_spill] sm:$0xff] }
 0x1de   : > { %1149 = vrot.lane.b32.xlu0 %v559_v12, %s2498_s23  ;;  %v4129_v12 = vld [vmem:[#allocation29_spill] sm:$0xff] }
 0x1df   : > { %v1170_v62 = vpop.permute.xlu1 %1169  ;;  %v3545_v61 = vpop.permute.xlu0 %1139  ;;  %v1627_v32 = vsel %vm171_vm0, %v4129_v12, %v4128_v45  ;;  %v531_v45 = vld [vmem:[#allocation2 + $0xd9] sm:$0xff] }
 0x1e1   : > { %1055 = vrot.lane.b32.xlu1 %v544_v50, %s2497_s22  ;;  %v1660_v50 = vsel %vm1637_vm3, %v1627_v32, %v4130_v15  ;;  %v516_v32 = vld [vmem:[#allocation2 + $0x1a0] sm:$0xff] }
 0x1e2   : > { %1531 = vrot.lane.b32.xlu0 %v560_v28, %s2501_s9  ;;  %v1693_v19 = vsel %vm1670_vm4, %v1660_v50, %v4131_v49 }
 0x1e3   : > { %v1552_v31 = vpop.permute.xlu1 %1551  ;;  %v1266_v44 = vpop.permute.xlu0 %1265  ;;  %v1726_v40 = vsel %vm1703_vm5, %v1693_v19, %v3487_v56  ;;  %v4133_v56 = vld [vmem:[#allocation40_spill] sm:$0xff]  ;;  %v532_v19 = vld [vmem:[#allocation2 + $0xe1] sm:$0xff] }
 0x1e4   : > { %v1857_v11 = vsel %vm1835_vm8, %v1824_v22, %v1552_v31  ;;  %v1776_v48 = vsel %vm1769_vm7, %v1743_v26, %v1266_v44  ;;  %v1759_v3 = vsel %vm1736_vm6, %v1726_v40, %v1170_v62  ;;  %v1645_v34 = vsel %vm1637_vm3, %v1612_v1, %v4133_v56  ;;  %v2468_v31 = vld [vmem:[#allocation2 + $0x110] sm:$0xff]  ;;  %v563_v1 = vld [vmem:[#allocation2 + $0xda] sm:$0xff] }
 0x1e5   : > { %1181 = vrot.lane.b32.xlu1 %v575_v20, %s2498_s23  ;;  %2418 = vmatmul.mubr.msk.f32.gmra.mrb[4].mxu1 %vm1880_vm10, %v1857_v11  ;;  %v546_v20 = vld [vmem:[#allocation2 + $0x189] sm:$0xff]  ;;  %v1678_v52 = vsel %vm1670_vm4, %v1645_v34, %v4134_v37 }
 0x1e6   : > { %1151 = vrot.lane.b32.xlu0 %v560_v28, %s2498_s23  ;;  %v1711_v14 = vsel %vm1703_vm5, %v1678_v52, %v3506_v55  ;;  %v577_v28 = vld [vmem:[#allocation2 + $0x182] sm:$0xff] }
 0x1e7   : > { %v3556_v58 = vpop.permute.xlu1 %1171  ;;  %v3558_v23 = vpop.permute.xlu0 %1267  ;;  %v1744_v2 = vsel %vm1736_vm6, %v1711_v14, %v3545_v61  ;;  %v4135_v11 = vld [vmem:[#allocation26_spill] sm:$0xff]  ;;  %v4143_v14 = vld [vmem:[#allocation68_spill] sm:$0xff] }
 0x1e8   : > { %v1777_v22 = vsel %vm1769_vm7, %v1744_v2, %v3558_v23  ;;  %v1628_v44 = vsel %vm171_vm0, %v2468_v31, %v4135_v11  ;;  %v4136_v55 = vld [vmem:[#allocation50_spill] sm:$0xff] }
 0x1e9   : > { %1563 = vrot.lane.b32.xlu1 %v576_v9, %s2501_s9  ;;  %v564_v31 = vld [vmem:[#allocation2 + $0xe2] sm:$0xff] }
 0x1ea   : > { %1277 = vrot.lane.b32.xlu0 %v497_v53, %s2499_s24 }
 0x1eb   : > { %v1298_v25 = vpop.permute.xlu1 %1297  ;;  %v1394_v35 = vpop.permute.xlu0 %1393 }
 0x1ec   : > { %v1809_v29 = vsel %vm1802_vm9, %v1776_v48, %v1394_v35  ;;  %v1792_v63 = vsel %vm1769_vm7, %v1759_v3, %v1298_v25  ;;  %v1661_v25 = vsel %vm1637_vm3, %v1628_v44, %v4136_v55  ;;  %v515_v48 = vld [vmem:[#allocation2 + $0x198] sm:$0xff]  ;;  %v2471_v55 = vld [vmem:[#allocation2 + $0x68] sm:$0xff] }
 0x1ed   : > { %1183 = vrot.lane.b32.xlu1 %v576_v9, %s2498_s23 }
 0x1ee   : > { %1279 = vrot.lane.b32.xlu0 %v498_v16, %s2499_s24  ;;  %v4137_v16 = vld [vmem:[#allocation69_spill] sm:$0xff] }
 0x1ef   : > { %v3564_v13 = vpop.permute.xlu1 %1299  ;;  %v3566_v18 = vpop.permute.xlu0 %1013  ;;  %v1694_v35 = vsel %vm1670_vm4, %v1661_v25, %v4137_v16  ;;  %v4144_v25 = vld [vmem:[#allocation13_spill] sm:$0xff] }
 0x1f1   : > { %1309 = vrot.lane.b32.xlu1 %v513_v24, %s2499_s24  ;;  %v1727_v24 = vsel %vm1703_vm5, %v1694_v35, %v3526_v36  ;;  %v578_v36 = vld [vmem:[#allocation2 + $0x18a] sm:$0xff] }
 0x1f2   : > { %1405 = vrot.lane.b32.xlu0 %v529_v38, %s2500_s6  ;;  %v4145_v35 = vld [vmem:[#allocation42_spill] sm:$0xff] }
 0x1f3   : > { %v1426_v6 = vpop.permute.xlu1 %1425  ;;  %v1396_v59 = vpop.permute.xlu0 %1395 }
 0x1f4   : > { %v1825_v4 = vsel %vm1802_vm9, %v1792_v63, %v1426_v6  ;;  %v1810_v9 = vsel %vm1802_vm9, %v1777_v22, %v1396_v59  ;;  %v499_v59 = vld [vmem:[#allocation2 + $0xd8] sm:$0xff] }
 0x1f5   : > { %1311 = vrot.lane.b32.xlu1 %v514_v46, %s2499_s24  ;;  %v1760_v46 = vsel %vm1736_vm6, %v1727_v24, %v3556_v58  ;;  %v547_v63 = vld [vmem:[#allocation2 + $0x199] sm:$0xff] }
 0x1f6   : > { %1025 = vrot.lane.b32.xlu0 %v529_v38, %s2497_s22  ;;  %v562_v38 = vld [vmem:[#allocation2 + $0xca] sm:$0xff]  ;;  %v1793_v41 = vsel %vm1769_vm7, %v1760_v46, %v3564_v13 }
 0x1f7   : > { %v3581_v33 = vpop.permute.xlu1 %1045  ;;  %v1522_v27 = vpop.permute.xlu0 %1521 }
 0x1f8   : > { %v1842_v0 = vsel %vm1835_vm8, %v1809_v29, %v1522_v27  ;;  %v2469_v29 = vld [vmem:[#allocation2 + $0x60] sm:$0xff] }
 0x1f9   : > { %1437 = vrot.lane.b32.xlu1 %v545_v43, %s2500_s6  ;;  %2396 = vmatprep.mubr.msk.f32.mxu0 %vm1880_vm10, %v1842_v0  ;;  %v4138_v27 = vld [vmem:[#allocation9_spill] sm:$0xff]  ;;  %v4139_v0 = vld [vmem:[#allocation39_spill] sm:$0xff] }
 0x1fa   : > { %1407 = vrot.lane.b32.xlu0 %v530_v60, %s2500_s6  ;;  %v1613_v15 = vsel %vm171_vm0, %v2469_v29, %v4138_v27 }
 0x1fb   : > { %v1428_v42 = vpop.permute.xlu1 %1427  ;;  %v3599_v51 = vpop.permute.xlu0 %1015  ;;  %v1646_v49 = vsel %vm1637_vm3, %v1613_v15, %v4139_v0 }
 0x1fc   : > { %v1826_v7 = vsel %vm1802_vm9, %v1793_v41, %v1428_v42  ;;  %v4140_v42 = vld [vmem:[#allocation58_spill] sm:$0xff] }
 0x1fd   : > { %1057 = vrot.lane.b32.xlu1 %v545_v43, %s2497_s22  ;;  %v500_v43 = vld [vmem:[#allocation2 + $0xe0] sm:$0xff]  ;;  %v1679_v40 = vsel %vm1670_vm4, %v1646_v49, %v4140_v42 }
 0x1fe   : > { %1533 = vrot.lane.b32.xlu0 %v561_v10, %s2501_s9  ;;  %v1712_v3 = vsel %vm1703_vm5, %v1679_v40, %v3566_v18  ;;  %v4142_v18 = vld [vmem:[#allocation49_spill] sm:$0xff] }
 0x1ff   : > { %v1554_v47 = vpop.permute.xlu1 %1553  ;;  %v3612_v62 = vpop.permute.xlu0 %1141 }
 0x200   : > { %v1858_v57 = vsel %vm1835_vm8, %v1825_v4, %v1554_v47  ;;  %v2470_v4 = vld [vmem:[#allocation2 + $0x120] sm:$0xff] }
 0x201   : > { %1439 = vrot.lane.b32.xlu1 %v546_v20, %s2500_s6  ;;  %2420 = vmatprep.mubr.msk.f32.mxu1 %vm1880_vm10, %v1858_v57  ;;  %v4141_v47 = vld [vmem:[#allocation25_spill] sm:$0xff] }
 0x202   : > { %1027 = vrot.lane.b32.xlu0 %v530_v60, %s2497_s22  ;;  %v1629_v56 = vsel %vm171_vm0, %v2470_v4, %v4141_v47  ;;  %v4151_v47 = vld [vmem:[#allocation41_spill] sm:$0xff] }
 0x203   : > { %v3621_v5 = vpop.permute.xlu1 %1047  ;;  %v1662_v37 = vsel %vm1637_vm3, %v1629_v56, %v4142_v18 }
 0x204   : > { %v1524_v53 = vpop.permute.xlu0 %1523 }
 0x205   : > { %1565 = vrot.lane.b32.xlu1 %v577_v28, %s2501_s9  ;;  %v1843_v61 = vsel %vm1835_vm8, %v1810_v9, %v1524_v53  ;;  %v579_v53 = vld [vmem:[#allocation2 + $0x19a] sm:$0xff] }
 0x206   : > { %1153 = vrot.lane.b32.xlu0 %v561_v10, %s2498_s23  ;;  %2397 = vmatmul.mubr.msk.f32.gmra.mrb[6].mxu0 %vm1880_vm10, %v1843_v61  ;;  %v1614_v61 = vsel %vm171_vm0, %v2471_v55, %v4144_v25  ;;  %v4155_v25 = vld [vmem:[#allocation70_spill] sm:$0xff] }
 0x207   : > { %v3635_v23 = vpop.permute.xlu1 %1173  ;;  %v1647_v24 = vsel %vm1637_vm3, %v1614_v61, %v4145_v35 }
 0x208   : > { %v3642_v54 = vpop.permute.xlu0 %1143 }
 0x209   : > { %1059 = vrot.lane.b32.xlu1 %v546_v20, %s2497_s22  ;;  %v1745_v20 = vsel %vm1736_vm6, %v1712_v3, %v3612_v62  ;;  %v548_v62 = vld [vmem:[#allocation2 + $0x1a1] sm:$0xff] }
 0x20a   : > { %1535 = vrot.lane.b32.xlu0 %v562_v38, %s2501_s9 }
 0x20b   : > { %v1556_v6 = vpop.permute.xlu1 %1555 }
 0x20c   : > { %v1859_v8 = vsel %vm1835_vm8, %v1826_v7, %v1556_v6  ;;  %v1270_v21 = vpop.permute.xlu0 %1269  ;;  %v580_v6 = vld [vmem:[#allocation2 + $0x1a2] sm:$0xff] }
 0x20d   : > { %1185 = vrot.lane.b32.xlu1 %v577_v28, %s2498_s23  ;;  %2421 = vmatmul.mubr.msk.f32.gmra.mrb[6].mxu1 %vm1880_vm10, %v1859_v8  ;;  %v1778_v39 = vsel %vm1769_vm7, %v1745_v20, %v1270_v21  ;;  %v1695_v28 = vsel %vm1670_vm4, %v1662_v37, %v4143_v14 }
 0x20e   : > { %1155 = vrot.lane.b32.xlu0 %v562_v38, %s2498_s23  ;;  %v1728_v22 = vsel %vm1703_vm5, %v1695_v28, %v3581_v33  ;;  %v4146_v38 = vld [vmem:[#allocation61_spill] sm:$0xff]  ;;  %v2474_v28 = vld [vmem:[#allocation2 + $0x138] sm:$0xff] }
 0x20f   : > { %v3653_v58 = vpop.permute.xlu1 %1175  ;;  %v1761_v11 = vsel %vm1736_vm6, %v1728_v22, %v3635_v23  ;;  %v1680_v46 = vsel %vm1670_vm4, %v1647_v24, %v4146_v38  ;;  %v4156_v38 = vld [vmem:[#allocation15_spill] sm:$0xff] }
 0x210   : > { %v3655_v30 = vpop.permute.xlu0 %1271  ;;  %v1713_v7 = vsel %vm1703_vm5, %v1680_v46, %v3599_v51 }
 0x211   : > { %1567 = vrot.lane.b32.xlu1 %v578_v36, %s2501_s9  ;;  %v1746_v8 = vsel %vm1736_vm6, %v1713_v7, %v3642_v54  ;;  %v4149_v54 = vld [vmem:[#allocation71_spill] sm:$0xff] }
 0x212   : > { %1281 = vrot.lane.b32.xlu0 %v499_v59, %s2499_s24  ;;  %v2472_v59 = vld [vmem:[#allocation2 + $0x128] sm:$0xff] }
 0x213   : > { %v1302_v13 = vpop.permute.xlu1 %1301 }
 0x214   : > { %v1398_v26 = vpop.permute.xlu0 %1397  ;;  %v1794_v9 = vsel %vm1769_vm7, %v1761_v11, %v1302_v13  ;;  %v4147_v13 = vld [vmem:[#allocation30_spill] sm:$0xff] }
 0x215   : > { %1187 = vrot.lane.b32.xlu1 %v578_v36, %s2498_s23  ;;  %v1811_v34 = vsel %vm1802_vm9, %v1778_v39, %v1398_v26  ;;  %v1779_v36 = vsel %vm1769_vm7, %v1746_v8, %v3655_v30 }
 0x216   : > { %1283 = vrot.lane.b32.xlu0 %v500_v43, %s2499_s24  ;;  %v1630_v43 = vsel %vm171_vm0, %v2472_v59, %v4147_v13  ;;  %v4158_v59 = vld [vmem:[#allocation63_spill] sm:$0xff] }
 0x217   : > { %v3661_v60 = vpop.permute.xlu1 %1303 }
 0x218   : > { %v3663_v12 = vpop.permute.xlu0 %1017 }
 0x219   : > { %1313 = vrot.lane.b32.xlu1 %v515_v48, %s2499_s24 }
 0x21a   : > { %1409 = vrot.lane.b32.xlu0 %v531_v45, %s2500_s6  ;;  %v4148_v45 = vld [vmem:[#allocation52_spill] sm:$0xff] }
 0x21b   : > { %v1430_v50 = vpop.permute.xlu1 %1429  ;;  %v1663_v51 = vsel %vm1637_vm3, %v1630_v43, %v4148_v45 }
 0x21c   : > { %v1400_v10 = vpop.permute.xlu0 %1399  ;;  %v1827_v16 = vsel %vm1802_vm9, %v1794_v9, %v1430_v50  ;;  %v1696_v29 = vsel %vm1670_vm4, %v1663_v51, %v4149_v54  ;;  %v4154_v9 = vld [vmem:[#allocation51_spill] sm:$0xff]  ;;  %v2476_v51 = vld [vmem:[#allocation2 + $0x140] sm:$0xff] }
 0x21d   : > { %1315 = vrot.lane.b32.xlu1 %v516_v32, %s2499_s24  ;;  %v1812_v26 = vsel %vm1802_vm9, %v1779_v36, %v1400_v10  ;;  %v1729_v30 = vsel %vm1703_vm5, %v1696_v29, %v3621_v5 }
 0x21e   : > { %1411 = vrot.lane.b32.xlu0 %v532_v19, %s2500_s6  ;;  %v1762_v15 = vsel %vm1736_vm6, %v1729_v30, %v3653_v58  ;;  %v2473_v58 = vld [vmem:[#allocation2 + $0x78] sm:$0xff]  ;;  %v4160_v30 = vld [vmem:[#allocation54_spill] sm:$0xff] }
 0x21f   : > { %v3679_v17 = vpop.permute.xlu1 %1049  ;;  %v1795_v0 = vsel %vm1769_vm7, %v1762_v15, %v3661_v60 }
 0x220   : > { %v1526_v57 = vpop.permute.xlu0 %1525 }
 0x221   : > { %1441 = vrot.lane.b32.xlu1 %v547_v63, %s2500_s6  ;;  %v1844_v52 = vsel %vm1835_vm8, %v1811_v34, %v1526_v57  ;;  %v4152_v34 = vld [vmem:[#allocation60_spill] sm:$0xff] }
 0x222   : > { %1537 = vrot.lane.b32.xlu0 %v563_v1, %s2501_s9  ;;  %2399 = vmatprep.mubr.msk.f32.mxu0 %vm1880_vm10, %v1844_v52  ;;  %v4150_v1 = vld [vmem:[#allocation12_spill] sm:$0xff] }
 0x223   : > { %v1432_v2 = vpop.permute.xlu1 %1431  ;;  %v1615_v4 = vsel %vm171_vm0, %v2473_v58, %v4150_v1 }
 0x224   : > { %v3697_v44 = vpop.permute.xlu0 %1019  ;;  %v1828_v49 = vsel %vm1802_vm9, %v1795_v0, %v1432_v2  ;;  %v1648_v56 = vsel %vm1637_vm3, %v1615_v4, %v4151_v47  ;;  %v4153_v2 = vld [vmem:[#allocation28_spill] sm:$0xff] }
 0x225   : > { %1443 = vrot.lane.b32.xlu1 %v548_v62, %s2500_s6  ;;  %v1681_v57 = vsel %vm1670_vm4, %v1648_v56, %v4152_v34  ;;  %v1631_v22 = vsel %vm171_vm0, %v2474_v28, %v4153_v2  ;;  %v4163_v2 = vld [vmem:[#allocation43_spill] sm:$0xff] }
 0x226   : > { %1539 = vrot.lane.b32.xlu0 %v564_v31, %s2501_s9  ;;  %v1714_v37 = vsel %vm1703_vm5, %v1681_v57, %v3663_v12  ;;  %v2477_v57 = vld [vmem:[#allocation2 + $0x90] sm:$0xff] }
 0x227   : > { %v1558_v33 = vpop.permute.xlu1 %1557 }
 0x228   : > { %v1860_v23 = vsel %vm1835_vm8, %v1827_v16, %v1558_v33  ;;  %v1146_v41 = vpop.permute.xlu0 %1145 }
 0x229   : > { %1569 = vrot.lane.b32.xlu1 %v579_v53, %s2501_s9  ;;  %2423 = vmatprep.mubr.msk.f32.mxu1 %vm1880_vm10, %v1860_v23  ;;  %v1747_v52 = vsel %vm1736_vm6, %v1714_v37, %v1146_v41  ;;  %v1664_v53 = vsel %vm1637_vm3, %v1631_v22, %v4154_v9  ;;  %v2475_v23 = vld [vmem:[#allocation2 + $0x80] sm:$0xff]  ;;  %v4164_v9 = vld [vmem:[#allocation62_spill] sm:$0xff] }
 0x22a   : > { %v1697_v12 = vsel %vm1670_vm4, %v1664_v53, %v4155_v25  ;;  %v1616_v46 = vsel %vm171_vm0, %v2475_v23, %v4156_v38  ;;  %v2478_v38 = vld [vmem:[#allocation2 + $0x150] sm:$0xff] }
 0x22b   : > { %v3716_v21 = vpop.permute.xlu1 %1051  ;;  %v1730_v16 = vsel %vm1703_vm5, %v1697_v12, %v3679_v17 }
 0x22c   : > { %v1528_v48 = vpop.permute.xlu0 %1527 }
 0x22d   : > { %1571 = vrot.lane.b32.xlu1 %v580_v6, %s2501_s9  ;;  %v1845_v32 = vsel %vm1835_vm8, %v1812_v26, %v1528_v48  ;;  %v4157_v6 = vld [vmem:[#allocation44_spill] sm:$0xff] }
 0x22e   : > { %2400 = vmatmul.mubr.msk.f32.gmra.mrb[8].mxu0 %vm1880_vm10, %v1845_v32  ;;  %v1649_v8 = vsel %vm1637_vm3, %v1616_v46, %v4157_v6  ;;  %v4159_v32 = vld [vmem:[#allocation32_spill] sm:$0xff]  ;;  %v4165_v46 = vld [vmem:[#allocation31_spill] sm:$0xff]  ;;  %v4166_v6 = vld [vmem:[#allocation53_spill] sm:$0xff] }
 0x22f   : > { %v1178_v27 = vpop.permute.xlu1 %1177  ;;  %v1682_v17 = vsel %vm1670_vm4, %v1649_v8, %v4158_v59  ;;  %v1632_v54 = vsel %vm171_vm0, %v2476_v51, %v4159_v32  ;;  %v4167_v59 = vld [vmem:[#allocation72_spill] sm:$0xff] }
 0x230   : > { %v1148_v50 = vpop.permute.xlu0 %1147  ;;  %v1763_v33 = vsel %vm1736_vm6, %v1730_v16, %v1178_v27  ;;  %v1715_v43 = vsel %vm1703_vm5, %v1682_v17, %v3697_v44  ;;  %v1665_v15 = vsel %vm1637_vm3, %v1632_v54, %v4160_v30  ;;  %v2479_v32 = vld [vmem:[#allocation2 + $0x98] sm:$0xff]  ;;  %v4168_v54 = vld [vmem:[#allocation17_spill] sm:$0xff] }
 0x231   : > { %v1748_v26 = vsel %vm1736_vm6, %v1715_v43, %v1148_v50 }
 0x233   : > { %v1560_v19 = vpop.permute.xlu1 %1559 }
 0x234   : > { %v1861_v42 = vsel %vm1835_vm8, %v1828_v49, %v1560_v19  ;;  %v1274_v40 = vpop.permute.xlu0 %1273  ;;  %v4161_v49 = vld [vmem:[#allocation73_spill] sm:$0xff] }
 0x235   : > { %2424 = vmatmul.mubr.msk.f32.gmra.mrb[8].mxu1 %vm1880_vm10, %v1861_v42  ;;  %v1780_v14 = vsel %vm1769_vm7, %v1747_v52, %v1274_v40  ;;  %v1698_v44 = vsel %vm1670_vm4, %v1665_v15, %v4161_v49  ;;  %v4169_v15 = vld [vmem:[#allocation46_spill] sm:$0xff] }
 0x236   : > { %v1731_v19 = vsel %vm1703_vm5, %v1698_v44, %v3716_v21  ;;  %v4170_v44 = vld [vmem:[#allocation65_spill] sm:$0xff] }
 0x237   : > { %v1180_v10 = vpop.permute.xlu1 %1179 }
 0x238   : > { %v1276_v3 = vpop.permute.xlu0 %1275  ;;  %v1764_v42 = vsel %vm1736_vm6, %v1731_v19, %v1180_v10  ;;  %v3806_v10 = vld [vmem:[%s4030_s2] ss:$0 sm:$0xff] }
 0x239   : > { %v1781_v45 = vsel %vm1769_vm7, %v1748_v26, %v1276_v3 }
 0x23b   : > { %v1306_v63 = vpop.permute.xlu1 %1305 }
 0x23c   : > { %v1402_v20 = vpop.permute.xlu0 %1401  ;;  %v1796_v24 = vsel %vm1769_vm7, %v1763_v33, %v1306_v63 }
 0x23d   : > { %v1813_v31 = vsel %vm1802_vm9, %v1780_v14, %v1402_v20 }
 0x23f   : > { %v1308_v5 = vpop.permute.xlu1 %1307 }
 0x240   : > { %v3739_v39 = vpop.permute.xlu0 %1021  ;;  %v1797_v3 = vsel %vm1769_vm7, %v1764_v42, %v1308_v5 }
 0x243   : > { %v1434_v60 = vpop.permute.xlu1 %1433 }
 0x244   : > { %v1404_v18 = vpop.permute.xlu0 %1403  ;;  %v1829_v41 = vsel %vm1802_vm9, %v1796_v24, %v1434_v60 }
 0x245   : > { %v1814_v29 = vsel %vm1802_vm9, %v1781_v45, %v1404_v18  ;;  %v4162_v18 = vld [vmem:[#allocation14_spill] sm:$0xff] }
 0x246   : > { %v1617_v37 = vsel %vm171_vm0, %v2477_v57, %v4162_v18 }
 0x247   : > { %v3750_v62 = vpop.permute.xlu1 %1053  ;;  %v1650_v22 = vsel %vm1637_vm3, %v1617_v37, %v4163_v2  ;;  %v4173_v37 = vld [vmem:[#allocation75_spill] sm:$0xff] }
 0x248   : > { %v1530_v11 = vpop.permute.xlu0 %1529  ;;  %v1683_v53 = vsel %vm1670_vm4, %v1650_v22, %v4164_v9 }
 0x249   : > { %v1846_v55 = vsel %vm1835_vm8, %v1813_v31, %v1530_v11 }
 0x24a   : > { %2402 = vmatprep.mubr.msk.f32.mxu0 %vm1880_vm10, %v1846_v55 }
 0x24b   : > { %v1436_v61 = vpop.permute.xlu1 %1435 }
 0x24c   : > { %v3765_v35 = vpop.permute.xlu0 %1023  ;;  %v1830_v63 = vsel %vm1802_vm9, %v1797_v3, %v1436_v61  ;;  %v1716_v61 = vsel %vm1703_vm5, %v1683_v53, %v3739_v39 }
 0x24f   : > { %v1562_v7 = vpop.permute.xlu1 %1561 }
 0x250   : > { %v1862_v36 = vsel %vm1835_vm8, %v1829_v41, %v1562_v7  ;;  %v1150_v13 = vpop.permute.xlu0 %1149  ;;  %v1633_v41 = vsel %vm171_vm0, %v2478_v38, %v4165_v46 }
 0x251   : > { %2426 = vmatprep.mubr.msk.f32.mxu1 %vm1880_vm10, %v1862_v36  ;;  %v1749_v33 = vsel %vm1736_vm6, %v1716_v61, %v1150_v13  ;;  %v1666_v8 = vsel %vm1637_vm3, %v1633_v41, %v4166_v6 }
 0x252   : > { %v1699_v17 = vsel %vm1670_vm4, %v1666_v8, %v4167_v59 }
 0x253   : > { %v3780_v48 = vpop.permute.xlu1 %1055  ;;  %v1732_v43 = vsel %vm1703_vm5, %v1699_v17, %v3750_v62 }
 0x254   : > { %v1532_v27 = vpop.permute.xlu0 %1531 }
 0x255   : > { %v1847_v0 = vsel %vm1835_vm8, %v1814_v29, %v1532_v27  ;;  %v1618_v29 = vsel %vm171_vm0, %v2479_v32, %v4168_v54  ;;  %v4178_v54 = vld [vmem:[#allocation47_spill] sm:$0xff] }
 0x256   : > { %2403 = vmatmul.mubr.msk.f32.gmra.mrb[10].mxu0 %vm1880_vm10, %v1847_v0  ;;  %v1651_v0 = vsel %vm1637_vm3, %v1618_v29, %v4169_v15 }
 0x257   : > { %v1182_v50 = vpop.permute.xlu1 %1181  ;;  %v1684_v62 = vsel %vm1670_vm4, %v1651_v0, %v4170_v44  ;;  %v4180_v0 = vld [vmem:[#allocation66_spill] sm:$0xff] }
 0x258   : > { %v1152_v40 = vpop.permute.xlu0 %1151  ;;  %v1765_v26 = vsel %vm1736_vm6, %v1732_v43, %v1182_v50  ;;  %v1717_v19 = vsel %vm1703_vm5, %v1684_v62, %v3765_v35  ;;  %v4177_v43 = vld [vmem:[#allocation18_spill] sm:$0xff] }
 0x259   : > { %v1750_v42 = vsel %vm1736_vm6, %v1717_v19, %v1152_v40 }
 0x25b   : > { %v1564_v20 = vpop.permute.xlu1 %1563 }
 0x25c   : > { %v1863_v58 = vsel %vm1835_vm8, %v1830_v63, %v1564_v20  ;;  %v1278_v1 = vpop.permute.xlu0 %1277  ;;  %v2480_v20 = vld [vmem:[#allocation2 + $0x158] sm:$0xff] }
 0x25d   : > { %2427 = vmatmul.mubr.msk.f32.gmra.mrb[10].mxu1 %vm1880_vm10, %v1863_v58  ;;  %v1782_v23 = vsel %vm1769_vm7, %v1749_v33, %v1278_v1  ;;  %v4171_v58 = vld [vmem:[#allocation34_spill] sm:$0xff] }
 0x25e   : > { %v1634_v1 = vsel %vm171_vm0, %v2480_v20, %v4171_v58  ;;  %v4182_v20 = vld [vmem:[#allocation74_spill] sm:$0xff] }
 0x25f   : > { %v3799_v4 = vpop.permute.xlu1 %1183 }
 0x260   : > { %v1280_v60 = vpop.permute.xlu0 %1279 }
 0x261   : > { %v1783_v63 = vsel %vm1769_vm7, %v1750_v42, %v1280_v60 }
 0x263   : > { %v1310_v47 = vpop.permute.xlu1 %1309 }
 0x264   : > { %v1406_v56 = vpop.permute.xlu0 %1405  ;;  %v1798_v51 = vsel %vm1769_vm7, %v1765_v26, %v1310_v47 }
 0x265   : > { %v1815_v39 = vsel %vm1802_vm9, %v1782_v23, %v1406_v56  ;;  %v4175_v23 = vld [vmem:[#allocation45_spill] sm:$0xff] }
 0x267   : > { %v3801_v21 = vpop.permute.xlu1 %1311 }
 0x268   : > { %v3808_v5 = vpop.permute.xlu0 %1025  ;;  %v2413_v34 = vpop.f32.mrb[0].mxu1 }
 0x269   : > { %v2133_v52 = vadd.f32 %v2413_v34, %v3806_v10  ;;  %v2127_v14 = vpop.f32.mrb[1].mxu1  ;;  %v4172_v34 = vld [vmem:[#allocation56_spill] sm:$0xff] }
 0x26a   : > { %v2128_v31 = vadd.f32 %v3806_v10, %v2127_v14  ;;  %v1667_v57 = vsel %vm1637_vm3, %v1634_v1, %v4172_v34 }
 0x26b   : > { %v1438_v28 = vpop.permute.xlu1 %1437  ;;  %2223 = vst.msk [vmem:[%s3815_s17 + $0x88] sm:$0xff] %vm1637_vm3, %v2133_v52  ;;  %v1700_v35 = vsel %vm1670_vm4, %v1667_v57, %v4173_v37  ;;  %v2484_v57 = vld [vmem:[#allocation2 + $0x170] sm:$0xff] }
 0x26c   : > { %v2389_v11 = vpop.f32.mrb[0].mxu0  ;;  %v1408_v25 = vpop.permute.xlu0 %1407  ;;  %2222 = vst.msk [vmem:[%s3815_s17 + $0x80] sm:$0xff] %vm1637_vm3, %v2128_v31  ;;  %v1831_v27 = vsel %vm1802_vm9, %v1798_v51, %v1438_v28  ;;  %v1733_v60 = vsel %vm1703_vm5, %v1700_v35, %v3780_v48 }
 0x26d   : > { %v2053_v55 = vadd.f32 %v2389_v11, %v3806_v10  ;;  %v2047_v12 = vpop.f32.mrb[1].mxu0  ;;  %v1816_v47 = vsel %vm1802_vm9, %v1783_v63, %v1408_v25  ;;  %v1766_v52 = vsel %vm1736_vm6, %v1733_v60, %v3799_v4  ;;  %v2481_v4 = vld [vmem:[#allocation2 + $0xa8] sm:$0xff] }
 0x26e   : > { %v2048_v16 = vadd.f32 %v3806_v10, %v2047_v12  ;;  %v1799_v28 = vsel %vm1769_vm7, %v1766_v52, %v3801_v21  ;;  %v4174_v12 = vld [vmem:[#allocation16_spill] sm:$0xff]  ;;  %v4184_v52 = vld [vmem:[#allocation57_spill] sm:$0xff] }
 0x26f   : > { %2207 = vst.msk [vmem:[%s3815_s17 + $0x8] sm:$0xff] %vm1637_vm3, %v2053_v55  ;;  %v3836_v24 = vpop.permute.xlu1 %1057  ;;  %v1619_v61 = vsel %vm171_vm0, %v2481_v4, %v4174_v12 }
 0x270   : > { %2206 = vst.msk [vmem:[%s3815_s17] sm:$0xff] %vm1637_vm3, %v2048_v16  ;;  %v1534_v7 = vpop.permute.xlu0 %1533  ;;  %v1652_v38 = vsel %vm1637_vm3, %v1619_v61, %v4175_v23 }
 0x271   : > { %v1848_v36 = vsel %vm1835_vm8, %v1815_v39, %v1534_v7  ;;  %v4176_v39 = vld [vmem:[#allocation64_spill] sm:$0xff] }
 0x272   : > { %2405 = vmatprep.mubr.msk.f32.mxu0 %vm1880_vm10, %v1848_v36  ;;  %v1685_v7 = vsel %vm1670_vm4, %v1652_v38, %v4176_v39 }
 0x273   : > { %v1440_v13 = vpop.permute.xlu1 %1439  ;;  %v1718_v59 = vsel %vm1703_vm5, %v1685_v7, %v3808_v5  ;;  %v2483_v5 = vld [vmem:[#allocation2 + $0x168] sm:$0xff] }
 0x274   : > { %v3853_v45 = vpop.permute.xlu0 %1027  ;;  %v1832_v2 = vsel %vm1802_vm9, %v1799_v28, %v1440_v13  ;;  %v2482_v13 = vld [vmem:[#allocation2 + $0xb0] sm:$0xff] }
 0x275   : > { %v1620_v26 = vsel %vm171_vm0, %v2482_v13, %v4177_v43 }
 0x276   : > { %v1653_v29 = vsel %vm1637_vm3, %v1620_v26, %v4178_v54 }
 0x277   : > { %v1566_v30 = vpop.permute.xlu1 %1565 }
 0x278   : > { %v1864_v49 = vsel %vm1835_vm8, %v1831_v27, %v1566_v30  ;;  %v1154_v50 = vpop.permute.xlu0 %1153  ;;  %v4179_v30 = vld [vmem:[#allocation33_spill] sm:$0xff] }
 0x279   : > { %2429 = vmatprep.mubr.msk.f32.mxu1 %vm1880_vm10, %v1864_v49  ;;  %v1751_v51 = vsel %vm1736_vm6, %v1718_v59, %v1154_v50  ;;  %v1635_v15 = vsel %vm171_vm0, %v2483_v5, %v4179_v30  ;;  %v1686_v49 = vsel %vm1670_vm4, %v1653_v29, %v4180_v0  ;;  %v4181_v50 = vld [vmem:[#allocation55_spill] sm:$0xff] }
 0x27a   : > { %v1668_v19 = vsel %vm1637_vm3, %v1635_v15, %v4181_v50  ;;  %v1719_v42 = vsel %vm1703_vm5, %v1686_v49, %v3853_v45 }
 0x27b   : > { %v3868_v3 = vpop.permute.xlu1 %1059  ;;  %v1701_v58 = vsel %vm1670_vm4, %v1668_v19, %v4182_v20 }
 0x27c   : > { %v1536_v56 = vpop.permute.xlu0 %1535 }
 0x27d   : > { %v1849_v18 = vsel %vm1835_vm8, %v1816_v47, %v1536_v56  ;;  %v1734_v56 = vsel %vm1703_vm5, %v1701_v58, %v3836_v24 }
 0x27e   : > { %2406 = vmatmul.mubr.msk.f32.gmra.mrb[12].mxu0 %vm1880_vm10, %v1849_v18  ;;  %v4183_v18 = vld [vmem:[#allocation35_spill] sm:$0xff] }
 0x27f   : > { %v1186_v40 = vpop.permute.xlu1 %1185  ;;  %v1636_v37 = vsel %vm171_vm0, %v2484_v57, %v4183_v18 }
 0x280   : > { %v1156_v14 = vpop.permute.xlu0 %1155  ;;  %v1767_v45 = vsel %vm1736_vm6, %v1734_v56, %v1186_v40 }
 0x281   : > { %v1752_v1 = vsel %vm1736_vm6, %v1719_v42, %v1156_v14  ;;  %v1669_v14 = vsel %vm1637_vm3, %v1636_v37, %v4184_v52 }
 0x283   : > { %v1568_v22 = vpop.permute.xlu1 %1567 }
 0x284   : > { %v1865_v31 = vsel %vm1835_vm8, %v1832_v2, %v1568_v22  ;;  %v1282_v11 = vpop.permute.xlu0 %1281  ;;  %v4185_v22 = vld [vmem:[#allocation76_spill] sm:$0xff] }
 0x285   : > { %2430 = vmatmul.mubr.msk.f32.gmra.mrb[12].mxu1 %vm1880_vm10, %v1865_v31  ;;  %v1784_v27 = vsel %vm1769_vm7, %v1751_v51, %v1282_v11  ;;  %v1702_v24 = vsel %vm1670_vm4, %v1669_v14, %v4185_v22 }
 0x286   : > { %v1735_v40 = vsel %vm1703_vm5, %v1702_v24, %v3868_v3 }
 0x287   : > { %v1188_v9 = vpop.permute.xlu1 %1187 }
 0x288   : > { %v1284_v53 = vpop.permute.xlu0 %1283 }
 0x289   : > { %v1785_v34 = vsel %vm1769_vm7, %v1752_v1, %v1284_v53 }
 0x28b   : > { %v1314_v55 = vpop.permute.xlu1 %1313 }
 0x28c   : > { %v1410_v48 = vpop.permute.xlu0 %1409  ;;  %v2416_v25 = vpop.f32.mrb[2].mxu1  ;;  %v1800_v28 = vsel %vm1769_vm7, %v1767_v45, %v1314_v55 }
 0x28d   : > { %v2143_v21 = vadd.f32 %v2416_v25, %v3806_v10  ;;  %v2137_v16 = vpop.f32.mrb[3].mxu1  ;;  %v1817_v44 = vsel %vm1802_vm9, %v1784_v27, %v1410_v48  ;;  %v1768_v48 = vsel %vm1736_vm6, %v1735_v40, %v1188_v9 }
 0x28e   : > { %v2138_v46 = vadd.f32 %v3806_v10, %v2137_v16 }
 0x28f   : > { %v1316_v33 = vpop.permute.xlu1 %1315  ;;  %2225 = vst.msk [vmem:[%s3815_s17 + $0x98] sm:$0xff] %vm1637_vm3, %v2143_v21 }
 0x290   : > { %v2392_v41 = vpop.f32.mrb[2].mxu0  ;;  %v1412_v8 = vpop.permute.xlu0 %1411  ;;  %2224 = vst.msk [vmem:[%s3815_s17 + $0x90] sm:$0xff] %vm1637_vm3, %v2138_v46  ;;  %v1801_v55 = vsel %vm1769_vm7, %v1768_v48, %v1316_v33 }
 0x291   : > { %v2063_v6 = vadd.f32 %v2392_v41, %v3806_v10  ;;  %v2057_v36 = vpop.f32.mrb[3].mxu0  ;;  %v1818_v35 = vsel %vm1802_vm9, %v1785_v34, %v1412_v8 }
 0x292   : > { %v2058_v17 = vadd.f32 %v3806_v10, %v2057_v36 }
 0x293   : > { %2209 = vst.msk [vmem:[%s3815_s17 + $0x18] sm:$0xff] %vm1637_vm3, %v2063_v6  ;;  %v1442_v32 = vpop.permute.xlu1 %1441 }
 0x294   : > { %2208 = vst.msk [vmem:[%s3815_s17 + $0x10] sm:$0xff] %vm1637_vm3, %v2058_v17  ;;  %v1538_v62 = vpop.permute.xlu0 %1537  ;;  %v1833_v31 = vsel %vm1802_vm9, %v1800_v28, %v1442_v32 }
 0x295   : > { %v1850_v63 = vsel %vm1835_vm8, %v1817_v44, %v1538_v62 }
 0x296   : > { %2408 = vmatprep.mubr.msk.f32.mxu0 %vm1880_vm10, %v1850_v63 }
 0x297   : > { %v1444_v47 = vpop.permute.xlu1 %1443 }
 0x298   : > { %v1540_v60 = vpop.permute.xlu0 %1539  ;;  %v1834_v25 = vsel %vm1802_vm9, %v1801_v55, %v1444_v47 }
 0x299   : > { %v1851_v2 = vsel %vm1835_vm8, %v1818_v35, %v1540_v60 }
 0x29a   : > { %2409 = vmatmul.mubr.msk.f32.gmra.mrb[14].mxu0 %vm1880_vm10, %v1851_v2 }
 0x29b   : > { %v1570_v11 = vpop.permute.xlu1 %1569 }
 0x29c   : > { %v1866_v53 = vsel %vm1835_vm8, %v1833_v31, %v1570_v11 }
 0x29d   : > { %2432 = vmatprep.mubr.msk.f32.mxu1 %vm1880_vm10, %v1866_v53 }
 0x29f   : > { %v1572_v4 = vpop.permute.xlu1 %1571 }
 0x2a0   : > { %v1867_v12 = vsel %vm1835_vm8, %v1834_v25, %v1572_v4 }
 0x2a1   : > { %2433 = vmatmul.mubr.msk.f32.gmra.mrb[14].mxu1 %vm1880_vm10, %v1867_v12 }
 0x2b0   : > { %v2395_v61 = vpop.f32.mrb[4].mxu0 }
 0x2b1   : > { %v2073_v3 = vadd.f32 %v2395_v61, %v3806_v10  ;;  %v2067_v21 = vpop.f32.mrb[5].mxu0 }
 0x2b2   : > { %v2068_v9 = vadd.f32 %v3806_v10, %v2067_v21 }
 0x2b3   : > { %2211 = vst.msk [vmem:[%s3815_s17 + $0x28] sm:$0xff] %vm1637_vm3, %v2073_v3 }
 0x2b4   : > { %2210 = vst.msk [vmem:[%s3815_s17 + $0x20] sm:$0xff] %vm1637_vm3, %v2068_v9 }
 0x2b8   : > { %v2419_v16 = vpop.f32.mrb[4].mxu1 }
 0x2b9   : > { %v2153_v33 = vadd.f32 %v2419_v16, %v3806_v10  ;;  %v2147_v23 = vpop.f32.mrb[5].mxu1 }
 0x2ba   : > { %v2148_v38 = vadd.f32 %v3806_v10, %v2147_v23 }
 0x2bb   : > { %2227 = vst.msk [vmem:[%s3815_s17 + $0xa8] sm:$0xff] %vm1637_vm3, %v2153_v33 }
 0x2bc   : > { %2226 = vst.msk [vmem:[%s3815_s17 + $0xa0] sm:$0xff] %vm1637_vm3, %v2148_v38 }
 0x2d9   : > { %v2398_v46 = vpop.f32.mrb[6].mxu0 }
 0x2da   : > { %v2083_v41 = vadd.f32 %v2398_v46, %v3806_v10  ;;  %v2077_v39 = vpop.f32.mrb[7].mxu0 }
 0x2db   : > { %v2078_v7 = vadd.f32 %v3806_v10, %v2077_v39 }
 0x2dc   : > { %2213 = vst.msk [vmem:[%s3815_s17 + $0x38] sm:$0xff] %vm1637_vm3, %v2083_v41 }
 0x2dd   : > { %2212 = vst.msk [vmem:[%s3815_s17 + $0x30] sm:$0xff] %vm1637_vm3, %v2078_v7 }
 0x2e0   : > { %v2422_v6 = vpop.f32.mrb[6].mxu1 }
 0x2e1   : > { %v2163_v8 = vadd.f32 %v2422_v6, %v3806_v10  ;;  %v2157_v36 = vpop.f32.mrb[7].mxu1 }
 0x2e2   : > { %v2158_v59 = vadd.f32 %v3806_v10, %v2157_v36 }
 0x2e3   : > { %2229 = vst.msk [vmem:[%s3815_s17 + $0xb8] sm:$0xff] %vm1637_vm3, %v2163_v8 }
 0x2e4   : > { %2228 = vst.msk [vmem:[%s3815_s17 + $0xb0] sm:$0xff] %vm1637_vm3, %v2158_v59 }
 0x301   : > { %v2401_v17 = vpop.f32.mrb[8].mxu0 }
 0x302   : > { %v2093_v13 = vadd.f32 %v2401_v17, %v3806_v10  ;;  %v2087_v43 = vpop.f32.mrb[9].mxu0 }
 0x303   : > { %v2088_v26 = vadd.f32 %v3806_v10, %v2087_v43 }
 0x304   : > { %2215 = vst.msk [vmem:[%s3815_s17 + $0x48] sm:$0xff] %vm1637_vm3, %v2093_v13 }
 0x305   : > { %2214 = vst.msk [vmem:[%s3815_s17 + $0x40] sm:$0xff] %vm1637_vm3, %v2088_v26 }
 0x308   : > { %v2425_v51 = vpop.f32.mrb[8].mxu1 }
 0x309   : > { %v2173_v32 = vadd.f32 %v2425_v51, %v3806_v10  ;;  %v2167_v54 = vpop.f32.mrb[9].mxu1 }
 0x30a   : > { %v2168_v29 = vadd.f32 %v3806_v10, %v2167_v54 }
 0x30b   : > { %2231 = vst.msk [vmem:[%s3815_s17 + $0xc8] sm:$0xff] %vm1637_vm3, %v2173_v32 }
 0x30c   : > { %2230 = vst.msk [vmem:[%s3815_s17 + $0xc0] sm:$0xff] %vm1637_vm3, %v2168_v29 }
 0x329   : > { %v2404_v27 = vpop.f32.mrb[10].mxu0 }
 0x32a   : > { %v2103_v5 = vadd.f32 %v2404_v27, %v3806_v10  ;;  %v2097_v30 = vpop.f32.mrb[11].mxu0 }
 0x32b   : > { %v2098_v15 = vadd.f32 %v3806_v10, %v2097_v30 }
 0x32c   : > { %2217 = vst.msk [vmem:[%s3815_s17 + $0x58] sm:$0xff] %vm1637_vm3, %v2103_v5 }
 0x32d   : > { %2216 = vst.msk [vmem:[%s3815_s17 + $0x50] sm:$0xff] %vm1637_vm3, %v2098_v15 }
 0x330   : > { %v2428_v0 = vpop.f32.mrb[10].mxu1 }
 0x331   : > { %v2183_v49 = vadd.f32 %v2428_v0, %v3806_v10  ;;  %v2177_v44 = vpop.f32.mrb[11].mxu1 }
 0x332   : > { %v2178_v62 = vadd.f32 %v3806_v10, %v2177_v44 }
 0x333   : > { %2233 = vst.msk [vmem:[%s3815_s17 + $0xd8] sm:$0xff] %vm1637_vm3, %v2183_v49 }
 0x334   : > { %2232 = vst.msk [vmem:[%s3815_s17 + $0xd0] sm:$0xff] %vm1637_vm3, %v2178_v62 }
 0x351   : > { %v2407_v50 = vpop.f32.mrb[12].mxu0 }
 0x352   : > { %v2113_v19 = vadd.f32 %v2407_v50, %v3806_v10  ;;  %v2107_v42 = vpop.f32.mrb[13].mxu0 }
 0x353   : > { %v2108_v63 = vadd.f32 %v3806_v10, %v2107_v42 }
 0x354   : > { %2219 = vst.msk [vmem:[%s3815_s17 + $0x68] sm:$0xff] %vm1637_vm3, %v2113_v19 }
 0x355   : > { %2218 = vst.msk [vmem:[%s3815_s17 + $0x60] sm:$0xff] %vm1637_vm3, %v2108_v63 }
 0x358   : > { %v2431_v20 = vpop.f32.mrb[12].mxu1 }
 0x359   : > { %v2193_v58 = vadd.f32 %v2431_v20, %v3806_v10  ;;  %v2187_v1 = vpop.f32.mrb[13].mxu1 }
 0x35a   : > { %v2188_v47 = vadd.f32 %v3806_v10, %v2187_v1 }
 0x35b   : > { %2235 = vst.msk [vmem:[%s3815_s17 + $0xe8] sm:$0xff] %vm1637_vm3, %v2193_v58 }
 0x35c   : > { %2234 = vst.msk [vmem:[%s3815_s17 + $0xe0] sm:$0xff] %vm1637_vm3, %v2188_v47 }
 0x36d   : > { %v2410_v56 = vpop.f32.mrb[14].mxu0 }
 0x36e   : > { %v2123_v34 = vadd.f32 %v2410_v56, %v3806_v10  ;;  %v2117_v57 = vpop.f32.mrb[15].mxu0 }
 0x36f   : > { %v2118_v18 = vadd.f32 %v3806_v10, %v2117_v57 }
 0x370   : > { %2221 = vst.msk [vmem:[%s3815_s17 + $0x78] sm:$0xff] %vm1637_vm3, %v2123_v34 }
 0x371   : > { %2220 = vst.msk [vmem:[%s3815_s17 + $0x70] sm:$0xff] %vm1637_vm3, %v2118_v18 }
 0x374   : > { %v2434_v37 = vpop.f32.mrb[14].mxu1 }
 0x375   : > { %v2203_v45 = vadd.f32 %v2434_v37, %v3806_v10  ;;  %v2197_v35 = vpop.f32.mrb[15].mxu1 }
 0x376   : > { %v2198_v60 = vadd.f32 %v3806_v10, %v2197_v35 }
 0x377   : > { %2237 = vst.msk [vmem:[%s3815_s17 + $0xf8] sm:$0xff] %vm1637_vm3, %v2203_v45 }
 0x378   : > { %2236 = vst.msk [vmem:[%s3815_s17 + $0xf0] sm:$0xff] %vm1637_vm3, %v2198_v60 }
 0x379 PF: > { %s13_s12 = sadd.s32 1, %s2491_s12  }
 0x37a   : > { %p10_p4 = scmp.ge.s32.totalorder %s13_s12, 4  }
 0x37c   :  { %12 = sbr.rel (!%p10_p4) target bundleno = 1 (0x1), region = 64 }

</bundles_post_ra>
